<compile_context>
chip_gen: v6e
topology: v6e:2x2x1
jax: 0.10.0
libtpu: 0.0.40
codegen_flags: <defaults>
</compile_context>

<pallas_src>
import functools

import jax
import jax.numpy as jnp
from jax.experimental import pallas as pl
from jax.experimental.pallas import tpu as pltpu

_LANE = 128
_SUBLANE = 8


def _round_up(x, m):
    return ((x + m - 1) // m) * m


def _pad1(v, n):
    return jnp.pad(v, (0, n - v.shape[0]))


def _pad2(m, r, c):
    return jnp.pad(m, ((0, r - m.shape[0]), (0, c - m.shape[1])))


# ---------------------------------------------------------------------------
# Fused Pallas kernel: all GRU layers + fc on the final hidden state.
# ---------------------------------------------------------------------------
def _gru_net_kernel(x_ref, wih_ref, whh_ref, bgi_ref, bhn_ref, h0_ref,
                    wfc_ref, bfc_ref,
                    out_ref, hT_ref,
                    h_scr, gi_buf, seq_buf,
                    *, n_layers, t_tile, hp, seq_len):
    """One (batch-chunk, time-tile) grid step.

    x_ref   : (T_TILE, Bc, P)        bf16  padded, time-major input tile
    wih_ref : (L, P, 3*Hp)           bf16  input->gates weights (gate blocks lane-aligned)
    whh_ref : (L, Hp, 3*Hp)          bf16  hidden->gates weights
    bgi_ref : (L, 1, 3*Hp)           f32   b_ih (+ b_hh for r,z gates)
    bhn_ref : (L, 1, Hp)             f32   b_hn (inside the r * (...) term)
    h0_ref  : (L, Bc, Hp)            f32   initial hidden state
    wfc_ref : (Hp, Op), bfc_ref: (1, Op)   final Linear
    out_ref : (Bc, Op)               f32   fc(out[:, -1, :])
    hT_ref  : (L, Bc, Hp)            f32   final hidden state per layer
    h_scr   : (L, Bc, Hp) VMEM f32   hidden carried across time tiles
    gi_buf  : (T_TILE, Bc, 3*Hp) VMEM f32  hoisted input-gate activations
    seq_buf : (T_TILE, Bc, Hp) VMEM f32    inter-layer activations (stay in VMEM)
    """
    t_idx = pl.program_id(1)
    num_t = pl.num_programs(1)
    bc = h_scr.shape[1]

    @pl.when(t_idx == 0)
    def _init():
        h_scr[...] = h0_ref[...]

    for layer in range(n_layers):           # static python loop over layers
        w_full = wih_ref[layer]              # (P, 3Hp) bf16
        if layer == 0:
            x2d = x_ref[...].reshape(t_tile * bc, x_ref.shape[-1])
            w_in = w_full
        else:
            x2d = seq_buf[...].reshape(t_tile * bc, hp).astype(jnp.bfloat16)
            w_in = w_full if w_full.shape[0] == hp else w_full[:hp, :]

        # Hoisted input->gates matmul for the whole time tile (one MXU op).
        gi = jnp.dot(x2d, w_in, preferred_element_type=jnp.float32)
        gi = gi + bgi_ref[layer]                         # (T_TILE*Bc, 3Hp)
        gi_buf[...] = gi.reshape(t_tile, bc, 3 * hp)

        whh = whh_ref[layer]                             # (Hp, 3Hp) bf16
        b_hn = bhn_ref[layer]                            # (1, Hp)   f32

        h = h_scr[layer]                                 # (Bc, Hp)  f32
        last_layer = layer == n_layers - 1
        for t in range(t_tile):                          # static unroll
            gi_t = gi_buf[t]                             # (Bc, 3Hp)
            gh = jnp.dot(h.astype(jnp.bfloat16), whh,
                         preferred_element_type=jnp.float32)   # (Bc, 3Hp)
            # Gate slices are lane-aligned (multiples of 128) -> free views.
            r = jax.nn.sigmoid(gi_t[:, 0:hp] + gh[:, 0:hp])
            z = jax.nn.sigmoid(gi_t[:, hp:2 * hp] + gh[:, hp:2 * hp])
            n = jnp.tanh(gi_t[:, 2 * hp:] + r * (gh[:, 2 * hp:] + b_hn))
            h_new = n + z * (h - n)
            if (seq_len % t_tile) != 0:
                # Mask padded timesteps in the ragged tail tile.
                valid = (t_idx * t_tile + t) < seq_len
                h_new = jnp.where(valid, h_new, h)
            h = h_new
            if not last_layer:
                seq_buf[t] = h                           # feeds the next layer
        h_scr[layer] = h

    @pl.when(t_idx == num_t - 1)
    def _finalize():
        hT_ref[...] = h_scr[...]
        h_top = h_scr[n_layers - 1]                      # == out[:, -1, :]
        out_ref[...] = (jnp.dot(h_top, wfc_ref[...],
                                preferred_element_type=jnp.float32)
                        + bfc_ref[...])


# ---------------------------------------------------------------------------
# Parameter init (PyTorch layout) and packing for the kernel
# ---------------------------------------------------------------------------
def init_gru_net_params(key, input_dim, hidden_dim, output_dim, n_layers):
    """PyTorch-style raw params: U(-1/sqrt(H), 1/sqrt(H))."""
    bound = 1.0 / float(jnp.sqrt(jnp.float32(hidden_dim)))
    layers = []
    for layer in range(n_layers):
        in_dim = input_dim if layer == 0 else hidden_dim
        key, k1, k2, k3, k4 = jax.random.split(key, 5)
        layers.append({
            "w_ih": jax.random.uniform(k1, (3 * hidden_dim, in_dim),
                                       jnp.float32, -bound, bound),
            "w_hh": jax.random.uniform(k2, (3 * hidden_dim, hidden_dim),
                                       jnp.float32, -bound, bound),
            "b_ih": jax.random.uniform(k3, (3 * hidden_dim,), jnp.float32,
                                       -bound, bound),
            "b_hh": jax.random.uniform(k4, (3 * hidden_dim,), jnp.float32,
                                       -bound, bound),
        })
    key, kf1, kf2 = jax.random.split(key, 3)
    return {
        "layers": layers,
        "fc_w": jax.random.uniform(kf1, (output_dim, hidden_dim), jnp.float32,
                                   -bound, bound),
        "fc_b": jax.random.uniform(kf2, (output_dim,), jnp.float32,
                                   -bound, bound),
    }


def pack_gru_net_params(raw):
    """Pad/transpose/stack raw params into the kernel layout (done once)."""
    n_layers = len(raw["layers"])
    H = raw["layers"][0]["w_hh"].shape[1]
    D = raw["layers"][0]["w_ih"].shape[1]
    O = raw["fc_w"].shape[0]
    Hp = _round_up(H, _LANE)
    Dp = _round_up(D, _LANE)
    Op = _round_up(O, _LANE)
    P = max(Dp, Hp)                       # shared row-count for stacked W_ih

    wih_l, whh_l, bgi_l, bhn_l = [], [], [], []
    for layer in range(n_layers):
        p = raw["layers"][layer]
        w_ih, w_hh = p["w_ih"], p["w_hh"]
        b_ih, b_hh = p["b_ih"], p["b_hh"]
        # Each gate gets its own lane-aligned (P, Hp) / (Hp, Hp) block.
        wih_l.append(jnp.concatenate(
            [_pad2(w_ih[g * H:(g + 1) * H, :].T, P, Hp) for g in range(3)],
            axis=1))
        whh_l.append(jnp.concatenate(
            [_pad2(w_hh[g * H:(g + 1) * H, :].T, Hp, Hp) for g in range(3)],
            axis=1))
        # r,z biases pre-combined (b_ih + b_hh); n keeps b_hn inside r*(...).
        bgi_l.append(jnp.concatenate([
            _pad1(b_ih[0:H] + b_hh[0:H], Hp),
            _pad1(b_ih[H:2 * H] + b_hh[H:2 * H], Hp),
            _pad1(b_ih[2 * H:3 * H], Hp),
        ])[None, :])
        bhn_l.append(_pad1(b_hh[2 * H:3 * H], Hp)[None, :])

    return {
        "wih": jnp.stack(wih_l).astype(jnp.bfloat16),      # (L, P, 3Hp)
        "whh": jnp.stack(whh_l).astype(jnp.bfloat16),      # (L, Hp, 3Hp)
        "bgi": jnp.stack(bgi_l).astype(jnp.float32),       # (L, 1, 3Hp)
        "bhn": jnp.stack(bhn_l).astype(jnp.float32),       # (L, 1, Hp)
        "wfc": _pad2(raw["fc_w"].T, Hp, Op).astype(jnp.float32),
        "bfc": _pad1(raw["fc_b"], Op)[None, :].astype(jnp.float32),
        "dims": dict(H=H, D=D, O=O, Hp=Hp, P=P, Op=Op, n_layers=n_layers),
    }


# ---------------------------------------------------------------------------
# Forward wrapper
# ---------------------------------------------------------------------------
def gru_net_forward(packed, x, h=None, *, t_tile=8, b_chunk=8):
    """x: (B, T, input_dim) batch_first. Returns (out (B,O), h (L,B,H))."""
    dims = packed["dims"]
    H, D, O = dims["H"], dims["D"], dims["O"]
    Hp, P, Op, n_layers = dims["Hp"], dims["P"], dims["Op"], dims["n_layers"]
    B, T, Dx = x.shape
    assert Dx == D

    Bp = _round_up(B, b_chunk)
    nt = pl.cdiv(T, t_tile)
    Tp = nt * t_tile
    th3 = 3 * Hp

    # Time-major + pad batch->Bp(8), features->P(128), time->Tp; cast to bf16.
    # The transpose fuses with this mandatory pad/cast prep pass in XLA.
    # TODO(synk): for very large (B,T,D) fetch batch-first tiles directly and
    # transpose in-kernel to avoid the extra HBM pass entirely.
    x_tm = jnp.transpose(x, (1, 0, 2)).astype(jnp.bfloat16)
    x_pad = jnp.zeros((Tp, Bp, P), jnp.bfloat16).at[:T, :B, :D].set(x_tm)

    if h is None:
        h0 = jnp.zeros((n_layers, Bp, Hp), jnp.float32)
    else:
        h0 = jnp.zeros((n_layers, Bp, Hp), jnp.float32).at[:, :B, :H].set(
            h.astype(jnp.float32))

    kernel = functools.partial(_gru_net_kernel, n_layers=n_layers,
                               t_tile=t_tile, hp=Hp, seq_len=T)

    grid = (Bp // b_chunk, nt)   # (parallel batch chunks, sequential time)

    in_specs = [
        pl.BlockSpec((t_tile, b_chunk, P), lambda b, t: (t, b, 0)),      # x
        pl.BlockSpec((n_layers, P, th3), lambda b, t: (0, 0, 0)),        # wih
        pl.BlockSpec((n_layers, Hp, th3), lambda b, t: (0, 0, 0)),       # whh
        pl.BlockSpec((n_layers, 1, th3), lambda b, t: (0, 0, 0)),        # bgi
        pl.BlockSpec((n_layers, 1, Hp), lambda b, t: (0, 0, 0)),         # bhn
        pl.BlockSpec((n_layers, b_chunk, Hp), lambda b, t: (0, b, 0)),   # h0
        pl.BlockSpec((Hp, Op), lambda b, t: (0, 0)),                     # wfc
        pl.BlockSpec((1, Op), lambda b, t: (0, 0)),                      # bfc
    ]
    out_specs = (
        pl.BlockSpec((b_chunk, Op), lambda b, t: (b, 0)),                # fc out
        pl.BlockSpec((n_layers, b_chunk, Hp), lambda b, t: (0, b, 0)),   # hT
    )
    out_shape = (
        jax.ShapeDtypeStruct((Bp, Op), jnp.float32),
        jax.ShapeDtypeStruct((n_layers, Bp, Hp), jnp.float32),
    )
    scratch_shapes = [
        pltpu.VMEM((n_layers, b_chunk, Hp), jnp.float32),   # hidden carry
        pltpu.VMEM((t_tile, b_chunk, th3), jnp.float32),    # hoisted gate acts
        pltpu.VMEM((t_tile, b_chunk, Hp), jnp.float32),     # inter-layer seq
    ]

    # Explicit VMEM budget (sized so the same config fits v7x's 64 MiB VMEM).
    est = (2 * t_tile * b_chunk * P * 2                      # x, double-buffered bf16
           + n_layers * (P + Hp) * th3 * 2                   # weights bf16
           + n_layers * (th3 + Hp) * 4                       # biases f32
           + 2 * n_layers * b_chunk * Hp * 4                 # h0 in + hT out
           + Hp * Op * 4 + Op * 4 + 2 * b_chunk * Op * 4     # fc weights + out
           + n_layers * b_chunk * Hp * 4                     # h scratch
           + t_tile * b_chunk * th3 * 4                      # gi scratch
           + t_tile * b_chunk * Hp * 4)                      # seq scratch
    vmem_limit = int(min(max(2 * est, 16 * 2**20), 48 * 2**20))

    out_pad, hT_pad = pl.pallas_call(
        kernel,
        out_shape=out_shape,
        grid_spec=pltpu.PrefetchScalarGridSpec(
            num_scalar_prefetch=0,
            grid=grid,
            in_specs=in_specs,
            out_specs=out_specs,
            scratch_shapes=scratch_shapes),
        compiler_params=pltpu.CompilerParams(
            dimension_semantics=("parallel", "arbitrary"),
            vmem_limit_bytes=vmem_limit),
    )(x_pad, packed["wih"], packed["whh"], packed["bgi"], packed["bhn"],
      h0, packed["wfc"], packed["bfc"])

    return out_pad[:B, :O], hT_pad[:, :B, :H]


# ---------------------------------------------------------------------------
# Pure-JAX f32 reference (torch.nn.GRU semantics) for sanity checking
# ---------------------------------------------------------------------------
def gru_net_reference(raw, x, h=None):
    n_layers = len(raw["layers"])
    H = raw["layers"][0]["w_hh"].shape[1]
    B, T, _ = x.shape
    if h is None:
        h = jnp.zeros((n_layers, B, H), jnp.float32)
    layer_in = x
    h_finals = []
    for layer in range(n_layers):
        p = raw["layers"][layer]
        w_ih_t, w_hh_t = p["w_ih"].T, p["w_hh"].T
        b_ih, b_hh = p["b_ih"], p["b_hh"]
        h_t = h[layer]
        outs = []
        for t in range(T):
            x_t = layer_in[:, t, :]
            gi = x_t @ w_ih_t + b_ih
            gh = h_t @ w_hh_t + b_hh
            r = jax.nn.sigmoid(gi[:, :H] + gh[:, :H])
            z = jax.nn.sigmoid(gi[:, H:2 * H] + gh[:, H:2 * H])
            n = jnp.tanh(gi[:, 2 * H:] + r * gh[:, 2 * H:])
            h_t = (1.0 - z) * n + z * h_t
            outs.append(h_t)
        layer_in = jnp.stack(outs, axis=1)
        h_finals.append(h_t)
    out = layer_in[:, -1, :] @ raw["fc_w"].T + raw["fc_b"]
    return out, jnp.stack(h_finals, axis=0)


# ---------------------------------------------------------------------------
if __name__ == "__main__":
    batch, seq_len = 2, 8
    input_dim, hidden_dim, output_dim, n_layers = 16, 32, 8, 2

    key = jax.random.PRNGKey(0)
    key, kx, kh = jax.random.split(key, 3)
    x = jax.random.normal(kx, (batch, seq_len, input_dim), jnp.float32)

    raw = init_gru_net_params(key, input_dim, hidden_dim, output_dim, n_layers)
    packed = pack_gru_net_params(raw)

    run_no_h = jax.jit(lambda xx: gru_net_forward(packed, xx))
    run_with_h = jax.jit(lambda xx, hh: gru_net_forward(packed, xx, hh))

    # --- h = None path (matches GRUNet.forward(x)) ---
    out, h_fin = run_no_h(x)
    out = jax.block_until_ready(out)
    h_fin = jax.block_until_ready(h_fin)
    out_ref, h_ref = gru_net_reference(raw, x, None)

    assert out.shape == (batch, output_dim)
    assert h_fin.shape == (n_layers, batch, hidden_dim)
    # bf16 MXU operands (f32 accumulation + f32 gate math) vs f32 reference.
    assert jnp.allclose(out, out_ref, atol=5e-2, rtol=1e-3)
    assert jnp.allclose(h_fin, h_ref, atol=5e-2, rtol=1e-3)

    # --- explicit initial hidden state path (GRUNet.forward(x, h)) ---
    h0 = 0.1 * jax.random.normal(kh, (n_layers, batch, hidden_dim), jnp.float32)
    out2, h2 = run_with_h(x, h0)
    out2 = jax.block_until_ready(out2)
    h2 = jax.block_until_ready(h2)
    out2_ref, h2_ref = gru_net_reference(raw, x, h0)
    assert jnp.allclose(out2, out2_ref, atol=5e-2, rtol=1e-3)
    assert jnp.allclose(h2, h2_ref, atol=5e-2, rtol=1e-3)

    print("KERNEL_OK")
</pallas_src>

<mosaic_0001>
module attributes {stable_mosaic.version = 11 : i64} {
  func.func @_gru_net_kernel(%arg0: i32, %arg1: i32, %arg2: memref<8x8x128xbf16, #tpu.memory_space<vmem>>, %arg3: memref<2x128x384xbf16, #tpu.memory_space<vmem>>, %arg4: memref<2x128x384xbf16, #tpu.memory_space<vmem>>, %arg5: memref<2x1x384xf32, #tpu.memory_space<vmem>>, %arg6: memref<2x1x128xf32, #tpu.memory_space<vmem>>, %arg7: memref<2x8x128xf32, #tpu.memory_space<vmem>>, %arg8: memref<128x128xf32, #tpu.memory_space<vmem>>, %arg9: memref<1x128xf32, #tpu.memory_space<vmem>>, %arg10: memref<8x128xf32, #tpu.memory_space<vmem>>, %arg11: memref<2x8x128xf32, #tpu.memory_space<vmem>>, %arg12: memref<2x8x128xf32, #tpu.memory_space<vmem>>, %arg13: memref<8x8x384xf32, #tpu.memory_space<vmem>>, %arg14: memref<8x8x128xf32, #tpu.memory_space<vmem>>) attributes {dimension_semantics = [#tpu.dimension_semantics<parallel>, #tpu.dimension_semantics<arbitrary>], iteration_bounds = array<i64: 1, 1>, scalar_prefetch = 0 : i64, scratch_operands = 3 : i64, tpu.core_type = #tpu.core_type<tc>, window_params = [{transform_indices = @transform_0, window_bounds = array<i64: 8, 8, 128>}, {pipeline_mode = #tpu.pipeline_mode<synchronous>, transform_indices = @transform_1, window_bounds = array<i64: 2, 128, 384>}, {pipeline_mode = #tpu.pipeline_mode<synchronous>, transform_indices = @transform_2, window_bounds = array<i64: 2, 128, 384>}, {pipeline_mode = #tpu.pipeline_mode<synchronous>, transform_indices = @transform_3, window_bounds = array<i64: 2, 1, 384>}, {pipeline_mode = #tpu.pipeline_mode<synchronous>, transform_indices = @transform_4, window_bounds = array<i64: 2, 1, 128>}, {transform_indices = @transform_5, window_bounds = array<i64: 2, 8, 128>}, {pipeline_mode = #tpu.pipeline_mode<synchronous>, transform_indices = @transform_6, window_bounds = array<i64: 128, 128>}, {pipeline_mode = #tpu.pipeline_mode<synchronous>, transform_indices = @transform_7, window_bounds = array<i64: 1, 128>}, {transform_indices = @transform_8, window_bounds = array<i64: 8, 128>}, {transform_indices = @transform_9, window_bounds = array<i64: 2, 8, 128>}]} {
    %c0_i32 = arith.constant 0 : i32
    %0 = arith.cmpi eq, %arg1, %c0_i32 : i32
    %1 = arith.extui %0 : i1 to i32
    %c0_i32_0 = arith.constant 0 : i32
    %2 = arith.cmpi ne, %1, %c0_i32_0 : i32
    scf.if %2 {
      %c0_164 = arith.constant 0 : index
      %c0_165 = arith.constant 0 : index
      %c0_166 = arith.constant 0 : index
      %551 = vector.load %arg7[%c0_164, %c0_165, %c0_166] : memref<2x8x128xf32, #tpu.memory_space<vmem>>, vector<2x8x128xf32>
      %c0_167 = arith.constant 0 : index
      %c0_168 = arith.constant 0 : index
      %c0_169 = arith.constant 0 : index
      %552 = vector.load %arg12[%c0_167, %c0_168, %c0_169] : memref<2x8x128xf32, #tpu.memory_space<vmem>>, vector<2x8x128xf32>
      tpu.vector_store %arg12[%c0_167, %c0_168, %c0_169], %551 {strides = array<i32>} : memref<2x8x128xf32, #tpu.memory_space<vmem>>, vector<2x8x128xf32>,
    } else {
    }
    %c0 = arith.constant 0 : index
    %c0_1 = arith.constant 0 : index
    %c0_2 = arith.constant 0 : index
    %3 = vector.load %arg3[%c0, %c0_1, %c0_2] : memref<2x128x384xbf16, #tpu.memory_space<vmem>>, vector<1x128x384xbf16>
    %4 = vector.shape_cast %3 : vector<1x128x384xbf16> to vector<128x384xbf16>
    %c0_3 = arith.constant 0 : index
    %c0_4 = arith.constant 0 : index
    %c0_5 = arith.constant 0 : index
    %5 = vector.load %arg2[%c0_3, %c0_4, %c0_5] : memref<8x8x128xbf16, #tpu.memory_space<vmem>>, vector<8x8x128xbf16>
    %6 = vector.shape_cast %5 : vector<8x8x128xbf16> to vector<64x128xbf16>
    %cst = arith.constant dense<0.000000e+00> : vector<64x384xf32>
    %7 = tpu.matmul %6, %4, %cst {dimension_numbers = #tpu.dot_dimension_numbers<[1], [0], [0], [1], [0, 0, 1, 1], [], []>} : vector<64x128xbf16>, vector<128x384xbf16>, vector<64x384xf32> -> vector<64x384xf32>
    %c0_6 = arith.constant 0 : index
    %c0_7 = arith.constant 0 : index
    %c0_8 = arith.constant 0 : index
    %8 = vector.load %arg5[%c0_6, %c0_7, %c0_8] : memref<2x1x384xf32, #tpu.memory_space<vmem>>, vector<1x1x384xf32>
    %9 = vector.shape_cast %8 : vector<1x1x384xf32> to vector<1x384xf32>
    %10 = vector.broadcast %9 : vector<1x384xf32> to vector<64x384xf32>
    %11 = arith.addf %7, %10 : vector<64x384xf32>
    %12 = vector.shape_cast %11 : vector<64x384xf32> to vector<8x8x384xf32>
    %c0_9 = arith.constant 0 : index
    %c0_10 = arith.constant 0 : index
    %c0_11 = arith.constant 0 : index
    %13 = vector.load %arg13[%c0_9, %c0_10, %c0_11] : memref<8x8x384xf32, #tpu.memory_space<vmem>>, vector<8x8x384xf32>
    tpu.vector_store %arg13[%c0_9, %c0_10, %c0_11], %12 {strides = array<i32>} : memref<8x8x384xf32, #tpu.memory_space<vmem>>, vector<8x8x384xf32>,
    %c0_12 = arith.constant 0 : index
    %c0_13 = arith.constant 0 : index
    %c0_14 = arith.constant 0 : index
    %14 = vector.load %arg4[%c0_12, %c0_13, %c0_14] : memref<2x128x384xbf16, #tpu.memory_space<vmem>>, vector<1x128x384xbf16>
    %15 = vector.shape_cast %14 : vector<1x128x384xbf16> to vector<128x384xbf16>
    %c0_15 = arith.constant 0 : index
    %c0_16 = arith.constant 0 : index
    %c0_17 = arith.constant 0 : index
    %16 = vector.load %arg6[%c0_15, %c0_16, %c0_17] : memref<2x1x128xf32, #tpu.memory_space<vmem>>, vector<1x1x128xf32>
    %17 = vector.shape_cast %16 : vector<1x1x128xf32> to vector<1x128xf32>
    %c0_18 = arith.constant 0 : index
    %c0_19 = arith.constant 0 : index
    %c0_20 = arith.constant 0 : index
    %18 = vector.load %arg12[%c0_18, %c0_19, %c0_20] : memref<2x8x128xf32, #tpu.memory_space<vmem>>, vector<1x8x128xf32>
    %19 = vector.shape_cast %18 : vector<1x8x128xf32> to vector<8x128xf32>
    %c0_21 = arith.constant 0 : index
    %c0_22 = arith.constant 0 : index
    %c0_23 = arith.constant 0 : index
    %20 = vector.load %arg13[%c0_21, %c0_22, %c0_23] : memref<8x8x384xf32, #tpu.memory_space<vmem>>, vector<1x8x384xf32>
    %21 = vector.shape_cast %20 : vector<1x8x384xf32> to vector<8x384xf32>
    %22 = arith.truncf %19 : vector<8x128xf32> to vector<8x128xbf16>
    %cst_24 = arith.constant dense<0.000000e+00> : vector<8x384xf32>
    %23 = tpu.matmul %22, %15, %cst_24 {dimension_numbers = #tpu.dot_dimension_numbers<[1], [0], [0], [1], [0, 0, 1, 1], [], []>} : vector<8x128xbf16>, vector<128x384xbf16>, vector<8x384xf32> -> vector<8x384xf32>
    %24 = vector.extract_strided_slice %21 {offsets = [0, 0], sizes = [8, 128], strides = [1, 1]} : vector<8x384xf32> to vector<8x128xf32>
    %25 = vector.extract_strided_slice %23 {offsets = [0, 0], sizes = [8, 128], strides = [1, 1]} : vector<8x384xf32> to vector<8x128xf32>
    %26 = arith.addf %24, %25 : vector<8x128xf32>
    %27 = arith.negf %26 : vector<8x128xf32>
    %28 = math.exp %27 : vector<8x128xf32>
    %cst_25 = arith.constant 1.000000e+00 : f32
    %29 = vector.broadcast %cst_25 : f32 to vector<8x128xf32>
    %30 = arith.addf %29, %28 : vector<8x128xf32>
    %31 = arith.divf %29, %30 : vector<8x128xf32>
    %32 = vector.extract_strided_slice %21 {offsets = [0, 128], sizes = [8, 128], strides = [1, 1]} : vector<8x384xf32> to vector<8x128xf32>
    %33 = vector.extract_strided_slice %23 {offsets = [0, 128], sizes = [8, 128], strides = [1, 1]} : vector<8x384xf32> to vector<8x128xf32>
    %34 = arith.addf %32, %33 : vector<8x128xf32>
    %35 = arith.negf %34 : vector<8x128xf32>
    %36 = math.exp %35 : vector<8x128xf32>
    %cst_26 = arith.constant 1.000000e+00 : f32
    %37 = vector.broadcast %cst_26 : f32 to vector<8x128xf32>
    %38 = arith.addf %37, %36 : vector<8x128xf32>
    %39 = arith.divf %37, %38 : vector<8x128xf32>
    %40 = vector.extract_strided_slice %21 {offsets = [0, 256], sizes = [8, 128], strides = [1, 1]} : vector<8x384xf32> to vector<8x128xf32>
    %41 = vector.extract_strided_slice %23 {offsets = [0, 256], sizes = [8, 128], strides = [1, 1]} : vector<8x384xf32> to vector<8x128xf32>
    %42 = vector.broadcast %17 : vector<1x128xf32> to vector<8x128xf32>
    %43 = arith.addf %41, %42 : vector<8x128xf32>
    %44 = arith.mulf %31, %43 : vector<8x128xf32>
    %45 = arith.addf %40, %44 : vector<8x128xf32>
    %46 = math.tanh %45 : vector<8x128xf32>
    %47 = arith.subf %19, %46 : vector<8x128xf32>
    %48 = arith.mulf %39, %47 : vector<8x128xf32>
    %49 = arith.addf %46, %48 : vector<8x128xf32>
    %c0_27 = arith.constant 0 : index
    %c0_28 = arith.constant 0 : index
    %c0_29 = arith.constant 0 : index
    %50 = vector.load %arg14[%c0_27, %c0_28, %c0_29] : memref<8x8x128xf32, #tpu.memory_space<vmem>>, vector<1x8x128xf32>
    %51 = vector.shape_cast %50 : vector<1x8x128xf32> to vector<8x128xf32>
    %52 = vector.shape_cast %49 : vector<8x128xf32> to vector<1x8x128xf32>
    tpu.vector_store %arg14[%c0_27, %c0_28, %c0_29], %52 {strides = array<i32>} : memref<8x8x128xf32, #tpu.memory_space<vmem>>, vector<1x8x128xf32>,
    %c1 = arith.constant 1 : index
    %c0_30 = arith.constant 0 : index
    %c0_31 = arith.constant 0 : index
    %53 = vector.load %arg13[%c1, %c0_30, %c0_31] : memref<8x8x384xf32, #tpu.memory_space<vmem>>, vector<1x8x384xf32>
    %54 = vector.shape_cast %53 : vector<1x8x384xf32> to vector<8x384xf32>
    %55 = arith.truncf %49 : vector<8x128xf32> to vector<8x128xbf16>
    %cst_32 = arith.constant dense<0.000000e+00> : vector<8x384xf32>
    %56 = tpu.matmul %55, %15, %cst_32 {dimension_numbers = #tpu.dot_dimension_numbers<[1], [0], [0], [1], [0, 0, 1, 1], [], []>} : vector<8x128xbf16>, vector<128x384xbf16>, vector<8x384xf32> -> vector<8x384xf32>
    %57 = vector.extract_strided_slice %54 {offsets = [0, 0], sizes = [8, 128], strides = [1, 1]} : vector<8x384xf32> to vector<8x128xf32>
    %58 = vector.extract_strided_slice %56 {offsets = [0, 0], sizes = [8, 128], strides = [1, 1]} : vector<8x384xf32> to vector<8x128xf32>
    %59 = arith.addf %57, %58 : vector<8x128xf32>
    %60 = arith.negf %59 : vector<8x128xf32>
    %61 = math.exp %60 : vector<8x128xf32>
    %cst_33 = arith.constant 1.000000e+00 : f32
    %62 = vector.broadcast %cst_33 : f32 to vector<8x128xf32>
    %63 = arith.addf %62, %61 : vector<8x128xf32>
    %64 = arith.divf %62, %63 : vector<8x128xf32>
    %65 = vector.extract_strided_slice %54 {offsets = [0, 128], sizes = [8, 128], strides = [1, 1]} : vector<8x384xf32> to vector<8x128xf32>
    %66 = vector.extract_strided_slice %56 {offsets = [0, 128], sizes = [8, 128], strides = [1, 1]} : vector<8x384xf32> to vector<8x128xf32>
    %67 = arith.addf %65, %66 : vector<8x128xf32>
    %68 = arith.negf %67 : vector<8x128xf32>
    %69 = math.exp %68 : vector<8x128xf32>
    %cst_34 = arith.constant 1.000000e+00 : f32
    %70 = vector.broadcast %cst_34 : f32 to vector<8x128xf32>
    %71 = arith.addf %70, %69 : vector<8x128xf32>
    %72 = arith.divf %70, %71 : vector<8x128xf32>
    %73 = vector.extract_strided_slice %54 {offsets = [0, 256], sizes = [8, 128], strides = [1, 1]} : vector<8x384xf32> to vector<8x128xf32>
    %74 = vector.extract_strided_slice %56 {offsets = [0, 256], sizes = [8, 128], strides = [1, 1]} : vector<8x384xf32> to vector<8x128xf32>
    %75 = vector.broadcast %17 : vector<1x128xf32> to vector<8x128xf32>
    %76 = arith.addf %74, %75 : vector<8x128xf32>
    %77 = arith.mulf %64, %76 : vector<8x128xf32>
    %78 = arith.addf %73, %77 : vector<8x128xf32>
    %79 = math.tanh %78 : vector<8x128xf32>
    %80 = arith.subf %49, %79 : vector<8x128xf32>
    %81 = arith.mulf %72, %80 : vector<8x128xf32>
    %82 = arith.addf %79, %81 : vector<8x128xf32>
    %c1_35 = arith.constant 1 : index
    %c0_36 = arith.constant 0 : index
    %c0_37 = arith.constant 0 : index
    %83 = vector.load %arg14[%c1_35, %c0_36, %c0_37] : memref<8x8x128xf32, #tpu.memory_space<vmem>>, vector<1x8x128xf32>
    %84 = vector.shape_cast %83 : vector<1x8x128xf32> to vector<8x128xf32>
    %85 = vector.shape_cast %82 : vector<8x128xf32> to vector<1x8x128xf32>
    tpu.vector_store %arg14[%c1_35, %c0_36, %c0_37], %85 {strides = array<i32>} : memref<8x8x128xf32, #tpu.memory_space<vmem>>, vector<1x8x128xf32>,
    %c2 = arith.constant 2 : index
    %c0_38 = arith.constant 0 : index
    %c0_39 = arith.constant 0 : index
    %86 = vector.load %arg13[%c2, %c0_38, %c0_39] : memref<8x8x384xf32, #tpu.memory_space<vmem>>, vector<1x8x384xf32>
    %87 = vector.shape_cast %86 : vector<1x8x384xf32> to vector<8x384xf32>
    %88 = arith.truncf %82 : vector<8x128xf32> to vector<8x128xbf16>
    %cst_40 = arith.constant dense<0.000000e+00> : vector<8x384xf32>
    %89 = tpu.matmul %88, %15, %cst_40 {dimension_numbers = #tpu.dot_dimension_numbers<[1], [0], [0], [1], [0, 0, 1, 1], [], []>} : vector<8x128xbf16>, vector<128x384xbf16>, vector<8x384xf32> -> vector<8x384xf32>
    %90 = vector.extract_strided_slice %87 {offsets = [0, 0], sizes = [8, 128], strides = [1, 1]} : vector<8x384xf32> to vector<8x128xf32>
    %91 = vector.extract_strided_slice %89 {offsets = [0, 0], sizes = [8, 128], strides = [1, 1]} : vector<8x384xf32> to vector<8x128xf32>
    %92 = arith.addf %90, %91 : vector<8x128xf32>
    %93 = arith.negf %92 : vector<8x128xf32>
    %94 = math.exp %93 : vector<8x128xf32>
    %cst_41 = arith.constant 1.000000e+00 : f32
    %95 = vector.broadcast %cst_41 : f32 to vector<8x128xf32>
    %96 = arith.addf %95, %94 : vector<8x128xf32>
    %97 = arith.divf %95, %96 : vector<8x128xf32>
    %98 = vector.extract_strided_slice %87 {offsets = [0, 128], sizes = [8, 128], strides = [1, 1]} : vector<8x384xf32> to vector<8x128xf32>
    %99 = vector.extract_strided_slice %89 {offsets = [0, 128], sizes = [8, 128], strides = [1, 1]} : vector<8x384xf32> to vector<8x128xf32>
    %100 = arith.addf %98, %99 : vector<8x128xf32>
    %101 = arith.negf %100 : vector<8x128xf32>
    %102 = math.exp %101 : vector<8x128xf32>
    %cst_42 = arith.constant 1.000000e+00 : f32
    %103 = vector.broadcast %cst_42 : f32 to vector<8x128xf32>
    %104 = arith.addf %103, %102 : vector<8x128xf32>
    %105 = arith.divf %103, %104 : vector<8x128xf32>
    %106 = vector.extract_strided_slice %87 {offsets = [0, 256], sizes = [8, 128], strides = [1, 1]} : vector<8x384xf32> to vector<8x128xf32>
    %107 = vector.extract_strided_slice %89 {offsets = [0, 256], sizes = [8, 128], strides = [1, 1]} : vector<8x384xf32> to vector<8x128xf32>
    %108 = vector.broadcast %17 : vector<1x128xf32> to vector<8x128xf32>
    %109 = arith.addf %107, %108 : vector<8x128xf32>
    %110 = arith.mulf %97, %109 : vector<8x128xf32>
    %111 = arith.addf %106, %110 : vector<8x128xf32>
    %112 = math.tanh %111 : vector<8x128xf32>
    %113 = arith.subf %82, %112 : vector<8x128xf32>
    %114 = arith.mulf %105, %113 : vector<8x128xf32>
    %115 = arith.addf %112, %114 : vector<8x128xf32>
    %c2_43 = arith.constant 2 : index
    %c0_44 = arith.constant 0 : index
    %c0_45 = arith.constant 0 : index
    %116 = vector.load %arg14[%c2_43, %c0_44, %c0_45] : memref<8x8x128xf32, #tpu.memory_space<vmem>>, vector<1x8x128xf32>
    %117 = vector.shape_cast %116 : vector<1x8x128xf32> to vector<8x128xf32>
    %118 = vector.shape_cast %115 : vector<8x128xf32> to vector<1x8x128xf32>
    tpu.vector_store %arg14[%c2_43, %c0_44, %c0_45], %118 {strides = array<i32>} : memref<8x8x128xf32, #tpu.memory_space<vmem>>, vector<1x8x128xf32>,
    %c3 = arith.constant 3 : index
    %c0_46 = arith.constant 0 : index
    %c0_47 = arith.constant 0 : index
    %119 = vector.load %arg13[%c3, %c0_46, %c0_47] : memref<8x8x384xf32, #tpu.memory_space<vmem>>, vector<1x8x384xf32>
    %120 = vector.shape_cast %119 : vector<1x8x384xf32> to vector<8x384xf32>
    %121 = arith.truncf %115 : vector<8x128xf32> to vector<8x128xbf16>
    %cst_48 = arith.constant dense<0.000000e+00> : vector<8x384xf32>
    %122 = tpu.matmul %121, %15, %cst_48 {dimension_numbers = #tpu.dot_dimension_numbers<[1], [0], [0], [1], [0, 0, 1, 1], [], []>} : vector<8x128xbf16>, vector<128x384xbf16>, vector<8x384xf32> -> vector<8x384xf32>
    %123 = vector.extract_strided_slice %120 {offsets = [0, 0], sizes = [8, 128], strides = [1, 1]} : vector<8x384xf32> to vector<8x128xf32>
    %124 = vector.extract_strided_slice %122 {offsets = [0, 0], sizes = [8, 128], strides = [1, 1]} : vector<8x384xf32> to vector<8x128xf32>
    %125 = arith.addf %123, %124 : vector<8x128xf32>
    %126 = arith.negf %125 : vector<8x128xf32>
    %127 = math.exp %126 : vector<8x128xf32>
    %cst_49 = arith.constant 1.000000e+00 : f32
    %128 = vector.broadcast %cst_49 : f32 to vector<8x128xf32>
    %129 = arith.addf %128, %127 : vector<8x128xf32>
    %130 = arith.divf %128, %129 : vector<8x128xf32>
    %131 = vector.extract_strided_slice %120 {offsets = [0, 128], sizes = [8, 128], strides = [1, 1]} : vector<8x384xf32> to vector<8x128xf32>
    %132 = vector.extract_strided_slice %122 {offsets = [0, 128], sizes = [8, 128], strides = [1, 1]} : vector<8x384xf32> to vector<8x128xf32>
    %133 = arith.addf %131, %132 : vector<8x128xf32>
    %134 = arith.negf %133 : vector<8x128xf32>
    %135 = math.exp %134 : vector<8x128xf32>
    %cst_50 = arith.constant 1.000000e+00 : f32
    %136 = vector.broadcast %cst_50 : f32 to vector<8x128xf32>
    %137 = arith.addf %136, %135 : vector<8x128xf32>
    %138 = arith.divf %136, %137 : vector<8x128xf32>
    %139 = vector.extract_strided_slice %120 {offsets = [0, 256], sizes = [8, 128], strides = [1, 1]} : vector<8x384xf32> to vector<8x128xf32>
    %140 = vector.extract_strided_slice %122 {offsets = [0, 256], sizes = [8, 128], strides = [1, 1]} : vector<8x384xf32> to vector<8x128xf32>
    %141 = vector.broadcast %17 : vector<1x128xf32> to vector<8x128xf32>
    %142 = arith.addf %140, %141 : vector<8x128xf32>
    %143 = arith.mulf %130, %142 : vector<8x128xf32>
    %144 = arith.addf %139, %143 : vector<8x128xf32>
    %145 = math.tanh %144 : vector<8x128xf32>
    %146 = arith.subf %115, %145 : vector<8x128xf32>
    %147 = arith.mulf %138, %146 : vector<8x128xf32>
    %148 = arith.addf %145, %147 : vector<8x128xf32>
    %c3_51 = arith.constant 3 : index
    %c0_52 = arith.constant 0 : index
    %c0_53 = arith.constant 0 : index
    %149 = vector.load %arg14[%c3_51, %c0_52, %c0_53] : memref<8x8x128xf32, #tpu.memory_space<vmem>>, vector<1x8x128xf32>
    %150 = vector.shape_cast %149 : vector<1x8x128xf32> to vector<8x128xf32>
    %151 = vector.shape_cast %148 : vector<8x128xf32> to vector<1x8x128xf32>
    tpu.vector_store %arg14[%c3_51, %c0_52, %c0_53], %151 {strides = array<i32>} : memref<8x8x128xf32, #tpu.memory_space<vmem>>, vector<1x8x128xf32>,
    %c4 = arith.constant 4 : index
    %c0_54 = arith.constant 0 : index
    %c0_55 = arith.constant 0 : index
    %152 = vector.load %arg13[%c4, %c0_54, %c0_55] : memref<8x8x384xf32, #tpu.memory_space<vmem>>, vector<1x8x384xf32>
    %153 = vector.shape_cast %152 : vector<1x8x384xf32> to vector<8x384xf32>
    %154 = arith.truncf %148 : vector<8x128xf32> to vector<8x128xbf16>
    %cst_56 = arith.constant dense<0.000000e+00> : vector<8x384xf32>
    %155 = tpu.matmul %154, %15, %cst_56 {dimension_numbers = #tpu.dot_dimension_numbers<[1], [0], [0], [1], [0, 0, 1, 1], [], []>} : vector<8x128xbf16>, vector<128x384xbf16>, vector<8x384xf32> -> vector<8x384xf32>
    %156 = vector.extract_strided_slice %153 {offsets = [0, 0], sizes = [8, 128], strides = [1, 1]} : vector<8x384xf32> to vector<8x128xf32>
    %157 = vector.extract_strided_slice %155 {offsets = [0, 0], sizes = [8, 128], strides = [1, 1]} : vector<8x384xf32> to vector<8x128xf32>
    %158 = arith.addf %156, %157 : vector<8x128xf32>
    %159 = arith.negf %158 : vector<8x128xf32>
    %160 = math.exp %159 : vector<8x128xf32>
    %cst_57 = arith.constant 1.000000e+00 : f32
    %161 = vector.broadcast %cst_57 : f32 to vector<8x128xf32>
    %162 = arith.addf %161, %160 : vector<8x128xf32>
    %163 = arith.divf %161, %162 : vector<8x128xf32>
    %164 = vector.extract_strided_slice %153 {offsets = [0, 128], sizes = [8, 128], strides = [1, 1]} : vector<8x384xf32> to vector<8x128xf32>
    %165 = vector.extract_strided_slice %155 {offsets = [0, 128], sizes = [8, 128], strides = [1, 1]} : vector<8x384xf32> to vector<8x128xf32>
    %166 = arith.addf %164, %165 : vector<8x128xf32>
    %167 = arith.negf %166 : vector<8x128xf32>
    %168 = math.exp %167 : vector<8x128xf32>
    %cst_58 = arith.constant 1.000000e+00 : f32
    %169 = vector.broadcast %cst_58 : f32 to vector<8x128xf32>
    %170 = arith.addf %169, %168 : vector<8x128xf32>
    %171 = arith.divf %169, %170 : vector<8x128xf32>
    %172 = vector.extract_strided_slice %153 {offsets = [0, 256], sizes = [8, 128], strides = [1, 1]} : vector<8x384xf32> to vector<8x128xf32>
    %173 = vector.extract_strided_slice %155 {offsets = [0, 256], sizes = [8, 128], strides = [1, 1]} : vector<8x384xf32> to vector<8x128xf32>
    %174 = vector.broadcast %17 : vector<1x128xf32> to vector<8x128xf32>
    %175 = arith.addf %173, %174 : vector<8x128xf32>
    %176 = arith.mulf %163, %175 : vector<8x128xf32>
    %177 = arith.addf %172, %176 : vector<8x128xf32>
    %178 = math.tanh %177 : vector<8x128xf32>
    %179 = arith.subf %148, %178 : vector<8x128xf32>
    %180 = arith.mulf %171, %179 : vector<8x128xf32>
    %181 = arith.addf %178, %180 : vector<8x128xf32>
    %c4_59 = arith.constant 4 : index
    %c0_60 = arith.constant 0 : index
    %c0_61 = arith.constant 0 : index
    %182 = vector.load %arg14[%c4_59, %c0_60, %c0_61] : memref<8x8x128xf32, #tpu.memory_space<vmem>>, vector<1x8x128xf32>
    %183 = vector.shape_cast %182 : vector<1x8x128xf32> to vector<8x128xf32>
    %184 = vector.shape_cast %181 : vector<8x128xf32> to vector<1x8x128xf32>
    tpu.vector_store %arg14[%c4_59, %c0_60, %c0_61], %184 {strides = array<i32>} : memref<8x8x128xf32, #tpu.memory_space<vmem>>, vector<1x8x128xf32>,
    %c5 = arith.constant 5 : index
    %c0_62 = arith.constant 0 : index
    %c0_63 = arith.constant 0 : index
    %185 = vector.load %arg13[%c5, %c0_62, %c0_63] : memref<8x8x384xf32, #tpu.memory_space<vmem>>, vector<1x8x384xf32>
    %186 = vector.shape_cast %185 : vector<1x8x384xf32> to vector<8x384xf32>
    %187 = arith.truncf %181 : vector<8x128xf32> to vector<8x128xbf16>
    %cst_64 = arith.constant dense<0.000000e+00> : vector<8x384xf32>
    %188 = tpu.matmul %187, %15, %cst_64 {dimension_numbers = #tpu.dot_dimension_numbers<[1], [0], [0], [1], [0, 0, 1, 1], [], []>} : vector<8x128xbf16>, vector<128x384xbf16>, vector<8x384xf32> -> vector<8x384xf32>
    %189 = vector.extract_strided_slice %186 {offsets = [0, 0], sizes = [8, 128], strides = [1, 1]} : vector<8x384xf32> to vector<8x128xf32>
    %190 = vector.extract_strided_slice %188 {offsets = [0, 0], sizes = [8, 128], strides = [1, 1]} : vector<8x384xf32> to vector<8x128xf32>
    %191 = arith.addf %189, %190 : vector<8x128xf32>
    %192 = arith.negf %191 : vector<8x128xf32>
    %193 = math.exp %192 : vector<8x128xf32>
    %cst_65 = arith.constant 1.000000e+00 : f32
    %194 = vector.broadcast %cst_65 : f32 to vector<8x128xf32>
    %195 = arith.addf %194, %193 : vector<8x128xf32>
    %196 = arith.divf %194, %195 : vector<8x128xf32>
    %197 = vector.extract_strided_slice %186 {offsets = [0, 128], sizes = [8, 128], strides = [1, 1]} : vector<8x384xf32> to vector<8x128xf32>
    %198 = vector.extract_strided_slice %188 {offsets = [0, 128], sizes = [8, 128], strides = [1, 1]} : vector<8x384xf32> to vector<8x128xf32>
    %199 = arith.addf %197, %198 : vector<8x128xf32>
    %200 = arith.negf %199 : vector<8x128xf32>
    %201 = math.exp %200 : vector<8x128xf32>
    %cst_66 = arith.constant 1.000000e+00 : f32
    %202 = vector.broadcast %cst_66 : f32 to vector<8x128xf32>
    %203 = arith.addf %202, %201 : vector<8x128xf32>
    %204 = arith.divf %202, %203 : vector<8x128xf32>
    %205 = vector.extract_strided_slice %186 {offsets = [0, 256], sizes = [8, 128], strides = [1, 1]} : vector<8x384xf32> to vector<8x128xf32>
    %206 = vector.extract_strided_slice %188 {offsets = [0, 256], sizes = [8, 128], strides = [1, 1]} : vector<8x384xf32> to vector<8x128xf32>
    %207 = vector.broadcast %17 : vector<1x128xf32> to vector<8x128xf32>
    %208 = arith.addf %206, %207 : vector<8x128xf32>
    %209 = arith.mulf %196, %208 : vector<8x128xf32>
    %210 = arith.addf %205, %209 : vector<8x128xf32>
    %211 = math.tanh %210 : vector<8x128xf32>
    %212 = arith.subf %181, %211 : vector<8x128xf32>
    %213 = arith.mulf %204, %212 : vector<8x128xf32>
    %214 = arith.addf %211, %213 : vector<8x128xf32>
    %c5_67 = arith.constant 5 : index
    %c0_68 = arith.constant 0 : index
    %c0_69 = arith.constant 0 : index
    %215 = vector.load %arg14[%c5_67, %c0_68, %c0_69] : memref<8x8x128xf32, #tpu.memory_space<vmem>>, vector<1x8x128xf32>
    %216 = vector.shape_cast %215 : vector<1x8x128xf32> to vector<8x128xf32>
    %217 = vector.shape_cast %214 : vector<8x128xf32> to vector<1x8x128xf32>
    tpu.vector_store %arg14[%c5_67, %c0_68, %c0_69], %217 {strides = array<i32>} : memref<8x8x128xf32, #tpu.memory_space<vmem>>, vector<1x8x128xf32>,
    %c6 = arith.constant 6 : index
    %c0_70 = arith.constant 0 : index
    %c0_71 = arith.constant 0 : index
    %218 = vector.load %arg13[%c6, %c0_70, %c0_71] : memref<8x8x384xf32, #tpu.memory_space<vmem>>, vector<1x8x384xf32>
    %219 = vector.shape_cast %218 : vector<1x8x384xf32> to vector<8x384xf32>
    %220 = arith.truncf %214 : vector<8x128xf32> to vector<8x128xbf16>
    %cst_72 = arith.constant dense<0.000000e+00> : vector<8x384xf32>
    %221 = tpu.matmul %220, %15, %cst_72 {dimension_numbers = #tpu.dot_dimension_numbers<[1], [0], [0], [1], [0, 0, 1, 1], [], []>} : vector<8x128xbf16>, vector<128x384xbf16>, vector<8x384xf32> -> vector<8x384xf32>
    %222 = vector.extract_strided_slice %219 {offsets = [0, 0], sizes = [8, 128], strides = [1, 1]} : vector<8x384xf32> to vector<8x128xf32>
    %223 = vector.extract_strided_slice %221 {offsets = [0, 0], sizes = [8, 128], strides = [1, 1]} : vector<8x384xf32> to vector<8x128xf32>
    %224 = arith.addf %222, %223 : vector<8x128xf32>
    %225 = arith.negf %224 : vector<8x128xf32>
    %226 = math.exp %225 : vector<8x128xf32>
    %cst_73 = arith.constant 1.000000e+00 : f32
    %227 = vector.broadcast %cst_73 : f32 to vector<8x128xf32>
    %228 = arith.addf %227, %226 : vector<8x128xf32>
    %229 = arith.divf %227, %228 : vector<8x128xf32>
    %230 = vector.extract_strided_slice %219 {offsets = [0, 128], sizes = [8, 128], strides = [1, 1]} : vector<8x384xf32> to vector<8x128xf32>
    %231 = vector.extract_strided_slice %221 {offsets = [0, 128], sizes = [8, 128], strides = [1, 1]} : vector<8x384xf32> to vector<8x128xf32>
    %232 = arith.addf %230, %231 : vector<8x128xf32>
    %233 = arith.negf %232 : vector<8x128xf32>
    %234 = math.exp %233 : vector<8x128xf32>
    %cst_74 = arith.constant 1.000000e+00 : f32
    %235 = vector.broadcast %cst_74 : f32 to vector<8x128xf32>
    %236 = arith.addf %235, %234 : vector<8x128xf32>
    %237 = arith.divf %235, %236 : vector<8x128xf32>
    %238 = vector.extract_strided_slice %219 {offsets = [0, 256], sizes = [8, 128], strides = [1, 1]} : vector<8x384xf32> to vector<8x128xf32>
    %239 = vector.extract_strided_slice %221 {offsets = [0, 256], sizes = [8, 128], strides = [1, 1]} : vector<8x384xf32> to vector<8x128xf32>
    %240 = vector.broadcast %17 : vector<1x128xf32> to vector<8x128xf32>
    %241 = arith.addf %239, %240 : vector<8x128xf32>
    %242 = arith.mulf %229, %241 : vector<8x128xf32>
    %243 = arith.addf %238, %242 : vector<8x128xf32>
    %244 = math.tanh %243 : vector<8x128xf32>
    %245 = arith.subf %214, %244 : vector<8x128xf32>
    %246 = arith.mulf %237, %245 : vector<8x128xf32>
    %247 = arith.addf %244, %246 : vector<8x128xf32>
    %c6_75 = arith.constant 6 : index
    %c0_76 = arith.constant 0 : index
    %c0_77 = arith.constant 0 : index
    %248 = vector.load %arg14[%c6_75, %c0_76, %c0_77] : memref<8x8x128xf32, #tpu.memory_space<vmem>>, vector<1x8x128xf32>
    %249 = vector.shape_cast %248 : vector<1x8x128xf32> to vector<8x128xf32>
    %250 = vector.shape_cast %247 : vector<8x128xf32> to vector<1x8x128xf32>
    tpu.vector_store %arg14[%c6_75, %c0_76, %c0_77], %250 {strides = array<i32>} : memref<8x8x128xf32, #tpu.memory_space<vmem>>, vector<1x8x128xf32>,
    %c7 = arith.constant 7 : index
    %c0_78 = arith.constant 0 : index
    %c0_79 = arith.constant 0 : index
    %251 = vector.load %arg13[%c7, %c0_78, %c0_79] : memref<8x8x384xf32, #tpu.memory_space<vmem>>, vector<1x8x384xf32>
    %252 = vector.shape_cast %251 : vector<1x8x384xf32> to vector<8x384xf32>
    %253 = arith.truncf %247 : vector<8x128xf32> to vector<8x128xbf16>
    %cst_80 = arith.constant dense<0.000000e+00> : vector<8x384xf32>
    %254 = tpu.matmul %253, %15, %cst_80 {dimension_numbers = #tpu.dot_dimension_numbers<[1], [0], [0], [1], [0, 0, 1, 1], [], []>} : vector<8x128xbf16>, vector<128x384xbf16>, vector<8x384xf32> -> vector<8x384xf32>
    %255 = vector.extract_strided_slice %252 {offsets = [0, 0], sizes = [8, 128], strides = [1, 1]} : vector<8x384xf32> to vector<8x128xf32>
    %256 = vector.extract_strided_slice %254 {offsets = [0, 0], sizes = [8, 128], strides = [1, 1]} : vector<8x384xf32> to vector<8x128xf32>
    %257 = arith.addf %255, %256 : vector<8x128xf32>
    %258 = arith.negf %257 : vector<8x128xf32>
    %259 = math.exp %258 : vector<8x128xf32>
    %cst_81 = arith.constant 1.000000e+00 : f32
    %260 = vector.broadcast %cst_81 : f32 to vector<8x128xf32>
    %261 = arith.addf %260, %259 : vector<8x128xf32>
    %262 = arith.divf %260, %261 : vector<8x128xf32>
    %263 = vector.extract_strided_slice %252 {offsets = [0, 128], sizes = [8, 128], strides = [1, 1]} : vector<8x384xf32> to vector<8x128xf32>
    %264 = vector.extract_strided_slice %254 {offsets = [0, 128], sizes = [8, 128], strides = [1, 1]} : vector<8x384xf32> to vector<8x128xf32>
    %265 = arith.addf %263, %264 : vector<8x128xf32>
    %266 = arith.negf %265 : vector<8x128xf32>
    %267 = math.exp %266 : vector<8x128xf32>
    %cst_82 = arith.constant 1.000000e+00 : f32
    %268 = vector.broadcast %cst_82 : f32 to vector<8x128xf32>
    %269 = arith.addf %268, %267 : vector<8x128xf32>
    %270 = arith.divf %268, %269 : vector<8x128xf32>
    %271 = vector.extract_strided_slice %252 {offsets = [0, 256], sizes = [8, 128], strides = [1, 1]} : vector<8x384xf32> to vector<8x128xf32>
    %272 = vector.extract_strided_slice %254 {offsets = [0, 256], sizes = [8, 128], strides = [1, 1]} : vector<8x384xf32> to vector<8x128xf32>
    %273 = vector.broadcast %17 : vector<1x128xf32> to vector<8x128xf32>
    %274 = arith.addf %272, %273 : vector<8x128xf32>
    %275 = arith.mulf %262, %274 : vector<8x128xf32>
    %276 = arith.addf %271, %275 : vector<8x128xf32>
    %277 = math.tanh %276 : vector<8x128xf32>
    %278 = arith.subf %247, %277 : vector<8x128xf32>
    %279 = arith.mulf %270, %278 : vector<8x128xf32>
    %280 = arith.addf %277, %279 : vector<8x128xf32>
    %c7_83 = arith.constant 7 : index
    %c0_84 = arith.constant 0 : index
    %c0_85 = arith.constant 0 : index
    %281 = vector.load %arg14[%c7_83, %c0_84, %c0_85] : memref<8x8x128xf32, #tpu.memory_space<vmem>>, vector<1x8x128xf32>
    %282 = vector.shape_cast %281 : vector<1x8x128xf32> to vector<8x128xf32>
    %283 = vector.shape_cast %280 : vector<8x128xf32> to vector<1x8x128xf32>
    tpu.vector_store %arg14[%c7_83, %c0_84, %c0_85], %283 {strides = array<i32>} : memref<8x8x128xf32, #tpu.memory_space<vmem>>, vector<1x8x128xf32>,
    %c0_86 = arith.constant 0 : index
    %c0_87 = arith.constant 0 : index
    %c0_88 = arith.constant 0 : index
    %284 = vector.load %arg12[%c0_86, %c0_87, %c0_88] : memref<2x8x128xf32, #tpu.memory_space<vmem>>, vector<1x8x128xf32>
    %285 = vector.shape_cast %284 : vector<1x8x128xf32> to vector<8x128xf32>
    %286 = vector.shape_cast %280 : vector<8x128xf32> to vector<1x8x128xf32>
    tpu.vector_store %arg12[%c0_86, %c0_87, %c0_88], %286 {strides = array<i32>} : memref<2x8x128xf32, #tpu.memory_space<vmem>>, vector<1x8x128xf32>,
    %c1_89 = arith.constant 1 : index
    %c0_90 = arith.constant 0 : index
    %c0_91 = arith.constant 0 : index
    %287 = vector.load %arg3[%c1_89, %c0_90, %c0_91] : memref<2x128x384xbf16, #tpu.memory_space<vmem>>, vector<1x128x384xbf16>
    %288 = vector.shape_cast %287 : vector<1x128x384xbf16> to vector<128x384xbf16>
    %c0_92 = arith.constant 0 : index
    %c0_93 = arith.constant 0 : index
    %c0_94 = arith.constant 0 : index
    %289 = vector.load %arg14[%c0_92, %c0_93, %c0_94] : memref<8x8x128xf32, #tpu.memory_space<vmem>>, vector<8x8x128xf32>
    %290 = vector.shape_cast %289 : vector<8x8x128xf32> to vector<64x128xf32>
    %291 = arith.truncf %290 : vector<64x128xf32> to vector<64x128xbf16>
    %cst_95 = arith.constant dense<0.000000e+00> : vector<64x384xf32>
    %292 = tpu.matmul %291, %288, %cst_95 {dimension_numbers = #tpu.dot_dimension_numbers<[1], [0], [0], [1], [0, 0, 1, 1], [], []>} : vector<64x128xbf16>, vector<128x384xbf16>, vector<64x384xf32> -> vector<64x384xf32>
    %c1_96 = arith.constant 1 : index
    %c0_97 = arith.constant 0 : index
    %c0_98 = arith.constant 0 : index
    %293 = vector.load %arg5[%c1_96, %c0_97, %c0_98] : memref<2x1x384xf32, #tpu.memory_space<vmem>>, vector<1x1x384xf32>
    %294 = vector.shape_cast %293 : vector<1x1x384xf32> to vector<1x384xf32>
    %295 = vector.broadcast %294 : vector<1x384xf32> to vector<64x384xf32>
    %296 = arith.addf %292, %295 : vector<64x384xf32>
    %297 = vector.shape_cast %296 : vector<64x384xf32> to vector<8x8x384xf32>
    %c0_99 = arith.constant 0 : index
    %c0_100 = arith.constant 0 : index
    %c0_101 = arith.constant 0 : index
    %298 = vector.load %arg13[%c0_99, %c0_100, %c0_101] : memref<8x8x384xf32, #tpu.memory_space<vmem>>, vector<8x8x384xf32>
    tpu.vector_store %arg13[%c0_99, %c0_100, %c0_101], %297 {strides = array<i32>} : memref<8x8x384xf32, #tpu.memory_space<vmem>>, vector<8x8x384xf32>,
    %c1_102 = arith.constant 1 : index
    %c0_103 = arith.constant 0 : index
    %c0_104 = arith.constant 0 : index
    %299 = vector.load %arg4[%c1_102, %c0_103, %c0_104] : memref<2x128x384xbf16, #tpu.memory_space<vmem>>, vector<1x128x384xbf16>
    %300 = vector.shape_cast %299 : vector<1x128x384xbf16> to vector<128x384xbf16>
    %c1_105 = arith.constant 1 : index
    %c0_106 = arith.constant 0 : index
    %c0_107 = arith.constant 0 : index
    %301 = vector.load %arg6[%c1_105, %c0_106, %c0_107] : memref<2x1x128xf32, #tpu.memory_space<vmem>>, vector<1x1x128xf32>
    %302 = vector.shape_cast %301 : vector<1x1x128xf32> to vector<1x128xf32>
    %c1_108 = arith.constant 1 : index
    %c0_109 = arith.constant 0 : index
    %c0_110 = arith.constant 0 : index
    %303 = vector.load %arg12[%c1_108, %c0_109, %c0_110] : memref<2x8x128xf32, #tpu.memory_space<vmem>>, vector<1x8x128xf32>
    %304 = vector.shape_cast %303 : vector<1x8x128xf32> to vector<8x128xf32>
    %c0_111 = arith.constant 0 : index
    %c0_112 = arith.constant 0 : index
    %c0_113 = arith.constant 0 : index
    %305 = vector.load %arg13[%c0_111, %c0_112, %c0_113] : memref<8x8x384xf32, #tpu.memory_space<vmem>>, vector<1x8x384xf32>
    %306 = vector.shape_cast %305 : vector<1x8x384xf32> to vector<8x384xf32>
    %307 = arith.truncf %304 : vector<8x128xf32> to vector<8x128xbf16>
    %cst_114 = arith.constant dense<0.000000e+00> : vector<8x384xf32>
    %308 = tpu.matmul %307, %300, %cst_114 {dimension_numbers = #tpu.dot_dimension_numbers<[1], [0], [0], [1], [0, 0, 1, 1], [], []>} : vector<8x128xbf16>, vector<128x384xbf16>, vector<8x384xf32> -> vector<8x384xf32>
    %309 = vector.extract_strided_slice %306 {offsets = [0, 0], sizes = [8, 128], strides = [1, 1]} : vector<8x384xf32> to vector<8x128xf32>
    %310 = vector.extract_strided_slice %308 {offsets = [0, 0], sizes = [8, 128], strides = [1, 1]} : vector<8x384xf32> to vector<8x128xf32>
    %311 = arith.addf %309, %310 : vector<8x128xf32>
    %312 = arith.negf %311 : vector<8x128xf32>
    %313 = math.exp %312 : vector<8x128xf32>
    %cst_115 = arith.constant 1.000000e+00 : f32
    %314 = vector.broadcast %cst_115 : f32 to vector<8x128xf32>
    %315 = arith.addf %314, %313 : vector<8x128xf32>
    %316 = arith.divf %314, %315 : vector<8x128xf32>
    %317 = vector.extract_strided_slice %306 {offsets = [0, 128], sizes = [8, 128], strides = [1, 1]} : vector<8x384xf32> to vector<8x128xf32>
    %318 = vector.extract_strided_slice %308 {offsets = [0, 128], sizes = [8, 128], strides = [1, 1]} : vector<8x384xf32> to vector<8x128xf32>
    %319 = arith.addf %317, %318 : vector<8x128xf32>
    %320 = arith.negf %319 : vector<8x128xf32>
    %321 = math.exp %320 : vector<8x128xf32>
    %cst_116 = arith.constant 1.000000e+00 : f32
    %322 = vector.broadcast %cst_116 : f32 to vector<8x128xf32>
    %323 = arith.addf %322, %321 : vector<8x128xf32>
    %324 = arith.divf %322, %323 : vector<8x128xf32>
    %325 = vector.extract_strided_slice %306 {offsets = [0, 256], sizes = [8, 128], strides = [1, 1]} : vector<8x384xf32> to vector<8x128xf32>
    %326 = vector.extract_strided_slice %308 {offsets = [0, 256], sizes = [8, 128], strides = [1, 1]} : vector<8x384xf32> to vector<8x128xf32>
    %327 = vector.broadcast %302 : vector<1x128xf32> to vector<8x128xf32>
    %328 = arith.addf %326, %327 : vector<8x128xf32>
    %329 = arith.mulf %316, %328 : vector<8x128xf32>
    %330 = arith.addf %325, %329 : vector<8x128xf32>
    %331 = math.tanh %330 : vector<8x128xf32>
    %332 = arith.subf %304, %331 : vector<8x128xf32>
    %333 = arith.mulf %324, %332 : vector<8x128xf32>
    %334 = arith.addf %331, %333 : vector<8x128xf32>
    %c1_117 = arith.constant 1 : index
    %c0_118 = arith.constant 0 : index
    %c0_119 = arith.constant 0 : index
    %335 = vector.load %arg13[%c1_117, %c0_118, %c0_119] : memref<8x8x384xf32, #tpu.memory_space<vmem>>, vector<1x8x384xf32>
    %336 = vector.shape_cast %335 : vector<1x8x384xf32> to vector<8x384xf32>
    %337 = arith.truncf %334 : vector<8x128xf32> to vector<8x128xbf16>
    %cst_120 = arith.constant dense<0.000000e+00> : vector<8x384xf32>
    %338 = tpu.matmul %337, %300, %cst_120 {dimension_numbers = #tpu.dot_dimension_numbers<[1], [0], [0], [1], [0, 0, 1, 1], [], []>} : vector<8x128xbf16>, vector<128x384xbf16>, vector<8x384xf32> -> vector<8x384xf32>
    %339 = vector.extract_strided_slice %336 {offsets = [0, 0], sizes = [8, 128], strides = [1, 1]} : vector<8x384xf32> to vector<8x128xf32>
    %340 = vector.extract_strided_slice %338 {offsets = [0, 0], sizes = [8, 128], strides = [1, 1]} : vector<8x384xf32> to vector<8x128xf32>
    %341 = arith.addf %339, %340 : vector<8x128xf32>
    %342 = arith.negf %341 : vector<8x128xf32>
    %343 = math.exp %342 : vector<8x128xf32>
    %cst_121 = arith.constant 1.000000e+00 : f32
    %344 = vector.broadcast %cst_121 : f32 to vector<8x128xf32>
    %345 = arith.addf %344, %343 : vector<8x128xf32>
    %346 = arith.divf %344, %345 : vector<8x128xf32>
    %347 = vector.extract_strided_slice %336 {offsets = [0, 128], sizes = [8, 128], strides = [1, 1]} : vector<8x384xf32> to vector<8x128xf32>
    %348 = vector.extract_strided_slice %338 {offsets = [0, 128], sizes = [8, 128], strides = [1, 1]} : vector<8x384xf32> to vector<8x128xf32>
    %349 = arith.addf %347, %348 : vector<8x128xf32>
    %350 = arith.negf %349 : vector<8x128xf32>
    %351 = math.exp %350 : vector<8x128xf32>
    %cst_122 = arith.constant 1.000000e+00 : f32
    %352 = vector.broadcast %cst_122 : f32 to vector<8x128xf32>
    %353 = arith.addf %352, %351 : vector<8x128xf32>
    %354 = arith.divf %352, %353 : vector<8x128xf32>
    %355 = vector.extract_strided_slice %336 {offsets = [0, 256], sizes = [8, 128], strides = [1, 1]} : vector<8x384xf32> to vector<8x128xf32>
    %356 = vector.extract_strided_slice %338 {offsets = [0, 256], sizes = [8, 128], strides = [1, 1]} : vector<8x384xf32> to vector<8x128xf32>
    %357 = vector.broadcast %302 : vector<1x128xf32> to vector<8x128xf32>
    %358 = arith.addf %356, %357 : vector<8x128xf32>
    %359 = arith.mulf %346, %358 : vector<8x128xf32>
    %360 = arith.addf %355, %359 : vector<8x128xf32>
    %361 = math.tanh %360 : vector<8x128xf32>
    %362 = arith.subf %334, %361 : vector<8x128xf32>
    %363 = arith.mulf %354, %362 : vector<8x128xf32>
    %364 = arith.addf %361, %363 : vector<8x128xf32>
    %c2_123 = arith.constant 2 : index
    %c0_124 = arith.constant 0 : index
    %c0_125 = arith.constant 0 : index
    %365 = vector.load %arg13[%c2_123, %c0_124, %c0_125] : memref<8x8x384xf32, #tpu.memory_space<vmem>>, vector<1x8x384xf32>
    %366 = vector.shape_cast %365 : vector<1x8x384xf32> to vector<8x384xf32>
    %367 = arith.truncf %364 : vector<8x128xf32> to vector<8x128xbf16>
    %cst_126 = arith.constant dense<0.000000e+00> : vector<8x384xf32>
    %368 = tpu.matmul %367, %300, %cst_126 {dimension_numbers = #tpu.dot_dimension_numbers<[1], [0], [0], [1], [0, 0, 1, 1], [], []>} : vector<8x128xbf16>, vector<128x384xbf16>, vector<8x384xf32> -> vector<8x384xf32>
    %369 = vector.extract_strided_slice %366 {offsets = [0, 0], sizes = [8, 128], strides = [1, 1]} : vector<8x384xf32> to vector<8x128xf32>
    %370 = vector.extract_strided_slice %368 {offsets = [0, 0], sizes = [8, 128], strides = [1, 1]} : vector<8x384xf32> to vector<8x128xf32>
    %371 = arith.addf %369, %370 : vector<8x128xf32>
    %372 = arith.negf %371 : vector<8x128xf32>
    %373 = math.exp %372 : vector<8x128xf32>
    %cst_127 = arith.constant 1.000000e+00 : f32
    %374 = vector.broadcast %cst_127 : f32 to vector<8x128xf32>
    %375 = arith.addf %374, %373 : vector<8x128xf32>
    %376 = arith.divf %374, %375 : vector<8x128xf32>
    %377 = vector.extract_strided_slice %366 {offsets = [0, 128], sizes = [8, 128], strides = [1, 1]} : vector<8x384xf32> to vector<8x128xf32>
    %378 = vector.extract_strided_slice %368 {offsets = [0, 128], sizes = [8, 128], strides = [1, 1]} : vector<8x384xf32> to vector<8x128xf32>
    %379 = arith.addf %377, %378 : vector<8x128xf32>
    %380 = arith.negf %379 : vector<8x128xf32>
    %381 = math.exp %380 : vector<8x128xf32>
    %cst_128 = arith.constant 1.000000e+00 : f32
    %382 = vector.broadcast %cst_128 : f32 to vector<8x128xf32>
    %383 = arith.addf %382, %381 : vector<8x128xf32>
    %384 = arith.divf %382, %383 : vector<8x128xf32>
    %385 = vector.extract_strided_slice %366 {offsets = [0, 256], sizes = [8, 128], strides = [1, 1]} : vector<8x384xf32> to vector<8x128xf32>
    %386 = vector.extract_strided_slice %368 {offsets = [0, 256], sizes = [8, 128], strides = [1, 1]} : vector<8x384xf32> to vector<8x128xf32>
    %387 = vector.broadcast %302 : vector<1x128xf32> to vector<8x128xf32>
    %388 = arith.addf %386, %387 : vector<8x128xf32>
    %389 = arith.mulf %376, %388 : vector<8x128xf32>
    %390 = arith.addf %385, %389 : vector<8x128xf32>
    %391 = math.tanh %390 : vector<8x128xf32>
    %392 = arith.subf %364, %391 : vector<8x128xf32>
    %393 = arith.mulf %384, %392 : vector<8x128xf32>
    %394 = arith.addf %391, %393 : vector<8x128xf32>
    %c3_129 = arith.constant 3 : index
    %c0_130 = arith.constant 0 : index
    %c0_131 = arith.constant 0 : index
    %395 = vector.load %arg13[%c3_129, %c0_130, %c0_131] : memref<8x8x384xf32, #tpu.memory_space<vmem>>, vector<1x8x384xf32>
    %396 = vector.shape_cast %395 : vector<1x8x384xf32> to vector<8x384xf32>
    %397 = arith.truncf %394 : vector<8x128xf32> to vector<8x128xbf16>
    %cst_132 = arith.constant dense<0.000000e+00> : vector<8x384xf32>
    %398 = tpu.matmul %397, %300, %cst_132 {dimension_numbers = #tpu.dot_dimension_numbers<[1], [0], [0], [1], [0, 0, 1, 1], [], []>} : vector<8x128xbf16>, vector<128x384xbf16>, vector<8x384xf32> -> vector<8x384xf32>
    %399 = vector.extract_strided_slice %396 {offsets = [0, 0], sizes = [8, 128], strides = [1, 1]} : vector<8x384xf32> to vector<8x128xf32>
    %400 = vector.extract_strided_slice %398 {offsets = [0, 0], sizes = [8, 128], strides = [1, 1]} : vector<8x384xf32> to vector<8x128xf32>
    %401 = arith.addf %399, %400 : vector<8x128xf32>
    %402 = arith.negf %401 : vector<8x128xf32>
    %403 = math.exp %402 : vector<8x128xf32>
    %cst_133 = arith.constant 1.000000e+00 : f32
    %404 = vector.broadcast %cst_133 : f32 to vector<8x128xf32>
    %405 = arith.addf %404, %403 : vector<8x128xf32>
    %406 = arith.divf %404, %405 : vector<8x128xf32>
    %407 = vector.extract_strided_slice %396 {offsets = [0, 128], sizes = [8, 128], strides = [1, 1]} : vector<8x384xf32> to vector<8x128xf32>
    %408 = vector.extract_strided_slice %398 {offsets = [0, 128], sizes = [8, 128], strides = [1, 1]} : vector<8x384xf32> to vector<8x128xf32>
    %409 = arith.addf %407, %408 : vector<8x128xf32>
    %410 = arith.negf %409 : vector<8x128xf32>
    %411 = math.exp %410 : vector<8x128xf32>
    %cst_134 = arith.constant 1.000000e+00 : f32
    %412 = vector.broadcast %cst_134 : f32 to vector<8x128xf32>
    %413 = arith.addf %412, %411 : vector<8x128xf32>
    %414 = arith.divf %412, %413 : vector<8x128xf32>
    %415 = vector.extract_strided_slice %396 {offsets = [0, 256], sizes = [8, 128], strides = [1, 1]} : vector<8x384xf32> to vector<8x128xf32>
    %416 = vector.extract_strided_slice %398 {offsets = [0, 256], sizes = [8, 128], strides = [1, 1]} : vector<8x384xf32> to vector<8x128xf32>
    %417 = vector.broadcast %302 : vector<1x128xf32> to vector<8x128xf32>
    %418 = arith.addf %416, %417 : vector<8x128xf32>
    %419 = arith.mulf %406, %418 : vector<8x128xf32>
    %420 = arith.addf %415, %419 : vector<8x128xf32>
    %421 = math.tanh %420 : vector<8x128xf32>
    %422 = arith.subf %394, %421 : vector<8x128xf32>
    %423 = arith.mulf %414, %422 : vector<8x128xf32>
    %424 = arith.addf %421, %423 : vector<8x128xf32>
    %c4_135 = arith.constant 4 : index
    %c0_136 = arith.constant 0 : index
    %c0_137 = arith.constant 0 : index
    %425 = vector.load %arg13[%c4_135, %c0_136, %c0_137] : memref<8x8x384xf32, #tpu.memory_space<vmem>>, vector<1x8x384xf32>
    %426 = vector.shape_cast %425 : vector<1x8x384xf32> to vector<8x384xf32>
    %427 = arith.truncf %424 : vector<8x128xf32> to vector<8x128xbf16>
    %cst_138 = arith.constant dense<0.000000e+00> : vector<8x384xf32>
    %428 = tpu.matmul %427, %300, %cst_138 {dimension_numbers = #tpu.dot_dimension_numbers<[1], [0], [0], [1], [0, 0, 1, 1], [], []>} : vector<8x128xbf16>, vector<128x384xbf16>, vector<8x384xf32> -> vector<8x384xf32>
    %429 = vector.extract_strided_slice %426 {offsets = [0, 0], sizes = [8, 128], strides = [1, 1]} : vector<8x384xf32> to vector<8x128xf32>
    %430 = vector.extract_strided_slice %428 {offsets = [0, 0], sizes = [8, 128], strides = [1, 1]} : vector<8x384xf32> to vector<8x128xf32>
    %431 = arith.addf %429, %430 : vector<8x128xf32>
    %432 = arith.negf %431 : vector<8x128xf32>
    %433 = math.exp %432 : vector<8x128xf32>
    %cst_139 = arith.constant 1.000000e+00 : f32
    %434 = vector.broadcast %cst_139 : f32 to vector<8x128xf32>
    %435 = arith.addf %434, %433 : vector<8x128xf32>
    %436 = arith.divf %434, %435 : vector<8x128xf32>
    %437 = vector.extract_strided_slice %426 {offsets = [0, 128], sizes = [8, 128], strides = [1, 1]} : vector<8x384xf32> to vector<8x128xf32>
    %438 = vector.extract_strided_slice %428 {offsets = [0, 128], sizes = [8, 128], strides = [1, 1]} : vector<8x384xf32> to vector<8x128xf32>
    %439 = arith.addf %437, %438 : vector<8x128xf32>
    %440 = arith.negf %439 : vector<8x128xf32>
    %441 = math.exp %440 : vector<8x128xf32>
    %cst_140 = arith.constant 1.000000e+00 : f32
    %442 = vector.broadcast %cst_140 : f32 to vector<8x128xf32>
    %443 = arith.addf %442, %441 : vector<8x128xf32>
    %444 = arith.divf %442, %443 : vector<8x128xf32>
    %445 = vector.extract_strided_slice %426 {offsets = [0, 256], sizes = [8, 128], strides = [1, 1]} : vector<8x384xf32> to vector<8x128xf32>
    %446 = vector.extract_strided_slice %428 {offsets = [0, 256], sizes = [8, 128], strides = [1, 1]} : vector<8x384xf32> to vector<8x128xf32>
    %447 = vector.broadcast %302 : vector<1x128xf32> to vector<8x128xf32>
    %448 = arith.addf %446, %447 : vector<8x128xf32>
    %449 = arith.mulf %436, %448 : vector<8x128xf32>
    %450 = arith.addf %445, %449 : vector<8x128xf32>
    %451 = math.tanh %450 : vector<8x128xf32>
    %452 = arith.subf %424, %451 : vector<8x128xf32>
    %453 = arith.mulf %444, %452 : vector<8x128xf32>
    %454 = arith.addf %451, %453 : vector<8x128xf32>
    %c5_141 = arith.constant 5 : index
    %c0_142 = arith.constant 0 : index
    %c0_143 = arith.constant 0 : index
    %455 = vector.load %arg13[%c5_141, %c0_142, %c0_143] : memref<8x8x384xf32, #tpu.memory_space<vmem>>, vector<1x8x384xf32>
    %456 = vector.shape_cast %455 : vector<1x8x384xf32> to vector<8x384xf32>
    %457 = arith.truncf %454 : vector<8x128xf32> to vector<8x128xbf16>
    %cst_144 = arith.constant dense<0.000000e+00> : vector<8x384xf32>
    %458 = tpu.matmul %457, %300, %cst_144 {dimension_numbers = #tpu.dot_dimension_numbers<[1], [0], [0], [1], [0, 0, 1, 1], [], []>} : vector<8x128xbf16>, vector<128x384xbf16>, vector<8x384xf32> -> vector<8x384xf32>
    %459 = vector.extract_strided_slice %456 {offsets = [0, 0], sizes = [8, 128], strides = [1, 1]} : vector<8x384xf32> to vector<8x128xf32>
    %460 = vector.extract_strided_slice %458 {offsets = [0, 0], sizes = [8, 128], strides = [1, 1]} : vector<8x384xf32> to vector<8x128xf32>
    %461 = arith.addf %459, %460 : vector<8x128xf32>
    %462 = arith.negf %461 : vector<8x128xf32>
    %463 = math.exp %462 : vector<8x128xf32>
    %cst_145 = arith.constant 1.000000e+00 : f32
    %464 = vector.broadcast %cst_145 : f32 to vector<8x128xf32>
    %465 = arith.addf %464, %463 : vector<8x128xf32>
    %466 = arith.divf %464, %465 : vector<8x128xf32>
    %467 = vector.extract_strided_slice %456 {offsets = [0, 128], sizes = [8, 128], strides = [1, 1]} : vector<8x384xf32> to vector<8x128xf32>
    %468 = vector.extract_strided_slice %458 {offsets = [0, 128], sizes = [8, 128], strides = [1, 1]} : vector<8x384xf32> to vector<8x128xf32>
    %469 = arith.addf %467, %468 : vector<8x128xf32>
    %470 = arith.negf %469 : vector<8x128xf32>
    %471 = math.exp %470 : vector<8x128xf32>
    %cst_146 = arith.constant 1.000000e+00 : f32
    %472 = vector.broadcast %cst_146 : f32 to vector<8x128xf32>
    %473 = arith.addf %472, %471 : vector<8x128xf32>
    %474 = arith.divf %472, %473 : vector<8x128xf32>
    %475 = vector.extract_strided_slice %456 {offsets = [0, 256], sizes = [8, 128], strides = [1, 1]} : vector<8x384xf32> to vector<8x128xf32>
    %476 = vector.extract_strided_slice %458 {offsets = [0, 256], sizes = [8, 128], strides = [1, 1]} : vector<8x384xf32> to vector<8x128xf32>
    %477 = vector.broadcast %302 : vector<1x128xf32> to vector<8x128xf32>
    %478 = arith.addf %476, %477 : vector<8x128xf32>
    %479 = arith.mulf %466, %478 : vector<8x128xf32>
    %480 = arith.addf %475, %479 : vector<8x128xf32>
    %481 = math.tanh %480 : vector<8x128xf32>
    %482 = arith.subf %454, %481 : vector<8x128xf32>
    %483 = arith.mulf %474, %482 : vector<8x128xf32>
    %484 = arith.addf %481, %483 : vector<8x128xf32>
    %c6_147 = arith.constant 6 : index
    %c0_148 = arith.constant 0 : index
    %c0_149 = arith.constant 0 : index
    %485 = vector.load %arg13[%c6_147, %c0_148, %c0_149] : memref<8x8x384xf32, #tpu.memory_space<vmem>>, vector<1x8x384xf32>
    %486 = vector.shape_cast %485 : vector<1x8x384xf32> to vector<8x384xf32>
    %487 = arith.truncf %484 : vector<8x128xf32> to vector<8x128xbf16>
    %cst_150 = arith.constant dense<0.000000e+00> : vector<8x384xf32>
    %488 = tpu.matmul %487, %300, %cst_150 {dimension_numbers = #tpu.dot_dimension_numbers<[1], [0], [0], [1], [0, 0, 1, 1], [], []>} : vector<8x128xbf16>, vector<128x384xbf16>, vector<8x384xf32> -> vector<8x384xf32>
    %489 = vector.extract_strided_slice %486 {offsets = [0, 0], sizes = [8, 128], strides = [1, 1]} : vector<8x384xf32> to vector<8x128xf32>
    %490 = vector.extract_strided_slice %488 {offsets = [0, 0], sizes = [8, 128], strides = [1, 1]} : vector<8x384xf32> to vector<8x128xf32>
    %491 = arith.addf %489, %490 : vector<8x128xf32>
    %492 = arith.negf %491 : vector<8x128xf32>
    %493 = math.exp %492 : vector<8x128xf32>
    %cst_151 = arith.constant 1.000000e+00 : f32
    %494 = vector.broadcast %cst_151 : f32 to vector<8x128xf32>
    %495 = arith.addf %494, %493 : vector<8x128xf32>
    %496 = arith.divf %494, %495 : vector<8x128xf32>
    %497 = vector.extract_strided_slice %486 {offsets = [0, 128], sizes = [8, 128], strides = [1, 1]} : vector<8x384xf32> to vector<8x128xf32>
    %498 = vector.extract_strided_slice %488 {offsets = [0, 128], sizes = [8, 128], strides = [1, 1]} : vector<8x384xf32> to vector<8x128xf32>
    %499 = arith.addf %497, %498 : vector<8x128xf32>
    %500 = arith.negf %499 : vector<8x128xf32>
    %501 = math.exp %500 : vector<8x128xf32>
    %cst_152 = arith.constant 1.000000e+00 : f32
    %502 = vector.broadcast %cst_152 : f32 to vector<8x128xf32>
    %503 = arith.addf %502, %501 : vector<8x128xf32>
    %504 = arith.divf %502, %503 : vector<8x128xf32>
    %505 = vector.extract_strided_slice %486 {offsets = [0, 256], sizes = [8, 128], strides = [1, 1]} : vector<8x384xf32> to vector<8x128xf32>
    %506 = vector.extract_strided_slice %488 {offsets = [0, 256], sizes = [8, 128], strides = [1, 1]} : vector<8x384xf32> to vector<8x128xf32>
    %507 = vector.broadcast %302 : vector<1x128xf32> to vector<8x128xf32>
    %508 = arith.addf %506, %507 : vector<8x128xf32>
    %509 = arith.mulf %496, %508 : vector<8x128xf32>
    %510 = arith.addf %505, %509 : vector<8x128xf32>
    %511 = math.tanh %510 : vector<8x128xf32>
    %512 = arith.subf %484, %511 : vector<8x128xf32>
    %513 = arith.mulf %504, %512 : vector<8x128xf32>
    %514 = arith.addf %511, %513 : vector<8x128xf32>
    %c7_153 = arith.constant 7 : index
    %c0_154 = arith.constant 0 : index
    %c0_155 = arith.constant 0 : index
    %515 = vector.load %arg13[%c7_153, %c0_154, %c0_155] : memref<8x8x384xf32, #tpu.memory_space<vmem>>, vector<1x8x384xf32>
    %516 = vector.shape_cast %515 : vector<1x8x384xf32> to vector<8x384xf32>
    %517 = arith.truncf %514 : vector<8x128xf32> to vector<8x128xbf16>
    %cst_156 = arith.constant dense<0.000000e+00> : vector<8x384xf32>
    %518 = tpu.matmul %517, %300, %cst_156 {dimension_numbers = #tpu.dot_dimension_numbers<[1], [0], [0], [1], [0, 0, 1, 1], [], []>} : vector<8x128xbf16>, vector<128x384xbf16>, vector<8x384xf32> -> vector<8x384xf32>
    %519 = vector.extract_strided_slice %516 {offsets = [0, 0], sizes = [8, 128], strides = [1, 1]} : vector<8x384xf32> to vector<8x128xf32>
    %520 = vector.extract_strided_slice %518 {offsets = [0, 0], sizes = [8, 128], strides = [1, 1]} : vector<8x384xf32> to vector<8x128xf32>
    %521 = arith.addf %519, %520 : vector<8x128xf32>
    %522 = arith.negf %521 : vector<8x128xf32>
    %523 = math.exp %522 : vector<8x128xf32>
    %cst_157 = arith.constant 1.000000e+00 : f32
    %524 = vector.broadcast %cst_157 : f32 to vector<8x128xf32>
    %525 = arith.addf %524, %523 : vector<8x128xf32>
    %526 = arith.divf %524, %525 : vector<8x128xf32>
    %527 = vector.extract_strided_slice %516 {offsets = [0, 128], sizes = [8, 128], strides = [1, 1]} : vector<8x384xf32> to vector<8x128xf32>
    %528 = vector.extract_strided_slice %518 {offsets = [0, 128], sizes = [8, 128], strides = [1, 1]} : vector<8x384xf32> to vector<8x128xf32>
    %529 = arith.addf %527, %528 : vector<8x128xf32>
    %530 = arith.negf %529 : vector<8x128xf32>
    %531 = math.exp %530 : vector<8x128xf32>
    %cst_158 = arith.constant 1.000000e+00 : f32
    %532 = vector.broadcast %cst_158 : f32 to vector<8x128xf32>
    %533 = arith.addf %532, %531 : vector<8x128xf32>
    %534 = arith.divf %532, %533 : vector<8x128xf32>
    %535 = vector.extract_strided_slice %516 {offsets = [0, 256], sizes = [8, 128], strides = [1, 1]} : vector<8x384xf32> to vector<8x128xf32>
    %536 = vector.extract_strided_slice %518 {offsets = [0, 256], sizes = [8, 128], strides = [1, 1]} : vector<8x384xf32> to vector<8x128xf32>
    %537 = vector.broadcast %302 : vector<1x128xf32> to vector<8x128xf32>
    %538 = arith.addf %536, %537 : vector<8x128xf32>
    %539 = arith.mulf %526, %538 : vector<8x128xf32>
    %540 = arith.addf %535, %539 : vector<8x128xf32>
    %541 = math.tanh %540 : vector<8x128xf32>
    %542 = arith.subf %514, %541 : vector<8x128xf32>
    %543 = arith.mulf %534, %542 : vector<8x128xf32>
    %544 = arith.addf %541, %543 : vector<8x128xf32>
    %c1_159 = arith.constant 1 : index
    %c0_160 = arith.constant 0 : index
    %c0_161 = arith.constant 0 : index
    %545 = vector.load %arg12[%c1_159, %c0_160, %c0_161] : memref<2x8x128xf32, #tpu.memory_space<vmem>>, vector<1x8x128xf32>
    %546 = vector.shape_cast %545 : vector<1x8x128xf32> to vector<8x128xf32>
    %547 = vector.shape_cast %544 : vector<8x128xf32> to vector<1x8x128xf32>
    tpu.vector_store %arg12[%c1_159, %c0_160, %c0_161], %547 {strides = array<i32>} : memref<2x8x128xf32, #tpu.memory_space<vmem>>, vector<1x8x128xf32>,
    %c0_i32_162 = arith.constant 0 : i32
    %548 = arith.cmpi eq, %arg1, %c0_i32_162 : i32
    %549 = arith.extui %548 : i1 to i32
    %c0_i32_163 = arith.constant 0 : i32
    %550 = arith.cmpi ne, %549, %c0_i32_163 : i32
    scf.if %550 {
      %c0_164 = arith.constant 0 : index
      %c0_165 = arith.constant 0 : index
      %c0_166 = arith.constant 0 : index
      %551 = vector.load %arg12[%c0_164, %c0_165, %c0_166] : memref<2x8x128xf32, #tpu.memory_space<vmem>>, vector<2x8x128xf32>
      %c0_167 = arith.constant 0 : index
      %c0_168 = arith.constant 0 : index
      %c0_169 = arith.constant 0 : index
      %552 = vector.load %arg11[%c0_167, %c0_168, %c0_169] : memref<2x8x128xf32, #tpu.memory_space<vmem>>, vector<2x8x128xf32>
      tpu.vector_store %arg11[%c0_167, %c0_168, %c0_169], %551 {strides = array<i32>} : memref<2x8x128xf32, #tpu.memory_space<vmem>>, vector<2x8x128xf32>,
      %c1_170 = arith.constant 1 : index
      %c0_171 = arith.constant 0 : index
      %c0_172 = arith.constant 0 : index
      %553 = vector.load %arg12[%c1_170, %c0_171, %c0_172] : memref<2x8x128xf32, #tpu.memory_space<vmem>>, vector<1x8x128xf32>
      %554 = vector.shape_cast %553 : vector<1x8x128xf32> to vector<8x128xf32>
      %c0_173 = arith.constant 0 : index
      %c0_174 = arith.constant 0 : index
      %555 = vector.load %arg8[%c0_173, %c0_174] : memref<128x128xf32, #tpu.memory_space<vmem>>, vector<128x128xf32>
      %cst_175 = arith.constant dense<0.000000e+00> : vector<8x128xf32>
      %556 = tpu.matmul %554, %555, %cst_175 {dimension_numbers = #tpu.dot_dimension_numbers<[1], [0], [0], [1], [0, 0, 1, 1], [], []>} : vector<8x128xf32>, vector<128x128xf32>, vector<8x128xf32> -> vector<8x128xf32>
      %c0_176 = arith.constant 0 : index
      %c0_177 = arith.constant 0 : index
      %557 = vector.load %arg9[%c0_176, %c0_177] : memref<1x128xf32, #tpu.memory_space<vmem>>, vector<1x128xf32>
      %558 = vector.broadcast %557 : vector<1x128xf32> to vector<8x128xf32>
      %559 = arith.addf %556, %558 : vector<8x128xf32>
      %c0_178 = arith.constant 0 : index
      %c0_179 = arith.constant 0 : index
      %560 = vector.load %arg10[%c0_178, %c0_179] : memref<8x128xf32, #tpu.memory_space<vmem>>, vector<8x128xf32>
      tpu.vector_store %arg10[%c0_178, %c0_179], %559 {strides = array<i32>} : memref<8x128xf32, #tpu.memory_space<vmem>>, vector<8x128xf32>,
    } else {
    }
    return
  }
  func.func @transform_0(%arg0: i32, %arg1: i32) -> (i32, i32, i32) {
    %c0_i32 = arith.constant 0 : i32
    %c0_i32_0 = arith.constant 0 : i32
    return %arg1, %arg0, %c0_i32 : i32, i32, i32
  }
  func.func @transform_1(%arg0: i32, %arg1: i32) -> (i32, i32, i32) {
    %c0_i32 = arith.constant 0 : i32
    %c0_i32_0 = arith.constant 0 : i32
    %c0_i32_1 = arith.constant 0 : i32
    %c0_i32_2 = arith.constant 0 : i32
    return %c0_i32, %c0_i32_0, %c0_i32_1 : i32, i32, i32
  }
  func.func @transform_2(%arg0: i32, %arg1: i32) -> (i32, i32, i32) {
    %c0_i32 = arith.constant 0 : i32
    %c0_i32_0 = arith.constant 0 : i32
    %c0_i32_1 = arith.constant 0 : i32
    %c0_i32_2 = arith.constant 0 : i32
    return %c0_i32, %c0_i32_0, %c0_i32_1 : i32, i32, i32
  }
  func.func @transform_3(%arg0: i32, %arg1: i32) -> (i32, i32, i32) {
    %c0_i32 = arith.constant 0 : i32
    %c0_i32_0 = arith.constant 0 : i32
    %c0_i32_1 = arith.constant 0 : i32
    %c0_i32_2 = arith.constant 0 : i32
    return %c0_i32, %c0_i32_0, %c0_i32_1 : i32, i32, i32
  }
  func.func @transform_4(%arg0: i32, %arg1: i32) -> (i32, i32, i32) {
    %c0_i32 = arith.constant 0 : i32
    %c0_i32_0 = arith.constant 0 : i32
    %c0_i32_1 = arith.constant 0 : i32
    %c0_i32_2 = arith.constant 0 : i32
    return %c0_i32, %c0_i32_0, %c0_i32_1 : i32, i32, i32
  }
  func.func @transform_5(%arg0: i32, %arg1: i32) -> (i32, i32, i32) {
    %c0_i32 = arith.constant 0 : i32
    %c0_i32_0 = arith.constant 0 : i32
    %c0_i32_1 = arith.constant 0 : i32
    return %c0_i32, %arg0, %c0_i32_0 : i32, i32, i32
  }
  func.func @transform_6(%arg0: i32, %arg1: i32) -> (i32, i32) {
    %c0_i32 = arith.constant 0 : i32
    %c0_i32_0 = arith.constant 0 : i32
    %c0_i32_1 = arith.constant 0 : i32
    return %c0_i32, %c0_i32_0 : i32, i32
  }
  func.func @transform_7(%arg0: i32, %arg1: i32) -> (i32, i32) {
    %c0_i32 = arith.constant 0 : i32
    %c0_i32_0 = arith.constant 0 : i32
    %c0_i32_1 = arith.constant 0 : i32
    return %c0_i32, %c0_i32_0 : i32, i32
  }
  func.func @transform_8(%arg0: i32, %arg1: i32) -> (i32, i32) {
    %c0_i32 = arith.constant 0 : i32
    %c0_i32_0 = arith.constant 0 : i32
    return %arg0, %c0_i32 : i32, i32
  }
  func.func @transform_9(%arg0: i32, %arg1: i32) -> (i32, i32, i32) {
    %c0_i32 = arith.constant 0 : i32
    %c0_i32_0 = arith.constant 0 : i32
    %c0_i32_1 = arith.constant 0 : i32
    return %c0_i32, %arg0, %c0_i32_0 : i32, i32, i32
  }
}

</mosaic_0001>

<bundles_post_ra>
// kernel: _lambda_.1
= control target key start
LH: loop header
LB: loop body
LE: loop exit
PB: predicated region body
PF: predicated region fallthrough
CT: control target
= control target key end

     0   :  { %15 = vsyncpa [#allocation6], 0  ;;  %s5192_s0 = inlined_call_operand.vmem [shape: bf16[8,8,128], index: 0, kind: input, shape index: {}]   ;;  %s5193_s1 = inlined_call_operand.hbm [shape: bf16[2,128,384], index: 1, kind: input, shape index: {}]   ;;  %s5194_s2 = inlined_call_operand.hbm [shape: bf16[2,128,384], index: 2, kind: input, shape index: {}]   ;;  %s5195_s3 = inlined_call_operand.vmem [shape: f32[2,1,384], index: 3, kind: input, shape index: {}]   ;;  %s5196_s4 = inlined_call_operand.vmem [shape: f32[2,1,128], index: 4, kind: input, shape index: {}]   ;;  %s5197_s5 = inlined_call_operand.vmem [shape: f32[2,8,128], index: 5, kind: input, shape index: {}]   ;;  %s5198_s6 = inlined_call_operand.hbm [shape: f32[128,128], index: 6, kind: input, shape index: {}]   ;;  %s5199_s7 = inlined_call_operand.vmem [shape: f32[1,128], index: 7, kind: input, shape index: {}]   ;;  %s5200_s8 = inlined_call_operand.vmem [shape: f32[8,128], index: 8, kind: output, shape index: {0}]   ;;  %s5201_s9 = inlined_call_operand.vmem [shape: f32[2,8,128], index: 9, kind: output, shape index: {1}]  }
   0x1   :  { %16 = vsyncpa [#allocation8], 0  ;;  %s4113_s30 = smov [#allocation7]   ;;  %s4114_s11 = smov [#allocation5]  }
   0x2   :  { %s36_s10 = sshll.u32 %s4113_s30, 4  ;;  %s24_s12 = sshll.u32 %s4114_s11, 4  ;;  %s37_s10 = int_to_ptr.vmem [resolvable:$true] %s36_s10  ;;  %s25_s12 = int_to_ptr.vmem [resolvable:$true] %s24_s12 }
   0x3   :  { %s4057_s13 = scalar_lea.vmem %s37_s10, 6144  ;;  %p4062_p1 = scmp.lt.s32.totalorder %s37_s10, %s37_s10 }
   0x4   :  { %p4058_p0 = scmp.ne.s32.totalorder %s37_s10, %s4057_s13  ;;  %p4063_p2 = scmp.lt.s32.totalorder %s4057_s13, %s4057_s13 }
   0x6   :  { %p4064_p3 = por %p4063_p2, %p4062_p1 }
   0x8   :  { %p4065_p4 = pnand %p4064_p3, %p4058_p0 }
   0xa   :  { %4068 = shalt.err (!%p4065_p4)
}
   0xb   :  { %s4115_s14 = smov 192   ;;  %s4116_s15 = smov 12  }
   0xc   :  { %42 = dma.hbm_to_vmem [thread:$0]  %s5194_s2, 6144, %s37_s10, [#allocation8], %s4115_s14, %s4115_s14, %s4116_s15  }
   0xd   :  { %s4077_s18 = scalar_lea.vmem %s25_s12, 6144  ;;  %p4082_p6 = scmp.lt.s32.totalorder %s25_s12, %s25_s12 }
   0xe   :  { %p4078_p5 = scmp.ne.s32.totalorder %s25_s12, %s4077_s18  ;;  %p4083_p7 = scmp.lt.s32.totalorder %s4077_s18, %s4077_s18 }
  0x10   :  { %p4084_p8 = por %p4083_p7, %p4082_p6 }
  0x12   :  { %p4085_p9 = pnand %p4084_p8, %p4078_p5 }
  0x14   :  { %4088 = shalt.err (!%p4085_p9)
}
  0x15   :  { %30 = dma.hbm_to_vmem [thread:$0]  %s5193_s1, 6144, %s25_s12, [#allocation6], %s4115_s14, %s4115_s14, %s4116_s15  }
  0x16   :  { %s4117_s21 = smov [#allocation9]  }
  0x17   :  { %s54_s22 = sshll.u32 %s4117_s21, 4  ;;  %s55_s22 = int_to_ptr.vmem [resolvable:$true] %s54_s22 }
  0x18   :  { %s4097_s23 = scalar_lea.vmem %s55_s22, 2048  ;;  %p4102_p11 = scmp.lt.s32.totalorder %s55_s22, %s55_s22 }
  0x19   :  { %p4098_p10 = scmp.ne.s32.totalorder %s55_s22, %s4097_s23  ;;  %p4103_p12 = scmp.lt.s32.totalorder %s4097_s23, %s4097_s23 }
  0x1b   :  { %p4104_p13 = por %p4103_p12, %p4102_p11 }
  0x1d   :  { %p4105_p0 = pnand %p4104_p13, %p4098_p10 }
  0x1f   :  { %4108 = shalt.err (!%p4105_p0)
}
  0x20   :  { %s4118_s2 = smov 128   ;;  %s4119_s24 = smov 8  }
  0x21   :  { %60 = dma.hbm_to_vmem [thread:$0]  %s5198_s6, 2048, %s55_s22, [#allocation8], %s4118_s2, %s4118_s2, %s4119_s24  }
  0x22   :  { %4109 = dma.done.wait [#allocation6], 6144  }
  0x23   :  { %4110 = vsyncadd [#allocation6], 4294961152 }
  0x24   :  { %4111 = dma.done.wait [#allocation8], 8192  }
  0x25   :  { %4112 = vsyncadd [#allocation8], 4294959104  ;;  %v5205_v0 = vmov 0   ;;  %v3711_v1 = vld [vmem:[#allocation5 + $0xac] ss:$12 sps:$4 sm:$0xff]   ;;  %v3737_v12 = vld [vmem:[%s5192_s0] sm:$0xff]   ;;  %v123_v56 = vlaneseq }
  0x26   :  { %322 = vmatprep.mubr.bf16.mxu0 %v5205_v0  ;;  %v3713_v2 = vld [vmem:[#allocation5 + $0xa8] ss:$12 sps:$4 sm:$0xff]   ;;  %290 = vmatprep.subr.bf16.mxu0 %v3711_v1  ;;  %v3716_v4 = vld [vmem:[#allocation5 + $0x90] ss:$12 sps:$4 sm:$0xff]   ;;  %v3719_v6 = vld [vmem:[#allocation5 + $0x78] ss:$12 sps:$4 sm:$0xff]  }
  0x27   :  { %v3714_v3 = vld [vmem:[#allocation5 + $0x94] ss:$12 sps:$4 sm:$0xff]   ;;  %291 = vmatpush1.bf16.msra.mxu0 %v3713_v2  ;;  %v3717_v5 = vld [vmem:[#allocation5 + $0x7c] ss:$12 sps:$4 sm:$0xff]   ;;  %v3720_v7 = vld [vmem:[#allocation5 + $0x64] ss:$12 sps:$4 sm:$0xff]   ;;  %3314 = vmatprep.mubr.bf16.mxu1 %v3737_v12 }
  0x28   :  { %292 = vmatprep.subr.bf16.mxu0 %v3714_v3  ;;  %v3732_v8 = vld [vmem:[#allocation5 + $0xb0] ss:$12 sps:$4 sm:$0xff]   ;;  %v3722_v9 = vld [vmem:[#allocation5 + $0x60] ss:$12 sps:$4 sm:$0xff]   ;;  %v3736_v11 = vld [vmem:[#allocation5 + $0x98] ss:$12 sps:$4 sm:$0xff]  }
  0x29   :  { %v3723_v10 = vld [vmem:[#allocation5 + $0x4c] ss:$12 sps:$4 sm:$0xff]   ;;  %3298 = vmatprep.subr.bf16.mxu1 %v3732_v8  ;;  %v3725_v13 = vld [vmem:[#allocation5 + $0x48] ss:$12 sps:$4 sm:$0xff]   ;;  %v3728_v17 = vld [vmem:[#allocation5 + $0x30] ss:$12 sps:$4 sm:$0xff]  }
  0x2a   :  { %3299 = vmatpush3.bf16.msra.mxu1 %v3732_v8  ;;  %v3741_v14 = vld [vmem:[#allocation5 + $0x80] ss:$12 sps:$4 sm:$0xff]   ;;  %v3745_v16 = vld [vmem:[#allocation5 + $0x68] ss:$12 sps:$4 sm:$0xff]   ;;  %v3750_v19 = vld [vmem:[#allocation5 + $0x50] ss:$12 sps:$4 sm:$0xff]  }
  0x2b   :  { %293 = vmatpush1.bf16.msra.mxu0 %v3716_v4  ;;  %3300 = vmatprep.subr.bf16.mxu1 %v3736_v11  ;;  %v3726_v15 = vld [vmem:[#allocation5 + $0x34] ss:$12 sps:$4 sm:$0xff]   ;;  %v3729_v18 = vld [vmem:[#allocation5 + $0x1c] ss:$12 sps:$4 sm:$0xff]   ;;  %v3731_v20 = vld [vmem:[#allocation5 + $0x18] ss:$12 sps:$4 sm:$0xff]  }
  0x2c   :  { %294 = vmatprep.subr.bf16.mxu0 %v3717_v5  ;;  %v3733_v21 = vld [vmem:[#allocation5 + $0x4] ss:$12 sps:$4 sm:$0xff]   ;;  %v3735_v23 = vld [vmem:[#allocation5] ss:$12 sps:$4 sm:$0xff]   ;;  %v4188_v26 = vld [vmem:[#allocation7 + $0xa8] ss:$12 sps:$4 sm:$0xff]  }
  0x2d   :  { %v3754_v22 = vld [vmem:[#allocation5 + $0x38] ss:$12 sps:$4 sm:$0xff]   ;;  %v3759_v25 = vld [vmem:[#allocation5 + $0x20] ss:$12 sps:$4 sm:$0xff]   ;;  %v3763_v28 = vld [vmem:[#allocation5 + $0x8] ss:$12 sps:$4 sm:$0xff]  }
  0x2e   :  { %3301 = vmatpush3.bf16.msra.mxu1 %v3736_v11  ;;  %v4186_v24 = vld [vmem:[#allocation7 + $0xac] ss:$12 sps:$4 sm:$0xff]   ;;  %v4191_v27 = vld [vmem:[#allocation7 + $0x94] ss:$12 sps:$4 sm:$0xff]   ;;  %v4194_v29 = vld [vmem:[#allocation7 + $0x90] ss:$12 sps:$4 sm:$0xff]  }
  0x2f   :  { %295 = vmatpush1.bf16.msra.mxu0 %v3719_v6  ;;  %3302 = vmatprep.subr.bf16.mxu1 %v3741_v14  ;;  %v4198_v30 = vld [vmem:[#allocation7 + $0x7c] ss:$12 sps:$4 sm:$0xff]   ;;  %v4204_v32 = vld [vmem:[#allocation7 + $0x78] ss:$12 sps:$4 sm:$0xff]   ;;  %v4209_v34 = vld [vmem:[#allocation7 + $0x60] ss:$12 sps:$4 sm:$0xff]  }
  0x30   :  { %296 = vmatprep.subr.bf16.mxu0 %v3720_v7  ;;  %v3746_v31 = vld [vmem:[%s5192_s0 + $0x8] sm:$0xff]   ;;  %v4207_v33 = vld [vmem:[#allocation7 + $0x64] ss:$12 sps:$4 sm:$0xff]   ;;  %v5207_v38 = vmov 0.0   ;;  %v4227_v41 = vld [vmem:[#allocation7 + $0x34] ss:$12 sps:$4 sm:$0xff]  }
  0x31   :  { %v3755_v35 = vld [vmem:[%s5192_s0 + $0x10] sm:$0xff]   ;;  %v4216_v37 = vld [vmem:[#allocation7 + $0x4c] ss:$12 sps:$4 sm:$0xff]   ;;  %v4240_v45 = vld [vmem:[#allocation7 + $0x1c] ss:$12 sps:$4 sm:$0xff]   ;;  %vm4122_vm0 = vmmov 0  }
  0x32   :  { %3303 = vmatpush3.bf16.msra.mxu1 %v3741_v14  ;;  %v4214_v36 = vld [vmem:[#allocation7 + $0xb0] ss:$12 sps:$4 sm:$0xff]   ;;  %v4221_v39 = vld [vmem:[#allocation7 + $0x98] ss:$12 sps:$4 sm:$0xff]   ;;  %v4224_v40 = vld [vmem:[#allocation7 + $0x48] ss:$12 sps:$4 sm:$0xff]  }
  0x33   :  { %297 = vmatpush1.bf16.msra.mxu0 %v3722_v9  ;;  %3304 = vmatprep.subr.bf16.mxu1 %v3745_v16  ;;  %v4231_v42 = vld [vmem:[#allocation7 + $0x80] ss:$12 sps:$4 sm:$0xff]   ;;  %v3764_v43 = vld [vmem:[%s5192_s0 + $0x18] sm:$0xff]   ;;  %v4245_v46 = vld [vmem:[#allocation7 + $0x68] ss:$12 sps:$4 sm:$0xff]   ;;  %v4325_v57 = vshrl.u32 %v123_v56, 7 }
  0x34   :  { %298 = vmatprep.subr.bf16.mxu0 %v3723_v10  ;;  %v4237_v44 = vld [vmem:[#allocation7 + $0x30] ss:$12 sps:$4 sm:$0xff]   ;;  %v4248_v47 = vld [vmem:[#allocation7 + $0x18] ss:$12 sps:$4 sm:$0xff]   ;;  %v4260_v50 = vld [vmem:[#allocation7] ss:$12 sps:$4 sm:$0xff]  }
  0x35   :  { %v4253_v48 = vld [vmem:[#allocation7 + $0x4] ss:$12 sps:$4 sm:$0xff]   ;;  %v4281_v54 = vld [vmem:[#allocation7 + $0x20] ss:$12 sps:$4 sm:$0xff]   ;;  %v4288_v55 = vld [vmem:[#allocation7 + $0x8] ss:$12 sps:$4 sm:$0xff]  }
  0x36   :  { %3305 = vmatpush3.bf16.msra.mxu1 %v3745_v16  ;;  %v4257_v49 = vld [vmem:[#allocation7 + $0x50] ss:$12 sps:$4 sm:$0xff]   ;;  %v4265_v51 = vld [vmem:[%s5197_s5] sm:$0xff]  ;;  %5211 = vst [vmem:[#allocation12_spill] sm:$0xff] %v4325_v57  ;;  %v5204_v58 = vsub.s32 0, %v4325_v57  ;;  %v5203_v61 = vsub.s32 1, %v4325_v57 }
  0x37   :  { %299 = vmatpush1.bf16.msra.mxu0 %v3725_v13  ;;  %3306 = vmatprep.subr.bf16.mxu1 %v3750_v19  ;;  %v4271_v52 = vld [vmem:[#allocation7 + $0x38] ss:$12 sps:$4 sm:$0xff]   ;;  %v489_v53 = vpack.c.bf16 %v4265_v51, %v4265_v51  ;;  %v121_v59 = vld [vmem:[%s5195_s3] sm:$0x7]  ;;  %v5202_v1 = vsub.s32 2, %v4325_v57 }
  0x38   :  { %300 = vmatprep.subr.bf16.mxu0 %v3726_v15  ;;  %v126_v63 = vrot.slane %v121_v59, %v5204_v58  ;;  %v130_v3 = vrot.slane %v121_v59, %v5203_v61 }
  0x39   :  { %v4343_v7 = vrot.slane %v121_v59, %v5202_v1 }
  0x3a   :  { %3307 = vmatpush3.bf16.msra.mxu1 %v3750_v19 }
  0x3b   :  { %301 = vmatpush1.bf16.msra.mxu0 %v3728_v17  ;;  %3308 = vmatprep.subr.bf16.mxu1 %v3754_v22 }
  0x3c   :  { %302 = vmatprep.subr.bf16.mxu0 %v3729_v18 }
  0x3e   :  { %3309 = vmatpush3.bf16.msra.mxu1 %v3754_v22 }
  0x3f   :  { %303 = vmatpush1.bf16.msra.mxu0 %v3731_v20  ;;  %3310 = vmatprep.subr.bf16.mxu1 %v3759_v25 }
  0x40   :  { %304 = vmatprep.subr.bf16.mxu0 %v3733_v21 }
  0x42   :  { %3311 = vmatpush3.bf16.msra.mxu1 %v3759_v25 }
  0x43   :  { %305 = vmatpush1.bf16.msra.mxu0 %v3735_v23  ;;  %3312 = vmatprep.subr.bf16.mxu1 %v3763_v28 }
  0x44   :  { %618 = vmatprep.subr.bf16.mxu0 %v4186_v24 }
  0x46   :  { %323 = vmatmul.mubr.bf16.vlgmr.msra.gmra.mxu0 %v3737_v12  ;;  %3313 = vmatpush3.bf16.msra.mxu1 %v3763_v28 }
  0x47   :  { %619 = vmatpush1.bf16.msra.mxu0 %v4188_v26  ;;  %332 = vmatprep.mubr.bf16.mxu0 %v5205_v0 }
  0x48   :  { %620 = vmatprep.subr.bf16.mxu0 %v4191_v27  ;;  %3322 = vmatprep.subr.bf16.mxu1 %v5207_v38 }
  0x49   :  { %3315 = vmatmul.mubr.bf16.vlgmr.msra.gmra.mxu1 %v3746_v31 }
  0x4a   :  { %3323 = vmatpush3.bf16.msra.mxu1 %v4214_v36  ;;  %3318 = vmatprep.mubr.bf16.mxu1 %v3755_v35 }
  0x4b   :  { %621 = vmatpush1.bf16.msra.mxu0 %v4194_v29  ;;  %3324 = vmatprep.subr.bf16.mxu1 %v5207_v38 }
  0x4c   :  { %622 = vmatprep.subr.bf16.mxu0 %v4198_v30 }
  0x4e   :  { %333 = vmatmul.mubr.bf16.gmra.mxu0 %v3746_v31  ;;  %3325 = vmatpush3.bf16.msra.mxu1 %v4221_v39 }
  0x4f   :  { %623 = vmatpush1.bf16.msra.mxu0 %v4204_v32  ;;  %342 = vmatprep.mubr.bf16.mxu0 %v5205_v0 }
  0x50   :  { %624 = vmatprep.subr.bf16.mxu0 %v4207_v33  ;;  %3326 = vmatprep.subr.bf16.mxu1 %v5207_v38 }
  0x51   :  { %3319 = vmatmul.mubr.bf16.gmra.mxu1 %v3764_v43 }
  0x52   :  { %3327 = vmatpush3.bf16.msra.mxu1 %v4231_v42  ;;  %3338 = vmatprep.mubr.msk.bf16.mxu1 %vm4122_vm0, %v5207_v38 }
  0x53   :  { %625 = vmatpush1.bf16.msra.mxu0 %v4209_v34  ;;  %3328 = vmatprep.subr.bf16.mxu1 %v5207_v38 }
  0x54   :  { %626 = vmatprep.subr.bf16.mxu0 %v4216_v37 }
  0x56   :  { %343 = vmatmul.mubr.bf16.gmra.mxu0 %v3755_v35  ;;  %3329 = vmatpush3.bf16.msra.mxu1 %v4245_v46 }
  0x57   :  { %627 = vmatpush1.bf16.msra.mxu0 %v4224_v40  ;;  %352 = vmatprep.mubr.bf16.mxu0 %v5205_v0 }
  0x58   :  { %628 = vmatprep.subr.bf16.mxu0 %v4227_v41  ;;  %3330 = vmatprep.subr.bf16.mxu1 %v5207_v38 }
  0x5a   :  { %3331 = vmatpush3.bf16.msra.mxu1 %v4257_v49 }
  0x5b   :  { %629 = vmatpush1.bf16.msra.mxu0 %v4237_v44  ;;  %3332 = vmatprep.subr.bf16.mxu1 %v5207_v38 }
  0x5c   :  { %630 = vmatprep.subr.bf16.mxu0 %v4240_v45 }
  0x5e   :  { %353 = vmatmul.mubr.bf16.gmra.mxu0 %v3764_v43  ;;  %3333 = vmatpush3.bf16.msra.mxu1 %v4271_v52 }
  0x5f   :  { %631 = vmatpush1.bf16.msra.mxu0 %v4248_v47  ;;  %650 = vmatprep.mubr.bf16.mxu0 %v5205_v0 }
  0x60   :  { %632 = vmatprep.subr.bf16.mxu0 %v4253_v48  ;;  %3334 = vmatprep.subr.bf16.mxu1 %v5207_v38 }
  0x62   :  { %3335 = vmatpush3.bf16.msra.mxu1 %v4281_v54 }
  0x63   :  { %633 = vmatpush1.bf16.msra.mxu0 %v4260_v50  ;;  %3336 = vmatprep.subr.bf16.mxu1 %v5207_v38 }
  0x64   :  { %732 = vmatprep.subr.bf16.mxu0 %v4186_v24 }
  0x66   :  { %651 = vmatmul.mubr.bf16.vlgmr.msra.gmra.mxu0 %v489_v53  ;;  %3337 = vmatpush3.bf16.msra.mxu1 %v4288_v55 }
  0x67   :  { %733 = vmatpush1.bf16.msra.mxu0 %v4188_v26  ;;  %764 = vmatprep.mubr.bf16.mxu0 %v5205_v0 }
  0x68   :  { %734 = vmatprep.subr.bf16.mxu0 %v4191_v27  ;;  %3342 = vmatprep.subr.bf16.mxu1 %v5207_v38 }
  0x69   :  { %3339 = vmatmul.mubr.bf16.vlgmr.msra.gmra.mxu1 %v489_v53 }
  0x6a   :  { %3343 = vmatpush3.bf16.msra.mxu1 %v4214_v36  ;;  %3358 = vmatprep.mubr.msk.bf16.mxu1 %vm4122_vm0, %v5207_v38 }
  0x6b   :  { %735 = vmatpush1.bf16.msra.mxu0 %v4194_v29  ;;  %3344 = vmatprep.subr.bf16.mxu1 %v5207_v38 }
  0x6c   :  { %736 = vmatprep.subr.bf16.mxu0 %v4198_v30 }
  0x6e   :  { %3345 = vmatpush3.bf16.msra.mxu1 %v4221_v39 }
  0x6f   :  { %737 = vmatpush1.bf16.msra.mxu0 %v4204_v32  ;;  %3346 = vmatprep.subr.bf16.mxu1 %v5207_v38 }
  0x70   :  { %738 = vmatprep.subr.bf16.mxu0 %v4207_v33 }
  0x72   :  { %3347 = vmatpush3.bf16.msra.mxu1 %v4231_v42 }
  0x73   :  { %739 = vmatpush1.bf16.msra.mxu0 %v4209_v34  ;;  %3348 = vmatprep.subr.bf16.mxu1 %v5207_v38 }
  0x74   :  { %740 = vmatprep.subr.bf16.mxu0 %v4216_v37 }
  0x76   :  { %3349 = vmatpush3.bf16.msra.mxu1 %v4245_v46 }
  0x77   :  { %741 = vmatpush1.bf16.msra.mxu0 %v4224_v40  ;;  %3350 = vmatprep.subr.bf16.mxu1 %v5207_v38 }
  0x78   :  { %742 = vmatprep.subr.bf16.mxu0 %v4227_v41 }
  0x7a   :  { %3351 = vmatpush3.bf16.msra.mxu1 %v4257_v49 }
  0x7b   :  { %743 = vmatpush1.bf16.msra.mxu0 %v4237_v44  ;;  %3352 = vmatprep.subr.bf16.mxu1 %v5207_v38 }
  0x7c   :  { %744 = vmatprep.subr.bf16.mxu0 %v4240_v45 }
  0x7e   :  { %3353 = vmatpush3.bf16.msra.mxu1 %v4271_v52 }
  0x7f   :  { %745 = vmatpush1.bf16.msra.mxu0 %v4248_v47  ;;  %3354 = vmatprep.subr.bf16.mxu1 %v5207_v38 }
  0x80   :  { %746 = vmatprep.subr.bf16.mxu0 %v4253_v48 }
  0x82   :  { %3355 = vmatpush3.bf16.msra.mxu1 %v4281_v54 }
  0x83   :  { %747 = vmatpush1.bf16.msra.mxu0 %v4260_v50  ;;  %3356 = vmatprep.subr.bf16.mxu1 %v5207_v38 }
  0x84   :  { %841 = vmatprep.subr.bf16.mxu0 %v4186_v24 }
  0x86   :  { %3357 = vmatpush3.bf16.msra.mxu1 %v4288_v55 }
  0x87   :  { %3362 = vmatprep.subr.bf16.mxu1 %v5207_v38 }
 0x106   :  { %v324_v60 = vpop.f32.mrf.mxu0 }
 0x107   :  { %v325_v1 = vadd.f32 %v324_v60, %v126_v63  ;;  %v4393_v60 = vld [vmem:[%s5196_s4] ss:$0 sm:$0xff] }
 0x108   :  { %v326_v62 = vpop.f32.mrf.mxu0 }
 0x109   :  { %v3316_v11 = vpop.f32.mrf.mxu1  ;;  %v327_v57 = vadd.f32 %v326_v62, %v130_v3 }
 0x10a   :  { %v328_v2 = vpop.f32.mrf.mxu0  ;;  %v4350_v13 = vadd.f32 %v3316_v11, %v4343_v7 }
 0x10b   :  { %v4337_v4 = vadd.f32 %v328_v2, %v126_v63  ;;  %v397_v15 = vpop.f32.mrf.mxu1 }
 0x10c   :  { %v330_v5 = vpop.f32.mrf.mxu0  ;;  %v398_v62 = vadd.f32 %v397_v15, %v4343_v7  ;;  %v5218_v15 = vmov 0  }
 0x10d   :  { %v4339_v6 = vadd.f32 %v330_v5, %v130_v3  ;;  %v3317_v18 = vpop.f32.mrf.mxu1 }
 0x10e   :  { %v334_v8 = vpop.f32.mrf.mxu0  ;;  %v4357_v20 = vadd.f32 %v3317_v18, %v4343_v7 }
 0x10f   :  { %v4345_v9 = vadd.f32 %v334_v8, %v126_v63  ;;  %v400_v22 = vpop.f32.mrf.mxu1 }
 0x110   :  { %v336_v10 = vpop.f32.mrf.mxu0  ;;  %v4362_v25 = vadd.f32 %v400_v22, %v4343_v7 }
 0x111   :  { %v4347_v12 = vadd.f32 %v336_v10, %v130_v3  ;;  %v3320_v31 = vpop.f32.mrf.mxu1 }
 0x112   :  { %v338_v14 = vpop.f32.mrf.mxu0  ;;  %v4367_v43 = vadd.f32 %v3320_v31, %v4343_v7 }
 0x113   :  { %v4352_v16 = vadd.f32 %v338_v14, %v126_v63  ;;  %v413_v56 = vpop.f32.mrf.mxu1 }
 0x114   :  { %v340_v17 = vpop.f32.mrf.mxu0  ;;  %5212 = vst [vmem:[#allocation13_spill] sm:$0xff] %v4367_v43  ;;  %v4372_v2 = vadd.f32 %v413_v56, %v4343_v7 }
 0x115   :  { %v4354_v19 = vadd.f32 %v340_v17, %v130_v3  ;;  %v3321_v8 = vpop.f32.mrf.mxu1 }
 0x116   :  { %v344_v21 = vpop.f32.mrf.mxu0  ;;  %v4377_v11 = vadd.f32 %v3321_v8, %v4343_v7 }
 0x117   :  { %v4359_v23 = vadd.f32 %v344_v21, %v126_v63  ;;  %v416_v17 = vpop.f32.mrf.mxu1 }
 0x118   :  { %v346_v28 = vpop.f32.mrf.mxu0  ;;  %5213 = vst [vmem:[#allocation14_spill] sm:$0xff] %v4377_v11  ;;  %v4382_v21 = vadd.f32 %v416_v17, %v4343_v7  ;;  %v5217_v7 = vmov 0.0  }
 0x119   :  { %v4364_v35 = vadd.f32 %v346_v28, %v130_v3 }
 0x11a   :  { %v348_v53 = vpop.f32.mrf.mxu0 }
 0x11b   :  { %v4369_v59 = vadd.f32 %v348_v53, %v126_v63 }
 0x11c   :  { %v350_v5 = vpop.f32.mrf.mxu0 }
 0x11d   :  { %v4374_v10 = vadd.f32 %v350_v5, %v130_v3 }
 0x11e   :  { %v354_v14 = vpop.f32.mrf.mxu0 }
 0x11f   :  { %v4379_v18 = vadd.f32 %v354_v14, %v126_v63 }
 0x120   :  { %v356_v22 = vpop.f32.mrf.mxu0 }
 0x121   :  { %5214 = vst [vmem:[#allocation15_spill] sm:$0xff] %v4379_v18  ;;  %v4384_v28 = vadd.f32 %v356_v22, %v130_v3 }
 0x122   :  { %v358_v31 = vpop.f32.mrf.mxu0 }
 0x123   :  { %5215 = vst [vmem:[#allocation16_spill] sm:$0xff] %v4384_v28  ;;  %v4386_v53 = vadd.f32 %v358_v31, %v126_v63 }
 0x124   :  { %v360_v56 = vpop.f32.mrf.mxu0 }
 0x125   :  { %5216 = vst [vmem:[#allocation17_spill] sm:$0xff] %v4386_v53  ;;  %v4388_v5 = vadd.f32 %v360_v56, %v130_v3 }
 0x126   :  { %v652_v61 = vpop.f32.mrf.mxu0 }
 0x127   :  { %v699_v8 = vadd.f32 %v652_v61, %v325_v1 }
 0x128   :  { %v654_v58 = vpop.f32.mrf.mxu0 }
 0x129   :  { %v3028_v0 = vmul.f32 -1.442695, %v699_v8  ;;  %v693_v17 = vpop.f32.mrf.mxu1  ;;  %v706_v11 = vadd.f32 %v654_v58, %v327_v57 }
 0x12a   :  { %v656_v38 = vpop.f32.mrf.mxu0 }
 0x12b   :  { %3843 = vpow2.f32 %v3028_v0  ;;  %v3340_v43 = vpop.f32.mrf.mxu1  ;;  %v3029_v28 = vmul.f32 -1.442695, %v706_v11  ;;  %v719_v38 = vadd.f32 %v4393_v60, %v693_v17 }
 0x12c   :  { %v657_v14 = vpop.f32.mrf.mxu0 }
 0x12d   :  { %v696_v22 = vpop.f32.mrf.mxu1  ;;  %3845 = vpow2.f32 %v3029_v28 }
 0x12f   :  { %v3341_v18 = vpop.f32.mrf.mxu1 }
 0x138   :  { %v3844_v31 = vpop.eup %3843 }
 0x139   :  { %v703_v53 = vadd.f32 1.0, %v3844_v31 }
 0x13a   :  { %v3846_v0 = vpop.eup %3845 }
 0x13b   :  { %3847 = vrcp.f32 %v703_v53  ;;  %v710_v58 = vadd.f32 1.0, %v3846_v0 }
 0x148   :  { %v3848_v61 = vpop.eup %3847 }
 0x149   :  { %v720_v57 = vmul.f32 %v3848_v61, %v719_v38 }
 0x14b   :  { %v721_v63 = vadd.f32 %v720_v57, %v398_v62 }
 0x14d   :  { %3849 = vtanh.f32 %v721_v63 }
 0x14e   :  { %3851 = vrcp.f32 %v710_v58 }
 0x15a   :  { %v3850_v1 = vpop.eup %3849 }
 0x15b   :  { %v723_v3 = vsub.f32 %v4265_v51, %v3850_v1  ;;  %v3852_v43 = vpop.eup %3851 }
 0x15d   :  { %v724_v11 = vmul.f32 %v3852_v43, %v723_v3 }
 0x15f   :  { %v4398_v18 = vadd.f32 %v3850_v1, %v724_v11 }
 0x161   :  { %v731_v28 = vpack.c.bf16 %v4398_v18, %v4398_v18 }
 0x163   :  { %765 = vmatmul.mubr.bf16.vlgmr.msra.gmra.mxu0 %v731_v28  ;;  %3359 = vmatmul.mubr.bf16.vlgmr.msra.gmra.mxu1 %v731_v28 }
 0x164   :  { %842 = vmatpush1.bf16.msra.mxu0 %v4188_v26  ;;  %3363 = vmatpush3.bf16.msra.mxu1 %v4214_v36 }
 0x165   :  { %843 = vmatprep.subr.bf16.mxu0 %v4191_v27  ;;  %3364 = vmatprep.subr.bf16.mxu1 %v5217_v7 }
 0x166   :  { %873 = vmatprep.mubr.bf16.mxu0 %v5218_v15  ;;  %3378 = vmatprep.mubr.msk.bf16.mxu1 %vm4122_vm0, %v5217_v7 }
 0x168   :  { %844 = vmatpush1.bf16.msra.mxu0 %v4194_v29  ;;  %3365 = vmatpush3.bf16.msra.mxu1 %v4221_v39 }
 0x169   :  { %845 = vmatprep.subr.bf16.mxu0 %v4198_v30  ;;  %3366 = vmatprep.subr.bf16.mxu1 %v5217_v7 }
 0x16c   :  { %846 = vmatpush1.bf16.msra.mxu0 %v4204_v32  ;;  %3367 = vmatpush3.bf16.msra.mxu1 %v4231_v42 }
 0x16d   :  { %847 = vmatprep.subr.bf16.mxu0 %v4207_v33  ;;  %3368 = vmatprep.subr.bf16.mxu1 %v5217_v7 }
 0x170   :  { %848 = vmatpush1.bf16.msra.mxu0 %v4209_v34  ;;  %3369 = vmatpush3.bf16.msra.mxu1 %v4245_v46 }
 0x171   :  { %849 = vmatprep.subr.bf16.mxu0 %v4216_v37  ;;  %3370 = vmatprep.subr.bf16.mxu1 %v5217_v7 }
 0x174   :  { %850 = vmatpush1.bf16.msra.mxu0 %v4224_v40  ;;  %3371 = vmatpush3.bf16.msra.mxu1 %v4257_v49 }
 0x175   :  { %851 = vmatprep.subr.bf16.mxu0 %v4227_v41  ;;  %3372 = vmatprep.subr.bf16.mxu1 %v5217_v7 }
 0x178   :  { %852 = vmatpush1.bf16.msra.mxu0 %v4237_v44  ;;  %3373 = vmatpush3.bf16.msra.mxu1 %v4271_v52 }
 0x179   :  { %853 = vmatprep.subr.bf16.mxu0 %v4240_v45  ;;  %3374 = vmatprep.subr.bf16.mxu1 %v5217_v7 }
 0x17c   :  { %854 = vmatpush1.bf16.msra.mxu0 %v4248_v47  ;;  %3375 = vmatpush3.bf16.msra.mxu1 %v4281_v54 }
 0x17d   :  { %855 = vmatprep.subr.bf16.mxu0 %v4253_v48  ;;  %3376 = vmatprep.subr.bf16.mxu1 %v5217_v7 }
 0x180   :  { %856 = vmatpush1.bf16.msra.mxu0 %v4260_v50  ;;  %3377 = vmatpush3.bf16.msra.mxu1 %v4288_v55 }
 0x181   :  { %950 = vmatprep.subr.bf16.mxu0 %v4186_v24  ;;  %3382 = vmatprep.subr.bf16.mxu1 %v5217_v7 }
 0x223   :  { %v766_v51 = vpop.f32.mrf.mxu0  ;;  %v807_v53 = vpop.f32.mrf.mxu1 }
 0x224   :  { %v813_v56 = vadd.f32 %v766_v51, %v4337_v4  ;;  %v827_v1 = vadd.f32 %v4393_v60, %v807_v53 }
 0x225   :  { %v768_v8 = vpop.f32.mrf.mxu0  ;;  %v3360_v14 = vpop.f32.mrf.mxu1 }
 0x226   :  { %v3031_v17 = vmul.f32 -1.442695, %v813_v56  ;;  %v820_v61 = vadd.f32 %v768_v8, %v4339_v6 }
 0x227   :  { %v770_v22 = vpop.f32.mrf.mxu0  ;;  %v810_v31 = vpop.f32.mrf.mxu1 }
 0x228   :  { %3853 = vpow2.f32 %v3031_v17  ;;  %v3032_v62 = vmul.f32 -1.442695, %v820_v61 }
 0x229   :  { %v771_v38 = vpop.f32.mrf.mxu0  ;;  %v3361_v0 = vpop.f32.mrf.mxu1 }
 0x22a   :  { %3855 = vpow2.f32 %v3032_v62 }
 0x235   :  { %v3854_v57 = vpop.eup %3853 }
 0x236   :  { %v817_v58 = vadd.f32 1.0, %v3854_v57 }
 0x237   :  { %v3856_v63 = vpop.eup %3855 }
 0x238   :  { %3857 = vrcp.f32 %v817_v58  ;;  %v824_v11 = vadd.f32 1.0, %v3856_v63 }
 0x245   :  { %v3858_v3 = vpop.eup %3857 }
 0x246   :  { %v828_v4 = vmul.f32 %v3858_v3, %v827_v1 }
 0x248   :  { %v829_v43 = vadd.f32 %v828_v4, %v4362_v25 }
 0x24a   :  { %3859 = vtanh.f32 %v829_v43 }
 0x24b   :  { %3861 = vrcp.f32 %v824_v11 }
 0x257   :  { %v3860_v28 = vpop.eup %3859 }
 0x258   :  { %v831_v51 = vsub.f32 %v4398_v18, %v3860_v28  ;;  %v3862_v56 = vpop.eup %3861 }
 0x25a   :  { %v832_v6 = vmul.f32 %v3862_v56, %v831_v51 }
 0x25c   :  { %v4442_v8 = vadd.f32 %v3860_v28, %v832_v6 }
 0x25e   :  { %v840_v14 = vpack.c.bf16 %v4442_v8, %v4442_v8 }
 0x260   :  { %874 = vmatmul.mubr.bf16.vlgmr.msra.gmra.mxu0 %v840_v14  ;;  %3379 = vmatmul.mubr.bf16.vlgmr.msra.gmra.mxu1 %v840_v14 }
 0x261   :  { %951 = vmatpush1.bf16.msra.mxu0 %v4188_v26  ;;  %3383 = vmatpush3.bf16.msra.mxu1 %v4214_v36 }
 0x262   :  { %952 = vmatprep.subr.bf16.mxu0 %v4191_v27  ;;  %3384 = vmatprep.subr.bf16.mxu1 %v5217_v7 }
 0x263   :  { %982 = vmatprep.mubr.bf16.mxu0 %v5218_v15  ;;  %3398 = vmatprep.mubr.msk.bf16.mxu1 %vm4122_vm0, %v5217_v7 }
 0x265   :  { %953 = vmatpush1.bf16.msra.mxu0 %v4194_v29  ;;  %3385 = vmatpush3.bf16.msra.mxu1 %v4221_v39 }
 0x266   :  { %954 = vmatprep.subr.bf16.mxu0 %v4198_v30  ;;  %3386 = vmatprep.subr.bf16.mxu1 %v5217_v7 }
 0x269   :  { %955 = vmatpush1.bf16.msra.mxu0 %v4204_v32  ;;  %3387 = vmatpush3.bf16.msra.mxu1 %v4231_v42 }
 0x26a   :  { %956 = vmatprep.subr.bf16.mxu0 %v4207_v33  ;;  %3388 = vmatprep.subr.bf16.mxu1 %v5217_v7 }
 0x26d   :  { %957 = vmatpush1.bf16.msra.mxu0 %v4209_v34  ;;  %3389 = vmatpush3.bf16.msra.mxu1 %v4245_v46 }
 0x26e   :  { %958 = vmatprep.subr.bf16.mxu0 %v4216_v37  ;;  %3390 = vmatprep.subr.bf16.mxu1 %v5217_v7 }
 0x271   :  { %959 = vmatpush1.bf16.msra.mxu0 %v4224_v40  ;;  %3391 = vmatpush3.bf16.msra.mxu1 %v4257_v49 }
 0x272   :  { %960 = vmatprep.subr.bf16.mxu0 %v4227_v41  ;;  %3392 = vmatprep.subr.bf16.mxu1 %v5217_v7 }
 0x275   :  { %961 = vmatpush1.bf16.msra.mxu0 %v4237_v44  ;;  %3393 = vmatpush3.bf16.msra.mxu1 %v4271_v52 }
 0x276   :  { %962 = vmatprep.subr.bf16.mxu0 %v4240_v45  ;;  %3394 = vmatprep.subr.bf16.mxu1 %v5217_v7 }
 0x279   :  { %963 = vmatpush1.bf16.msra.mxu0 %v4248_v47  ;;  %3395 = vmatpush3.bf16.msra.mxu1 %v4281_v54 }
 0x27a   :  { %964 = vmatprep.subr.bf16.mxu0 %v4253_v48  ;;  %3396 = vmatprep.subr.bf16.mxu1 %v5217_v7 }
 0x27d   :  { %965 = vmatpush1.bf16.msra.mxu0 %v4260_v50  ;;  %3397 = vmatpush3.bf16.msra.mxu1 %v4288_v55 }
 0x27e   :  { %1059 = vmatprep.subr.bf16.mxu0 %v4186_v24  ;;  %3402 = vmatprep.subr.bf16.mxu1 %v5217_v7 }
 0x320   :  { %v875_v25 = vpop.f32.mrf.mxu0  ;;  %v916_v53 = vpop.f32.mrf.mxu1 }
 0x321   :  { %v922_v17 = vadd.f32 %v875_v25, %v4345_v9  ;;  %v936_v43 = vadd.f32 %v4393_v60, %v916_v53 }
 0x322   :  { %v877_v22 = vpop.f32.mrf.mxu0  ;;  %v3380_v31 = vpop.f32.mrf.mxu1 }
 0x323   :  { %v3033_v38 = vmul.f32 -1.442695, %v922_v17  ;;  %v929_v58 = vadd.f32 %v877_v22, %v4347_v12 }
 0x324   :  { %v879_v0 = vpop.f32.mrf.mxu0  ;;  %v919_v61 = vpop.f32.mrf.mxu1 }
 0x325   :  { %3863 = vpow2.f32 %v3033_v38  ;;  %v3034_v63 = vmul.f32 -1.442695, %v929_v58 }
 0x326   :  { %v880_v62 = vpop.f32.mrf.mxu0  ;;  %v3381_v57 = vpop.f32.mrf.mxu1 }
 0x327   :  { %3865 = vpow2.f32 %v3034_v63 }
 0x332   :  { %v3864_v1 = vpop.eup %3863 }
 0x333   :  { %v926_v3 = vadd.f32 1.0, %v3864_v1 }
 0x334   :  { %v3866_v4 = vpop.eup %3865 }
 0x335   :  { %3867 = vrcp.f32 %v926_v3  ;;  %v933_v51 = vadd.f32 1.0, %v3866_v4 }
 0x342   :  { %v3868_v11 = vpop.eup %3867 }
 0x343   :  { %v937_v9 = vmul.f32 %v3868_v11, %v936_v43 }
 0x345   :  { %v938_v28 = vadd.f32 %v937_v9, %v4350_v13 }
 0x347   :  { %3869 = vtanh.f32 %v938_v28 }
 0x348   :  { %3871 = vrcp.f32 %v933_v51 }
 0x354   :  { %v3870_v56 = vpop.eup %3869 }
 0x355   :  { %v940_v6 = vsub.f32 %v4442_v8, %v3870_v56  ;;  %v3872_v14 = vpop.eup %3871 }
 0x357   :  { %v941_v12 = vmul.f32 %v3872_v14, %v940_v6 }
 0x359   :  { %v4486_v25 = vadd.f32 %v3870_v56, %v941_v12 }
 0x35b   :  { %v949_v17 = vpack.c.bf16 %v4486_v25, %v4486_v25 }
 0x35d   :  { %983 = vmatmul.mubr.bf16.vlgmr.msra.gmra.mxu0 %v949_v17  ;;  %3399 = vmatmul.mubr.bf16.vlgmr.msra.gmra.mxu1 %v949_v17 }
 0x35e   :  { %1060 = vmatpush1.bf16.msra.mxu0 %v4188_v26  ;;  %3403 = vmatpush3.bf16.msra.mxu1 %v4214_v36 }
 0x35f   :  { %1061 = vmatprep.subr.bf16.mxu0 %v4191_v27  ;;  %3404 = vmatprep.subr.bf16.mxu1 %v5217_v7 }
 0x360   :  { %1091 = vmatprep.mubr.bf16.mxu0 %v5218_v15  ;;  %3418 = vmatprep.mubr.msk.bf16.mxu1 %vm4122_vm0, %v5217_v7 }
 0x362   :  { %1062 = vmatpush1.bf16.msra.mxu0 %v4194_v29  ;;  %3405 = vmatpush3.bf16.msra.mxu1 %v4221_v39 }
 0x363   :  { %1063 = vmatprep.subr.bf16.mxu0 %v4198_v30  ;;  %3406 = vmatprep.subr.bf16.mxu1 %v5217_v7 }
 0x366   :  { %1064 = vmatpush1.bf16.msra.mxu0 %v4204_v32  ;;  %3407 = vmatpush3.bf16.msra.mxu1 %v4231_v42 }
 0x367   :  { %1065 = vmatprep.subr.bf16.mxu0 %v4207_v33  ;;  %3408 = vmatprep.subr.bf16.mxu1 %v5217_v7 }
 0x36a   :  { %1066 = vmatpush1.bf16.msra.mxu0 %v4209_v34  ;;  %3409 = vmatpush3.bf16.msra.mxu1 %v4245_v46 }
 0x36b   :  { %1067 = vmatprep.subr.bf16.mxu0 %v4216_v37  ;;  %3410 = vmatprep.subr.bf16.mxu1 %v5217_v7 }
 0x36e   :  { %1068 = vmatpush1.bf16.msra.mxu0 %v4224_v40  ;;  %3411 = vmatpush3.bf16.msra.mxu1 %v4257_v49 }
 0x36f   :  { %1069 = vmatprep.subr.bf16.mxu0 %v4227_v41  ;;  %3412 = vmatprep.subr.bf16.mxu1 %v5217_v7 }
 0x372   :  { %1070 = vmatpush1.bf16.msra.mxu0 %v4237_v44  ;;  %3413 = vmatpush3.bf16.msra.mxu1 %v4271_v52 }
 0x373   :  { %1071 = vmatprep.subr.bf16.mxu0 %v4240_v45  ;;  %3414 = vmatprep.subr.bf16.mxu1 %v5217_v7 }
 0x376   :  { %1072 = vmatpush1.bf16.msra.mxu0 %v4248_v47  ;;  %3415 = vmatpush3.bf16.msra.mxu1 %v4281_v54 }
 0x377   :  { %1073 = vmatprep.subr.bf16.mxu0 %v4253_v48  ;;  %3416 = vmatprep.subr.bf16.mxu1 %v5217_v7 }
 0x37a   :  { %1074 = vmatpush1.bf16.msra.mxu0 %v4260_v50  ;;  %3417 = vmatpush3.bf16.msra.mxu1 %v4288_v55 }
 0x37b   :  { %1168 = vmatprep.subr.bf16.mxu0 %v4186_v24  ;;  %3422 = vmatprep.subr.bf16.mxu1 %v5217_v7 }
 0x41d   :  { %v984_v13 = vpop.f32.mrf.mxu0  ;;  %v1025_v53 = vpop.f32.mrf.mxu1 }
 0x41e   :  { %v1031_v22 = vadd.f32 %v984_v13, %v4352_v16  ;;  %v1045_v43 = vadd.f32 %v4393_v60, %v1025_v53 }
 0x41f   :  { %v986_v31 = vpop.f32.mrf.mxu0  ;;  %v3400_v38 = vpop.f32.mrf.mxu1 }
 0x420   :  { %v3035_v0 = vmul.f32 -1.442695, %v1031_v22  ;;  %v1038_v63 = vadd.f32 %v986_v31, %v4354_v19 }
 0x421   :  { %v988_v61 = vpop.f32.mrf.mxu0  ;;  %v1028_v62 = vpop.f32.mrf.mxu1 }
 0x422   :  { %3873 = vpow2.f32 %v3035_v0  ;;  %v3036_v1 = vmul.f32 -1.442695, %v1038_v63 }
 0x423   :  { %v989_v57 = vpop.f32.mrf.mxu0  ;;  %v3401_v58 = vpop.f32.mrf.mxu1 }
 0x424   :  { %3875 = vpow2.f32 %v3036_v1  ;;  %v4580_v1 = vld [vmem:[#allocation7 + $0xa8] ss:$12 sps:$4 sm:$0xff]  }
 0x42f   :  { %v3874_v3 = vpop.eup %3873 }
 0x430   :  { %v1035_v4 = vadd.f32 1.0, %v3874_v3  ;;  %v4586_v3 = vld [vmem:[#allocation7 + $0x94] ss:$12 sps:$4 sm:$0xff]  }
 0x431   :  { %v3876_v24 = vpop.eup %3875 }
 0x432   :  { %3877 = vrcp.f32 %v1035_v4  ;;  %v1042_v28 = vadd.f32 1.0, %v3876_v24  ;;  %v4593_v4 = vld [vmem:[#allocation7 + $0x90] ss:$12 sps:$4 sm:$0xff]   ;;  %v4596_v24 = vld [vmem:[#allocation7 + $0x98] ss:$12 sps:$4 sm:$0xff]  }
 0x43f   :  { %v3878_v11 = vpop.eup %3877 }
 0x440   :  { %v1046_v16 = vmul.f32 %v3878_v11, %v1045_v43  ;;  %v4599_v43 = vld [vmem:[#allocation7 + $0x7c] ss:$12 sps:$4 sm:$0xff]   ;;  %v4603_v11 = vld [vmem:[#allocation7 + $0x78] ss:$12 sps:$4 sm:$0xff]  }
 0x442   :  { %v1047_v9 = vadd.f32 %v1046_v16, %v4357_v20  ;;  %v4607_v16 = vld [vmem:[#allocation7 + $0x64] ss:$12 sps:$4 sm:$0xff]  }
 0x444   :  { %3879 = vtanh.f32 %v1047_v9  ;;  %v4611_v9 = vld [vmem:[#allocation7 + $0x60] ss:$12 sps:$4 sm:$0xff]  }
 0x445   :  { %3881 = vrcp.f32 %v1042_v28  ;;  %v4615_v28 = vld [vmem:[#allocation7 + $0x4c] ss:$12 sps:$4 sm:$0xff]  }
 0x451   :  { %v3880_v51 = vpop.eup %3879 }
 0x452   :  { %v1049_v56 = vsub.f32 %v4486_v25, %v3880_v51  ;;  %v3882_v6 = vpop.eup %3881 }
 0x454   :  { %v1050_v19 = vmul.f32 %v3882_v6, %v1049_v56 }
 0x456   :  { %v4530_v14 = vadd.f32 %v3880_v51, %v1050_v19  ;;  %v4619_v51 = vld [vmem:[#allocation7 + $0x48] ss:$12 sps:$4 sm:$0xff]  }
 0x458   :  { %v1058_v12 = vpack.c.bf16 %v4530_v14, %v4530_v14 }
 0x45a   :  { %1092 = vmatmul.mubr.bf16.vlgmr.msra.gmra.mxu0 %v1058_v12  ;;  %3419 = vmatmul.mubr.bf16.vlgmr.msra.gmra.mxu1 %v1058_v12 }
 0x45b   :  { %1169 = vmatpush1.bf16.msra.mxu0 %v4188_v26  ;;  %3423 = vmatpush3.bf16.msra.mxu1 %v4214_v36  ;;  %v4567_v26 = vld [vmem:[#allocation7 + $0xac] ss:$12 sps:$4 sm:$0xff]  }
 0x45c   :  { %1170 = vmatprep.subr.bf16.mxu0 %v4191_v27  ;;  %3424 = vmatprep.subr.bf16.mxu1 %v5217_v7 }
 0x45d   :  { %1200 = vmatprep.mubr.bf16.mxu0 %v5218_v15  ;;  %3438 = vmatprep.mubr.msk.bf16.mxu1 %vm4122_vm0, %v5217_v7 }
 0x45f   :  { %1171 = vmatpush1.bf16.msra.mxu0 %v4194_v29  ;;  %3425 = vmatpush3.bf16.msra.mxu1 %v4221_v39 }
 0x460   :  { %1172 = vmatprep.subr.bf16.mxu0 %v4198_v30  ;;  %3426 = vmatprep.subr.bf16.mxu1 %v5217_v7 }
 0x463   :  { %1173 = vmatpush1.bf16.msra.mxu0 %v4204_v32  ;;  %3427 = vmatpush3.bf16.msra.mxu1 %v4231_v42 }
 0x464   :  { %1174 = vmatprep.subr.bf16.mxu0 %v4207_v33  ;;  %3428 = vmatprep.subr.bf16.mxu1 %v5217_v7 }
 0x467   :  { %1175 = vmatpush1.bf16.msra.mxu0 %v4209_v34  ;;  %3429 = vmatpush3.bf16.msra.mxu1 %v4245_v46 }
 0x468   :  { %1176 = vmatprep.subr.bf16.mxu0 %v4216_v37  ;;  %3430 = vmatprep.subr.bf16.mxu1 %v5217_v7 }
 0x46b   :  { %1177 = vmatpush1.bf16.msra.mxu0 %v4224_v40  ;;  %3431 = vmatpush3.bf16.msra.mxu1 %v4257_v49 }
 0x46c   :  { %1178 = vmatprep.subr.bf16.mxu0 %v4227_v41  ;;  %3432 = vmatprep.subr.bf16.mxu1 %v5217_v7 }
 0x46f   :  { %1179 = vmatpush1.bf16.msra.mxu0 %v4237_v44  ;;  %3433 = vmatpush3.bf16.msra.mxu1 %v4271_v52 }
 0x470   :  { %1180 = vmatprep.subr.bf16.mxu0 %v4240_v45  ;;  %3434 = vmatprep.subr.bf16.mxu1 %v5217_v7 }
 0x473   :  { %1181 = vmatpush1.bf16.msra.mxu0 %v4248_v47  ;;  %3435 = vmatpush3.bf16.msra.mxu1 %v4281_v54 }
 0x474   :  { %1182 = vmatprep.subr.bf16.mxu0 %v4253_v48  ;;  %3436 = vmatprep.subr.bf16.mxu1 %v5217_v7 }
 0x477   :  { %1183 = vmatpush1.bf16.msra.mxu0 %v4260_v50  ;;  %3437 = vmatpush3.bf16.msra.mxu1 %v4288_v55 }
 0x478   :  { %1277 = vmatprep.subr.bf16.mxu0 %v4567_v26  ;;  %3442 = vmatprep.subr.bf16.mxu1 %v5217_v7 }
 0x51a   :  { %v1093_v27 = vpop.f32.mrf.mxu0  ;;  %v1134_v29 = vpop.f32.mrf.mxu1 }
 0x51b   :  { %v1140_v30 = vadd.f32 %v1093_v27, %v4359_v23  ;;  %v1154_v22 = vadd.f32 %v4393_v60, %v1134_v29 }
 0x51c   :  { %v1095_v32 = vpop.f32.mrf.mxu0  ;;  %v3420_v33 = vpop.f32.mrf.mxu1 }
 0x51d   :  { %v3037_v34 = vmul.f32 -1.442695, %v1140_v30  ;;  %v1147_v41 = vadd.f32 %v1095_v32, %v4364_v35 }
 0x51e   :  { %v1097_v36 = vpop.f32.mrf.mxu0  ;;  %v1137_v37 = vpop.f32.mrf.mxu1 }
 0x51f   :  { %3883 = vpow2.f32 %v3037_v34  ;;  %v3038_v20 = vmul.f32 -1.442695, %v1147_v41 }
 0x520   :  { %v1098_v39 = vpop.f32.mrf.mxu0  ;;  %v3421_v40 = vpop.f32.mrf.mxu1 }
 0x521   :  { %3885 = vpow2.f32 %v3038_v20  ;;  %v4017_v20 = vld [vmem:[#allocation7 + $0x68] ss:$12 sps:$4 sm:$0xff]  }
 0x52c   :  { %v3884_v17 = vpop.eup %3883 }
 0x52d   :  { %v1144_v13 = vadd.f32 1.0, %v3884_v17  ;;  %v4018_v17 = vld [vmem:[#allocation7 + $0x50] ss:$12 sps:$4 sm:$0xff]  }
 0x52e   :  { %v3886_v53 = vpop.eup %3885 }
 0x52f   :  { %3887 = vrcp.f32 %v1144_v13  ;;  %v1151_v0 = vadd.f32 1.0, %v3886_v53  ;;  %v4019_v13 = vld [vmem:[#allocation7 + $0x30] ss:$12 sps:$4 sm:$0xff]   ;;  %v4020_v53 = vld [vmem:[#allocation7 + $0x38] ss:$12 sps:$4 sm:$0xff]  }
 0x53c   :  { %v3888_v31 = vpop.eup %3887 }
 0x53d   :  { %v1155_v23 = vmul.f32 %v3888_v31, %v1154_v22  ;;  %v4021_v22 = vld [vmem:[#allocation7 + $0x1c] ss:$12 sps:$4 sm:$0xff]   ;;  %v4022_v31 = vld [vmem:[#allocation7 + $0x18] ss:$12 sps:$4 sm:$0xff]  }
 0x53f   :  { %v1156_v38 = vadd.f32 %v1155_v23, %v4372_v2  ;;  %v4583_v2 = vld [vmem:[#allocation7 + $0xb0] ss:$12 sps:$4 sm:$0xff]  }
 0x540   :  { %v4023_v23 = vld [vmem:[#allocation7 + $0x4] ss:$12 sps:$4 sm:$0xff]  }
 0x541   :  { %3889 = vtanh.f32 %v1156_v38  ;;  %v4024_v38 = vld [vmem:[#allocation7] ss:$12 sps:$4 sm:$0xff]  }
 0x542   :  { %3891 = vrcp.f32 %v1151_v0  ;;  %v3781_v0 = vld [vmem:[#allocation5 + $0x16c] ss:$12 sps:$4 sm:$0xff]  }
 0x54e   :  { %v3890_v61 = vpop.eup %3889 }
 0x54f   :  { %v1158_v62 = vsub.f32 %v4530_v14, %v3890_v61  ;;  %v3892_v57 = vpop.eup %3891 }
 0x551   :  { %v1159_v35 = vmul.f32 %v3892_v57, %v1158_v62 }
 0x553   :  { %v4576_v58 = vadd.f32 %v3890_v61, %v1159_v35  ;;  %v3782_v61 = vld [vmem:[#allocation5 + $0x170] ss:$12 sps:$4 sm:$0xff]  }
 0x554   :  { %v5219_v35 = vld [vmem:[#allocation15_spill] sm:$0xff] }
 0x555   :  { %v1167_v63 = vpack.c.bf16 %v4576_v58, %v4576_v58 }
 0x557   :  { %1201 = vmatmul.mubr.bf16.vlgmr.msra.gmra.mxu0 %v1167_v63  ;;  %3439 = vmatmul.mubr.bf16.vlgmr.msra.gmra.mxu1 %v1167_v63 }
 0x558   :  { %1278 = vmatpush1.bf16.msra.mxu0 %v4580_v1  ;;  %3443 = vmatpush3.bf16.msra.mxu1 %v4583_v2 }
 0x559   :  { %1279 = vmatprep.subr.bf16.mxu0 %v4586_v3  ;;  %3444 = vmatprep.subr.bf16.mxu1 %v5217_v7 }
 0x55a   :  { %1309 = vmatprep.mubr.bf16.mxu0 %v5218_v15  ;;  %3458 = vmatprep.mubr.msk.bf16.mxu1 %vm4122_vm0, %v5217_v7 }
 0x55c   :  { %1280 = vmatpush1.bf16.msra.mxu0 %v4593_v4  ;;  %3445 = vmatpush3.bf16.msra.mxu1 %v4596_v24 }
 0x55d   :  { %1281 = vmatprep.subr.bf16.mxu0 %v4599_v43  ;;  %3446 = vmatprep.subr.bf16.mxu1 %v5217_v7 }
 0x560   :  { %1282 = vmatpush1.bf16.msra.mxu0 %v4603_v11  ;;  %3447 = vmatpush3.bf16.msra.mxu1 %v4231_v42  ;;  %v4623_v42 = vld [vmem:[#allocation7 + $0x34] ss:$12 sps:$4 sm:$0xff]  }
 0x561   :  { %1283 = vmatprep.subr.bf16.mxu0 %v4607_v16  ;;  %3448 = vmatprep.subr.bf16.mxu1 %v5217_v7 }
 0x564   :  { %1284 = vmatpush1.bf16.msra.mxu0 %v4611_v9  ;;  %3449 = vmatpush3.bf16.msra.mxu1 %v4245_v46 }
 0x565   :  { %1285 = vmatprep.subr.bf16.mxu0 %v4615_v28  ;;  %3450 = vmatprep.subr.bf16.mxu1 %v5217_v7 }
 0x568   :  { %1286 = vmatpush1.bf16.msra.mxu0 %v4619_v51  ;;  %3451 = vmatpush3.bf16.msra.mxu1 %v4257_v49 }
 0x569   :  { %1287 = vmatprep.subr.bf16.mxu0 %v4623_v42  ;;  %3452 = vmatprep.subr.bf16.mxu1 %v5217_v7 }
 0x56c   :  { %1288 = vmatpush1.bf16.msra.mxu0 %v4237_v44  ;;  %3453 = vmatpush3.bf16.msra.mxu1 %v4271_v52 }
 0x56d   :  { %1289 = vmatprep.subr.bf16.mxu0 %v4240_v45  ;;  %3454 = vmatprep.subr.bf16.mxu1 %v5217_v7 }
 0x570   :  { %1290 = vmatpush1.bf16.msra.mxu0 %v4248_v47  ;;  %3455 = vmatpush3.bf16.msra.mxu1 %v4281_v54 }
 0x571   :  { %1291 = vmatprep.subr.bf16.mxu0 %v4253_v48  ;;  %3456 = vmatprep.subr.bf16.mxu1 %v5217_v7 }
 0x574   :  { %1292 = vmatpush1.bf16.msra.mxu0 %v4260_v50  ;;  %3457 = vmatpush3.bf16.msra.mxu1 %v4288_v55 }
 0x575   :  { %1386 = vmatprep.subr.bf16.mxu0 %v4567_v26  ;;  %3462 = vmatprep.subr.bf16.mxu1 %v5217_v7 }
 0x617   :  { %v1202_v44 = vpop.f32.mrf.mxu0  ;;  %v1243_v45 = vpop.f32.mrf.mxu1 }
 0x618   :  { %v1249_v46 = vadd.f32 %v1202_v44, %v4369_v59  ;;  %v1263_v30 = vadd.f32 %v4393_v60, %v1243_v45 }
 0x619   :  { %v1204_v49 = vpop.f32.mrf.mxu0  ;;  %v3440_v47 = vpop.f32.mrf.mxu1 }
 0x61a   :  { %v3039_v52 = vmul.f32 -1.442695, %v1249_v46  ;;  %v1256_v50 = vadd.f32 %v1204_v49, %v4374_v10  ;;  %v5221_v46 = vld [vmem:[#allocation13_spill] sm:$0xff] }
 0x61b   :  { %v1206_v56 = vpop.f32.mrf.mxu0  ;;  %v1246_v6 = vpop.f32.mrf.mxu1 }
 0x61c   :  { %3893 = vpow2.f32 %v3039_v52  ;;  %v3040_v12 = vmul.f32 -1.442695, %v1256_v50  ;;  %v3779_v50 = vld [vmem:[#allocation5 + $0x168] ss:$12 sps:$4 sm:$0xff]  }
 0x61d   :  { %v1207_v48 = vpop.f32.mrf.mxu0  ;;  %v3441_v19 = vpop.f32.mrf.mxu1 }
 0x61e   :  { %3895 = vpow2.f32 %v3040_v12 }
 0x629   :  { %v3894_v27 = vpop.eup %3893 }
 0x62a   :  { %v1253_v29 = vadd.f32 1.0, %v3894_v27  ;;  %v3785_v27 = vld [vmem:[#allocation5 + $0x154] ss:$12 sps:$4 sm:$0xff]  }
 0x62b   :  { %v3896_v26 = vpop.eup %3895 }
 0x62c   :  { %3897 = vrcp.f32 %v1253_v29  ;;  %v1260_v34 = vadd.f32 1.0, %v3896_v26  ;;  %v1532_v29 = vpack.c.bf16 %v4442_v8, %v4398_v18  ;;  %v3783_v26 = vld [vmem:[#allocation5 + $0x150] ss:$12 sps:$4 sm:$0xff]   ;;  %v3791_v18 = vld [vmem:[#allocation5 + $0x120] ss:$12 sps:$4 sm:$0xff]  }
 0x62d   :  { %v3797_v8 = vld [vmem:[#allocation5 + $0x10c] ss:$12 sps:$4 sm:$0xff]  }
 0x639   :  { %v3898_v32 = vpop.eup %3897 }
 0x63a   :  { %v1264_v59 = vmul.f32 %v3898_v32, %v1263_v30  ;;  %v3789_v30 = vld [vmem:[#allocation5 + $0x13c] ss:$12 sps:$4 sm:$0xff]   ;;  %v3790_v32 = vld [vmem:[#allocation5 + $0x140] ss:$12 sps:$4 sm:$0xff]  }
 0x63c   :  { %v1265_v33 = vadd.f32 %v1264_v59, %v4382_v21  ;;  %v4016_v21 = vld [vmem:[#allocation7 + $0x80] ss:$12 sps:$4 sm:$0xff]   ;;  %v3787_v59 = vld [vmem:[#allocation5 + $0x138] ss:$12 sps:$4 sm:$0xff]  }
 0x63e   :  { %3899 = vtanh.f32 %v1265_v33  ;;  %v3793_v33 = vld [vmem:[#allocation5 + $0x124] ss:$12 sps:$4 sm:$0xff]  }
 0x63f   :  { %3901 = vrcp.f32 %v1260_v34  ;;  %v3794_v34 = vld [vmem:[#allocation5 + $0x128] ss:$12 sps:$4 sm:$0xff]  }
 0x64b   :  { %v3900_v36 = vpop.eup %3899 }
 0x64c   :  { %v1267_v37 = vsub.f32 %v4576_v58, %v3900_v36  ;;  %v3902_v39 = vpop.eup %3901 }
 0x64e   :  { %v1268_v10 = vmul.f32 %v3902_v39, %v1267_v37  ;;  %v3795_v37 = vld [vmem:[#allocation5 + $0x108] ss:$12 sps:$4 sm:$0xff]  }
 0x64f   :  { %v3801_v39 = vld [vmem:[#allocation5 + $0xf4] ss:$12 sps:$4 sm:$0xff]  }
 0x650   :  { %v4644_v40 = vadd.f32 %v3900_v36, %v1268_v10  ;;  %v3798_v36 = vld [vmem:[#allocation5 + $0x110] ss:$12 sps:$4 sm:$0xff]   ;;  %v3802_v10 = vld [vmem:[#allocation5 + $0xf8] ss:$12 sps:$4 sm:$0xff]  }
 0x652   :  { %v1276_v41 = vpack.c.bf16 %v4644_v40, %v4644_v40 }
 0x654   :  { %1310 = vmatmul.mubr.bf16.vlgmr.msra.gmra.mxu0 %v1276_v41  ;;  %3459 = vmatmul.mubr.bf16.vlgmr.msra.gmra.mxu1 %v1276_v41  ;;  %v3799_v41 = vld [vmem:[#allocation5 + $0xf0] ss:$12 sps:$4 sm:$0xff]  }
 0x655   :  { %1387 = vmatpush1.bf16.msra.mxu0 %v4580_v1  ;;  %3463 = vmatpush3.bf16.msra.mxu1 %v4583_v2 }
 0x656   :  { %1388 = vmatprep.subr.bf16.mxu0 %v4586_v3  ;;  %3464 = vmatprep.subr.bf16.mxu1 %v5217_v7 }
 0x657   :  { %1418 = vmatprep.mubr.bf16.mxu0 %v5218_v15  ;;  %3478 = vmatprep.mubr.msk.bf16.mxu1 %vm4122_vm0, %v5217_v7 }
 0x659   :  { %1389 = vmatpush1.bf16.msra.mxu0 %v4593_v4  ;;  %3465 = vmatpush3.bf16.msra.mxu1 %v4596_v24 }
 0x65a   :  { %1390 = vmatprep.subr.bf16.mxu0 %v4599_v43  ;;  %3466 = vmatprep.subr.bf16.mxu1 %v5217_v7 }
 0x65d   :  { %1391 = vmatpush1.bf16.msra.mxu0 %v4603_v11  ;;  %3467 = vmatpush3.bf16.msra.mxu1 %v4016_v21  ;;  %v5220_v11 = vld [vmem:[#allocation16_spill] sm:$0xff]  ;;  %v3805_v21 = vld [vmem:[#allocation5 + $0xdc] ss:$12 sps:$4 sm:$0xff]  }
 0x65e   :  { %1392 = vmatprep.subr.bf16.mxu0 %v4607_v16  ;;  %3468 = vmatprep.subr.bf16.mxu1 %v5217_v7 }
 0x661   :  { %1393 = vmatpush1.bf16.msra.mxu0 %v4611_v9  ;;  %3469 = vmatpush3.bf16.msra.mxu1 %v4017_v20  ;;  %v3806_v20 = vld [vmem:[#allocation5 + $0xe0] ss:$12 sps:$4 sm:$0xff]  }
 0x662   :  { %1394 = vmatprep.subr.bf16.mxu0 %v4615_v28  ;;  %3470 = vmatprep.subr.bf16.mxu1 %v5217_v7 }
 0x665   :  { %1395 = vmatpush1.bf16.msra.mxu0 %v4619_v51  ;;  %3471 = vmatpush3.bf16.msra.mxu1 %v4018_v17  ;;  %v3803_v17 = vld [vmem:[#allocation5 + $0xd8] ss:$12 sps:$4 sm:$0xff]  }
 0x666   :  { %1396 = vmatprep.subr.bf16.mxu0 %v4623_v42  ;;  %3472 = vmatprep.subr.bf16.mxu1 %v5217_v7 }
 0x669   :  { %1397 = vmatpush1.bf16.msra.mxu0 %v4019_v13  ;;  %3473 = vmatpush3.bf16.msra.mxu1 %v4020_v53  ;;  %v3809_v13 = vld [vmem:[#allocation5 + $0xc4] ss:$12 sps:$4 sm:$0xff]   ;;  %v3810_v53 = vld [vmem:[#allocation5 + $0xc8] ss:$12 sps:$4 sm:$0xff]  }
 0x66a   :  { %1398 = vmatprep.subr.bf16.mxu0 %v4021_v22  ;;  %3474 = vmatprep.subr.bf16.mxu1 %v5217_v7  ;;  %v3807_v22 = vld [vmem:[#allocation5 + $0xc0] ss:$12 sps:$4 sm:$0xff]  }
 0x66d   :  { %1399 = vmatpush1.bf16.msra.mxu0 %v4022_v31  ;;  %3475 = vmatpush3.bf16.msra.mxu1 %v4281_v54  ;;  %v1533_v31 = vpack.c.bf16 %v4530_v14, %v4486_v25  ;;  %v4698_v25 = vld [vmem:[#allocation7 + $0x154] ss:$12 sps:$4 sm:$0xff]   ;;  %v4700_v14 = vld [vmem:[#allocation7 + $0x150] ss:$12 sps:$4 sm:$0xff]  }
 0x66e   :  { %1400 = vmatprep.subr.bf16.mxu0 %v4023_v23  ;;  %3476 = vmatprep.subr.bf16.mxu1 %v5217_v7  ;;  %v1534_v23 = vpack.c.bf16 %v4644_v40, %v4576_v58  ;;  %v4704_v58 = vld [vmem:[#allocation7 + $0x13c] ss:$12 sps:$4 sm:$0xff]  }
 0x671   :  { %1401 = vmatpush1.bf16.msra.mxu0 %v4024_v38  ;;  %3477 = vmatpush3.bf16.msra.mxu1 %v4288_v55  ;;  %v4692_v38 = vld [vmem:[#allocation7 + $0x16c] ss:$12 sps:$4 sm:$0xff]  }
 0x672   :  { %1682 = vmatprep.subr.bf16.mxu0 %v3781_v0  ;;  %3482 = vmatprep.subr.bf16.mxu1 %v3782_v61  ;;  %v4694_v0 = vld [vmem:[#allocation7 + $0x168] ss:$12 sps:$4 sm:$0xff]  }
 0x714   :  { %v1311_v62 = vpop.f32.mrf.mxu0  ;;  %v1352_v57 = vpop.f32.mrf.mxu1 }
 0x715   :  { %v1358_v63 = vadd.f32 %v1311_v62, %v5219_v35  ;;  %v1372_v42 = vadd.f32 %v4393_v60, %v1352_v57  ;;  %v3786_v60 = vld [vmem:[#allocation5 + $0x158] ss:$12 sps:$4 sm:$0xff]   ;;  %v4712_v62 = vld [vmem:[#allocation7 + $0x120] ss:$12 sps:$4 sm:$0xff]   ;;  %v4718_v35 = vld [vmem:[#allocation7 + $0x108] ss:$12 sps:$4 sm:$0xff]  }
 0x716   :  { %v1313_v1 = vpop.f32.mrf.mxu0  ;;  %v3460_v2 = vpop.f32.mrf.mxu1  ;;  %v4716_v57 = vld [vmem:[#allocation7 + $0x10c] ss:$12 sps:$4 sm:$0xff]  }
 0x717   :  { %v3041_v3 = vmul.f32 -1.442695, %v1358_v63  ;;  %v1365_v16 = vadd.f32 %v1313_v1, %v5220_v11  ;;  %v4722_v63 = vld [vmem:[#allocation7 + $0xf4] ss:$12 sps:$4 sm:$0xff]   ;;  %v4724_v1 = vld [vmem:[#allocation7 + $0xf0] ss:$12 sps:$4 sm:$0xff]  }
 0x718   :  { %v1315_v54 = vpop.f32.mrf.mxu0  ;;  %v1355_v4 = vpop.f32.mrf.mxu1  ;;  %v4728_v2 = vld [vmem:[#allocation7 + $0xdc] ss:$12 sps:$4 sm:$0xff]   ;;  %v4748_v11 = vld [vmem:[#allocation7 + $0x140] ss:$12 sps:$4 sm:$0xff]  }
 0x719   :  { %3903 = vpow2.f32 %v3041_v3  ;;  %v3042_v9 = vmul.f32 -1.442695, %v1365_v16  ;;  %v4730_v3 = vld [vmem:[#allocation7 + $0xd8] ss:$12 sps:$4 sm:$0xff]   ;;  %v4734_v4 = vld [vmem:[#allocation7 + $0x170] ss:$12 sps:$4 sm:$0xff]  }
 0x71a   :  { %v1316_v24 = vpop.f32.mrf.mxu0  ;;  %v3461_v43 = vpop.f32.mrf.mxu1  ;;  %v4732_v54 = vld [vmem:[#allocation7 + $0xc4] ss:$12 sps:$4 sm:$0xff]   ;;  %v4752_v16 = vld [vmem:[#allocation7 + $0x128] ss:$12 sps:$4 sm:$0xff]  }
 0x71b   :  { %3905 = vpow2.f32 %v3042_v9  ;;  %v4739_v24 = vld [vmem:[#allocation7 + $0xc0] ss:$12 sps:$4 sm:$0xff]   ;;  %v4744_v43 = vld [vmem:[#allocation7 + $0x158] ss:$12 sps:$4 sm:$0xff]   ;;  %v4756_v9 = vld [vmem:[#allocation7 + $0x110] ss:$12 sps:$4 sm:$0xff]  }
 0x726   :  { %v3904_v55 = vpop.eup %3903 }
 0x727   :  { %v1362_v28 = vadd.f32 1.0, %v3904_v55  ;;  %v4760_v55 = vld [vmem:[#allocation7 + $0xf8] ss:$12 sps:$4 sm:$0xff]  }
 0x728   :  { %v3906_v51 = vpop.eup %3905 }
 0x729   :  { %3907 = vrcp.f32 %v1362_v28  ;;  %v1369_v47 = vadd.f32 1.0, %v3906_v51  ;;  %v4764_v28 = vld [vmem:[#allocation7 + $0xe0] ss:$12 sps:$4 sm:$0xff]   ;;  %v4768_v51 = vld [vmem:[#allocation7 + $0xc8] ss:$12 sps:$4 sm:$0xff]  }
 0x736   :  { %v3908_v44 = vpop.eup %3907 }
 0x737   :  { %v1373_v45 = vmul.f32 %v3908_v44, %v1372_v42 }
 0x739   :  { %v1374_v49 = vadd.f32 %v1373_v45, %v5221_v46  ;;  %v5222_v45 = vld [vmem:[#allocation17_spill] sm:$0xff] }
 0x73b   :  { %3909 = vtanh.f32 %v1374_v49 }
 0x73c   :  { %3911 = vrcp.f32 %v1369_v47 }
 0x748   :  { %v3910_v52 = vpop.eup %3909 }
 0x749   :  { %v1376_v56 = vsub.f32 %v4644_v40, %v3910_v52  ;;  %v3912_v6 = vpop.eup %3911  ;;  %v4706_v40 = vld [vmem:[#allocation7 + $0x138] ss:$12 sps:$4 sm:$0xff]  }
 0x74b   :  { %v1377_v48 = vmul.f32 %v3912_v6, %v1376_v56 }
 0x74d   :  { %v4677_v19 = vadd.f32 %v3910_v52, %v1377_v48 }
 0x74f   :  { %v1385_v12 = vpack.c.bf16 %v4677_v19, %v4677_v19 }
 0x751   :  { %1419 = vmatmul.mubr.bf16.vlgmr.msra.gmra.mxu0 %v1385_v12  ;;  %3479 = vmatmul.mubr.bf16.vlgmr.msra.gmra.mxu1 %v1385_v12 }
 0x752   :  { %1683 = vmatpush1.bf16.msra.mxu0 %v3779_v50  ;;  %3483 = vmatpush3.bf16.msra.mxu1 %v3782_v61  ;;  %v4710_v61 = vld [vmem:[#allocation7 + $0x124] ss:$12 sps:$4 sm:$0xff]  }
 0x753   :  { %3498 = vmatprep.mubr.bf16.mxu1 %v1532_v29  ;;  %1684 = vmatprep.subr.bf16.mxu0 %v3785_v27 }
 0x754   :  { %3484 = vmatprep.subr.bf16.mxu1 %v3786_v60  ;;  %1714 = vmatprep.mubr.bf16.mxu0 %v5218_v15 }
 0x756   :  { %1685 = vmatpush1.bf16.msra.mxu0 %v3783_v26  ;;  %3485 = vmatpush3.bf16.msra.mxu1 %v3786_v60 }
 0x757   :  { %1686 = vmatprep.subr.bf16.mxu0 %v3789_v30  ;;  %3486 = vmatprep.subr.bf16.mxu1 %v3790_v32  ;;  %v4025_v30 = vld [vmem:[%s5196_s4] ss:$0 sm:$0xff] }
 0x75a   :  { %1687 = vmatpush1.bf16.msra.mxu0 %v3787_v59  ;;  %3487 = vmatpush3.bf16.msra.mxu1 %v3790_v32 }
 0x75b   :  { %1688 = vmatprep.subr.bf16.mxu0 %v3793_v33  ;;  %3488 = vmatprep.subr.bf16.mxu1 %v3794_v34 }
 0x75e   :  { %1689 = vmatpush1.bf16.msra.mxu0 %v3791_v18  ;;  %3489 = vmatpush3.bf16.msra.mxu1 %v3794_v34  ;;  %v5223_v34 = vld [vmem:[#allocation14_spill] sm:$0xff] }
 0x75f   :  { %1690 = vmatprep.subr.bf16.mxu0 %v3797_v8  ;;  %3490 = vmatprep.subr.bf16.mxu1 %v3798_v36 }
 0x762   :  { %1691 = vmatpush1.bf16.msra.mxu0 %v3795_v37  ;;  %3491 = vmatpush3.bf16.msra.mxu1 %v3798_v36 }
 0x763   :  { %1692 = vmatprep.subr.bf16.mxu0 %v3801_v39  ;;  %3492 = vmatprep.subr.bf16.mxu1 %v3802_v10 }
 0x766   :  { %1693 = vmatpush1.bf16.msra.mxu0 %v3799_v41  ;;  %3493 = vmatpush3.bf16.msra.mxu1 %v3802_v10 }
 0x767   :  { %1694 = vmatprep.subr.bf16.mxu0 %v3805_v21  ;;  %3494 = vmatprep.subr.bf16.mxu1 %v3806_v20  ;;  %v4788_v21 = vld [vmem:[%s5197_s5 + $0x8] sm:$0xff] }
 0x76a   :  { %1695 = vmatpush1.bf16.msra.mxu0 %v3803_v17  ;;  %3495 = vmatpush3.bf16.msra.mxu1 %v3806_v20  ;;  %v1884_v20 = vpack.c.bf16 %v4788_v21, %v4788_v21 }
 0x76b   :  { %1696 = vmatprep.subr.bf16.mxu0 %v3809_v13  ;;  %3496 = vmatprep.subr.bf16.mxu1 %v3810_v53 }
 0x76e   :  { %1697 = vmatpush1.bf16.msra.mxu0 %v3807_v22  ;;  %3497 = vmatpush3.bf16.msra.mxu1 %v3810_v53 }
 0x76f   :  { %3506 = vmatprep.subr.bf16.mxu1 %v5217_v7  ;;  %2013 = vmatprep.subr.bf16.mxu0 %v4692_v38 }
 0x771   :  { %1715 = vmatmul.mubr.bf16.vlgmr.msra.gmra.mxu0 %v1532_v29  ;;  %3499 = vmatmul.mubr.bf16.vlgmr.msra.gmra.mxu1 %v1533_v31 }
 0x772   :  { %3502 = vmatprep.mubr.bf16.mxu1 %v1534_v23  ;;  %1724 = vmatprep.mubr.bf16.mxu0 %v5218_v15 }
 0x773   :  { %2014 = vmatpush1.bf16.msra.mxu0 %v4694_v0  ;;  %3507 = vmatpush3.bf16.msra.mxu1 %v4734_v4 }
 0x774   :  { %2015 = vmatprep.subr.bf16.mxu0 %v4698_v25  ;;  %3508 = vmatprep.subr.bf16.mxu1 %v5217_v7 }
 0x777   :  { %2016 = vmatpush1.bf16.msra.mxu0 %v4700_v14  ;;  %3509 = vmatpush3.bf16.msra.mxu1 %v4744_v43 }
 0x778   :  { %2017 = vmatprep.subr.bf16.mxu0 %v4704_v58  ;;  %3510 = vmatprep.subr.bf16.mxu1 %v5217_v7 }
 0x779   :  { %1725 = vmatmul.mubr.bf16.gmra.mxu0 %v1533_v31 }
 0x77a   :  { %1734 = vmatprep.mubr.bf16.mxu0 %v5218_v15 }
 0x77b   :  { %2018 = vmatpush1.bf16.msra.mxu0 %v4706_v40  ;;  %3511 = vmatpush3.bf16.msra.mxu1 %v4748_v11 }
 0x77c   :  { %2019 = vmatprep.subr.bf16.mxu0 %v4710_v61  ;;  %3512 = vmatprep.subr.bf16.mxu1 %v5217_v7 }
 0x77f   :  { %2020 = vmatpush1.bf16.msra.mxu0 %v4712_v62  ;;  %3513 = vmatpush3.bf16.msra.mxu1 %v4752_v16 }
 0x780   :  { %2021 = vmatprep.subr.bf16.mxu0 %v4716_v57  ;;  %3514 = vmatprep.subr.bf16.mxu1 %v5217_v7 }
 0x781   :  { %1735 = vmatmul.mubr.bf16.gmra.mxu0 %v1534_v23 }
 0x782   :  { %1744 = vmatprep.mubr.bf16.mxu0 %v5218_v15 }
 0x783   :  { %2022 = vmatpush1.bf16.msra.mxu0 %v4718_v35  ;;  %3515 = vmatpush3.bf16.msra.mxu1 %v4756_v9 }
 0x784   :  { %2023 = vmatprep.subr.bf16.mxu0 %v4722_v63  ;;  %3516 = vmatprep.subr.bf16.mxu1 %v5217_v7 }
 0x787   :  { %2024 = vmatpush1.bf16.msra.mxu0 %v4724_v1  ;;  %3517 = vmatpush3.bf16.msra.mxu1 %v4760_v55 }
 0x788   :  { %2025 = vmatprep.subr.bf16.mxu0 %v4728_v2  ;;  %3518 = vmatprep.subr.bf16.mxu1 %v5217_v7 }
 0x78b   :  { %2026 = vmatpush1.bf16.msra.mxu0 %v4730_v3  ;;  %3519 = vmatpush3.bf16.msra.mxu1 %v4764_v28 }
 0x78c   :  { %2027 = vmatprep.subr.bf16.mxu0 %v4732_v54  ;;  %3520 = vmatprep.subr.bf16.mxu1 %v5217_v7 }
 0x78f   :  { %2028 = vmatpush1.bf16.msra.mxu0 %v4739_v24  ;;  %3521 = vmatpush3.bf16.msra.mxu1 %v4768_v51 }
 0x790   :  { %2125 = vmatprep.subr.bf16.mxu0 %v4692_v38  ;;  %3526 = vmatprep.subr.bf16.mxu1 %v5217_v7 }
 0x811   :  { %v1420_v42 = vpop.f32.mrf.mxu0  ;;  %v1461_v44 = vpop.f32.mrf.mxu1 }
 0x812   :  { %v1467_v46 = vadd.f32 %v1420_v42, %v5222_v45  ;;  %v1481_v32 = vadd.f32 %v4025_v30, %v1461_v44 }
 0x813   :  { %v1422_v49 = vpop.f32.mrf.mxu0  ;;  %v3480_v47 = vpop.f32.mrf.mxu1 }
 0x814   :  { %v3043_v52 = vmul.f32 -1.442695, %v1467_v46  ;;  %v1474_v12 = vadd.f32 %v1422_v49, %v4388_v5 }
 0x815   :  { %v1424_v56 = vpop.f32.mrf.mxu0  ;;  %v1464_v6 = vpop.f32.mrf.mxu1 }
 0x816   :  { %3913 = vpow2.f32 %v3043_v52  ;;  %v3044_v27 = vmul.f32 -1.442695, %v1474_v12 }
 0x817   :  { %v1425_v48 = vpop.f32.mrf.mxu0  ;;  %v3481_v50 = vpop.f32.mrf.mxu1 }
 0x818   :  { %3915 = vpow2.f32 %v3044_v27  ;;  %v3045_v48 = vld [vmem:[%s5195_s3 + $0x3] sm:$0x7] }
 0x823   :  { %v3914_v60 = vpop.eup %3913 }
 0x824   :  { %v1471_v29 = vadd.f32 1.0, %v3914_v60 }
 0x825   :  { %v3916_v26 = vpop.eup %3915 }
 0x826   :  { %3917 = vrcp.f32 %v1471_v29  ;;  %v1478_v8 = vadd.f32 1.0, %v3916_v26  ;;  %v5227_v29 = vld [vmem:[#allocation12_spill] sm:$0xff] }
 0x827   :  { %v5228_v26 = vsub.s32 0, %v5227_v29 }
 0x829   :  { %v4868_v30 = vrot.slane %v3045_v48, %v5228_v26  ;;  %v5233_v26 = vsub.s32 1, %v5227_v29 }
 0x831   :  { %v4841_v44 = vpop.f32.mrf.mxu1 }
 0x833   :  { %v3918_v59 = vpop.eup %3917  ;;  %v1789_v46 = vpop.f32.mrf.mxu1 }
 0x834   :  { %v1482_v33 = vmul.f32 %v3918_v59, %v1481_v32 }
 0x835   :  { %v4847_v47 = vpop.f32.mrf.mxu1 }
 0x836   :  { %v1483_v18 = vadd.f32 %v1482_v33, %v5223_v34 }
 0x837   :  { %v4851_v56 = vpop.f32.mrf.mxu1 }
 0x838   :  { %3919 = vtanh.f32 %v1483_v18 }
 0x839   :  { %3921 = vrcp.f32 %v1478_v8 }
 0x845   :  { %v3920_v36 = vpop.eup %3919 }
 0x846   :  { %v1485_v5 = vsub.f32 %v4677_v19, %v3920_v36  ;;  %v3922_v37 = vpop.eup %3921 }
 0x848   :  { %v1486_v39 = vmul.f32 %v3922_v37, %v1485_v5 }
 0x84a   :  { %v1487_v10 = vadd.f32 %v3920_v36, %v1486_v39 }
 0x84c   :  { %v1535_v41 = vpack.c.bf16 %v1487_v10, %v4677_v19  ;;  %2869 = vst [vmem:[%s5201_s9] sm:$0xff] %v1487_v10  ;;  %v1716_v19 = vpop.f32.mrf.mxu0 }
 0x84d   :  { %v1717_v18 = vadd.f32 %v1716_v19, %v4868_v30 }
 0x84e   :  { %1745 = vmatmul.mubr.bf16.gmra.mxu0 %v1535_v41  ;;  %3503 = vmatmul.mubr.bf16.gmra.mxu1 %v1535_v41  ;;  %v1718_v17 = vpop.f32.mrf.mxu0 }
 0x84f   :  { %2045 = vmatprep.mubr.bf16.mxu0 %v5218_v15  ;;  %3522 = vmatprep.mubr.msk.bf16.mxu1 %vm4122_vm0, %v5217_v7 }
 0x850   :  { %v4829_v13 = vpop.f32.mrf.mxu0 }
 0x852   :  { %v4831_v53 = vpop.f32.mrf.mxu0 }
 0x854   :  { %v4833_v22 = vpop.f32.mrf.mxu0 }
 0x856   :  { %2046 = vmatmul.mubr.bf16.vlgmr.msra.gmra.mxu0 %v1884_v20  ;;  %3523 = vmatmul.mubr.bf16.vlgmr.msra.gmra.mxu1 %v1884_v20  ;;  %v4835_v31 = vpop.f32.mrf.mxu0 }
 0x857   :  { %2126 = vmatpush1.bf16.msra.mxu0 %v4694_v0  ;;  %3527 = vmatpush3.bf16.msra.mxu1 %v4734_v4 }
 0x858   :  { %2127 = vmatprep.subr.bf16.mxu0 %v4698_v25  ;;  %3528 = vmatprep.subr.bf16.mxu1 %v5217_v7  ;;  %v4837_v23 = vpop.f32.mrf.mxu0 }
 0x859   :  { %2157 = vmatprep.mubr.bf16.mxu0 %v5218_v15  ;;  %3542 = vmatprep.mubr.msk.bf16.mxu1 %vm4122_vm0, %v5217_v7 }
 0x85a   :  { %v4839_v42 = vpop.f32.mrf.mxu0 }
 0x85b   :  { %2128 = vmatpush1.bf16.msra.mxu0 %v4700_v14  ;;  %3529 = vmatpush3.bf16.msra.mxu1 %v4744_v43 }
 0x85c   :  { %2129 = vmatprep.subr.bf16.mxu0 %v4704_v58  ;;  %3530 = vmatprep.subr.bf16.mxu1 %v5217_v7  ;;  %v4843_v45 = vpop.f32.mrf.mxu0 }
 0x85e   :  { %v4845_v49 = vpop.f32.mrf.mxu0 }
 0x85f   :  { %2130 = vmatpush1.bf16.msra.mxu0 %v4706_v40  ;;  %3531 = vmatpush3.bf16.msra.mxu1 %v4748_v11 }
 0x860   :  { %2131 = vmatprep.subr.bf16.mxu0 %v4710_v61  ;;  %3532 = vmatprep.subr.bf16.mxu1 %v5217_v7  ;;  %v4849_v52 = vpop.f32.mrf.mxu0 }
 0x862   :  { %v4853_v6 = vpop.f32.mrf.mxu0 }
 0x863   :  { %2132 = vmatpush1.bf16.msra.mxu0 %v4712_v62  ;;  %3533 = vmatpush3.bf16.msra.mxu1 %v4752_v16 }
 0x864   :  { %2133 = vmatprep.subr.bf16.mxu0 %v4716_v57  ;;  %3534 = vmatprep.subr.bf16.mxu1 %v5217_v7 }
 0x867   :  { %2134 = vmatpush1.bf16.msra.mxu0 %v4718_v35  ;;  %3535 = vmatpush3.bf16.msra.mxu1 %v4756_v9 }
 0x868   :  { %2135 = vmatprep.subr.bf16.mxu0 %v4722_v63  ;;  %3536 = vmatprep.subr.bf16.mxu1 %v5217_v7 }
 0x86b   :  { %2136 = vmatpush1.bf16.msra.mxu0 %v4724_v1  ;;  %3537 = vmatpush3.bf16.msra.mxu1 %v4760_v55 }
 0x86c   :  { %2137 = vmatprep.subr.bf16.mxu0 %v4728_v2  ;;  %3538 = vmatprep.subr.bf16.mxu1 %v5217_v7 }
 0x86f   :  { %2138 = vmatpush1.bf16.msra.mxu0 %v4730_v3  ;;  %3539 = vmatpush3.bf16.msra.mxu1 %v4764_v28 }
 0x870   :  { %2139 = vmatprep.subr.bf16.mxu0 %v4732_v54  ;;  %3540 = vmatprep.subr.bf16.mxu1 %v5217_v7 }
 0x873   :  { %2140 = vmatpush1.bf16.msra.mxu0 %v4739_v24  ;;  %3541 = vmatpush3.bf16.msra.mxu1 %v4768_v51 }
 0x874   :  { %2231 = vmatprep.subr.bf16.mxu0 %v4692_v38  ;;  %3546 = vmatprep.subr.bf16.mxu1 %v5217_v7 }
 0x90e   :  { %v4858_v50 = vpop.f32.mrf.mxu0  ;;  %v4860_v12 = vpop.f32.mrf.mxu1 }
 0x90f   :  { %5224 = vst [vmem:[#allocation15_spill] sm:$0xff] %v4858_v50  ;;  %5225 = vst [vmem:[#allocation16_spill] sm:$0xff] %v4860_v12 }
 0x910   :  { %v4862_v27 = vpop.f32.mrf.mxu0  ;;  %v4864_v60 = vpop.f32.mrf.mxu1 }
 0x911   :  { %5226 = vst [vmem:[#allocation13_spill] sm:$0xff] %v4862_v27 }
 0x912   :  { %v4870_v32 = vpop.f32.mrf.mxu0  ;;  %v4872_v59 = vpop.f32.mrf.mxu1 }
 0x913   :  { %5229 = vst [vmem:[#allocation17_spill] sm:$0xff] %v4870_v32  ;;  %5230 = vst [vmem:[#allocation14_spill] sm:$0xff] %v4872_v59  ;;  %v4881_v32 = vrot.slane %v3045_v48, %v5233_v26 }
 0x914   :  { %v4874_v33 = vpop.f32.mrf.mxu0  ;;  %v4876_v34 = vpop.f32.mrf.mxu1 }
 0x915   :  { %5231 = vst [vmem:[#allocation12_spill] sm:$0xff] %v4874_v33  ;;  %5232 = vst [vmem:[#allocation18_spill] sm:$0xff] %v4876_v34  ;;  %v1719_v33 = vadd.f32 %v1718_v17, %v4881_v32 }
 0x916   :  { %v2047_v8 = vpop.f32.mrf.mxu0  ;;  %v2088_v36 = vpop.f32.mrf.mxu1 }
 0x917   :  { %v2094_v5 = vadd.f32 %v2047_v8, %v1717_v18  ;;  %v4887_v18 = vld [vmem:[%s5196_s4 + $0x1] ss:$0 sm:$0xff] }
 0x918   :  { %v2049_v37 = vpop.f32.mrf.mxu0  ;;  %v3524_v39 = vpop.f32.mrf.mxu1  ;;  %v2114_v8 = vadd.f32 %v4887_v18, %v2088_v36 }
 0x919   :  { %v3095_v10 = vmul.f32 -1.442695, %v2094_v5  ;;  %v2101_v27 = vadd.f32 %v2049_v37, %v1719_v33  ;;  %v5234_v39 = vsub.s32 2, %v5227_v29 }
 0x91a   :  { %v2051_v41 = vpop.f32.mrf.mxu0  ;;  %v2091_v20 = vpop.f32.mrf.mxu1 }
 0x91b   :  { %3923 = vpow2.f32 %v3095_v10  ;;  %v3096_v50 = vmul.f32 -1.442695, %v2101_v27 }
 0x91c   :  { %v2052_v59 = vpop.f32.mrf.mxu0  ;;  %v3525_v12 = vpop.f32.mrf.mxu1 }
 0x91d   :  { %3925 = vpow2.f32 %v3096_v50  ;;  %v4892_v59 = vrot.slane %v3045_v48, %v5234_v39 }
 0x91f   :  { %v1790_v17 = vadd.f32 %v1789_v46, %v4892_v59 }
 0x928   :  { %v3924_v19 = vpop.eup %3923 }
 0x929   :  { %v2098_v34 = vadd.f32 1.0, %v3924_v19 }
 0x92a   :  { %v3926_v5 = vpop.eup %3925 }
 0x92b   :  { %3927 = vrcp.f32 %v2098_v34  ;;  %v2105_v33 = vadd.f32 1.0, %v3926_v5 }
 0x938   :  { %v3928_v12 = vpop.eup %3927 }
 0x939   :  { %v2115_v27 = vmul.f32 %v3928_v12, %v2114_v8 }
 0x93b   :  { %v2116_v37 = vadd.f32 %v2115_v27, %v1790_v17  ;;  %v1723_v27 = vadd.f32 %v4831_v53, %v4881_v32 }
 0x93d   :  { %3929 = vtanh.f32 %v2116_v37 }
 0x93e   :  { %3931 = vrcp.f32 %v2105_v33 }
 0x94a   :  { %v3930_v50 = vpop.eup %3929 }
 0x94b   :  { %v2118_v34 = vsub.f32 %v4788_v21, %v3930_v50  ;;  %v3932_v10 = vpop.eup %3931  ;;  %v1721_v21 = vadd.f32 %v4829_v13, %v4868_v30 }
 0x94d   :  { %v2119_v41 = vmul.f32 %v3932_v10, %v2118_v34 }
 0x94f   :  { %v4896_v20 = vadd.f32 %v3930_v50, %v2119_v41 }
 0x951   :  { %v2124_v29 = vpack.c.bf16 %v4896_v20, %v4896_v20 }
 0x953   :  { %2158 = vmatmul.mubr.bf16.vlgmr.msra.gmra.mxu0 %v2124_v29  ;;  %3543 = vmatmul.mubr.bf16.vlgmr.msra.gmra.mxu1 %v2124_v29  ;;  %v1793_v29 = vadd.f32 %v4851_v56, %v4892_v59  ;;  %v1727_v56 = vadd.f32 %v4833_v22, %v4868_v30 }
 0x954   :  { %2232 = vmatpush1.bf16.msra.mxu0 %v4694_v0  ;;  %3547 = vmatpush3.bf16.msra.mxu1 %v4734_v4 }
 0x955   :  { %2233 = vmatprep.subr.bf16.mxu0 %v4698_v25  ;;  %3548 = vmatprep.subr.bf16.mxu1 %v5217_v7 }
 0x956   :  { %2263 = vmatprep.mubr.bf16.mxu0 %v5218_v15  ;;  %3562 = vmatprep.mubr.msk.bf16.mxu1 %vm4122_vm0, %v5217_v7 }
 0x958   :  { %2234 = vmatpush1.bf16.msra.mxu0 %v4700_v14  ;;  %3549 = vmatpush3.bf16.msra.mxu1 %v4744_v43 }
 0x959   :  { %2235 = vmatprep.subr.bf16.mxu0 %v4704_v58  ;;  %3550 = vmatprep.subr.bf16.mxu1 %v5217_v7 }
 0x95c   :  { %2236 = vmatpush1.bf16.msra.mxu0 %v4706_v40  ;;  %3551 = vmatpush3.bf16.msra.mxu1 %v4748_v11 }
 0x95d   :  { %2237 = vmatprep.subr.bf16.mxu0 %v4710_v61  ;;  %3552 = vmatprep.subr.bf16.mxu1 %v5217_v7 }
 0x960   :  { %2238 = vmatpush1.bf16.msra.mxu0 %v4712_v62  ;;  %3553 = vmatpush3.bf16.msra.mxu1 %v4752_v16 }
 0x961   :  { %2239 = vmatprep.subr.bf16.mxu0 %v4716_v57  ;;  %3554 = vmatprep.subr.bf16.mxu1 %v5217_v7 }
 0x964   :  { %2240 = vmatpush1.bf16.msra.mxu0 %v4718_v35  ;;  %3555 = vmatpush3.bf16.msra.mxu1 %v4756_v9 }
 0x965   :  { %2241 = vmatprep.subr.bf16.mxu0 %v4722_v63  ;;  %3556 = vmatprep.subr.bf16.mxu1 %v5217_v7 }
 0x968   :  { %2242 = vmatpush1.bf16.msra.mxu0 %v4724_v1  ;;  %3557 = vmatpush3.bf16.msra.mxu1 %v4760_v55 }
 0x969   :  { %2243 = vmatprep.subr.bf16.mxu0 %v4728_v2  ;;  %3558 = vmatprep.subr.bf16.mxu1 %v5217_v7 }
 0x96c   :  { %2244 = vmatpush1.bf16.msra.mxu0 %v4730_v3  ;;  %3559 = vmatpush3.bf16.msra.mxu1 %v4764_v28 }
 0x96d   :  { %2245 = vmatprep.subr.bf16.mxu0 %v4732_v54  ;;  %3560 = vmatprep.subr.bf16.mxu1 %v5217_v7 }
 0x970   :  { %2246 = vmatpush1.bf16.msra.mxu0 %v4739_v24  ;;  %3561 = vmatpush3.bf16.msra.mxu1 %v4768_v51 }
 0x971   :  { %2337 = vmatprep.subr.bf16.mxu0 %v4692_v38  ;;  %3566 = vmatprep.subr.bf16.mxu1 %v5217_v7 }
 0xa13   :  { %v2159_v46 = vpop.f32.mrf.mxu0  ;;  %v2200_v48 = vpop.f32.mrf.mxu1 }
 0xa14   :  { %v2206_v36 = vadd.f32 %v2159_v46, %v1721_v21  ;;  %v2220_v10 = vadd.f32 %v4887_v18, %v2200_v48 }
 0xa15   :  { %v2161_v26 = vpop.f32.mrf.mxu0  ;;  %v3544_v19 = vpop.f32.mrf.mxu1 }
 0xa16   :  { %v3098_v8 = vmul.f32 -1.442695, %v2206_v36  ;;  %v2213_v33 = vadd.f32 %v2161_v26, %v1723_v27 }
 0xa17   :  { %v2163_v5 = vpop.f32.mrf.mxu0  ;;  %v2203_v39 = vpop.f32.mrf.mxu1 }
 0xa18   :  { %3933 = vpow2.f32 %v3098_v8  ;;  %v3099_v37 = vmul.f32 -1.442695, %v2213_v33 }
 0xa19   :  { %v2164_v12 = vpop.f32.mrf.mxu0  ;;  %v3545_v17 = vpop.f32.mrf.mxu1 }
 0xa1a   :  { %3935 = vpow2.f32 %v3099_v37 }
 0xa25   :  { %v3934_v50 = vpop.eup %3933 }
 0xa26   :  { %v2210_v34 = vadd.f32 1.0, %v3934_v50 }
 0xa27   :  { %v3936_v13 = vpop.eup %3935 }
 0xa28   :  { %3937 = vrcp.f32 %v2210_v34  ;;  %v2217_v36 = vadd.f32 1.0, %v3936_v13 }
 0xa35   :  { %v3938_v41 = vpop.eup %3937 }
 0xa36   :  { %v2221_v21 = vmul.f32 %v3938_v41, %v2220_v10  ;;  %v1729_v10 = vadd.f32 %v4835_v31, %v4881_v32 }
 0xa38   :  { %v2222_v46 = vadd.f32 %v2221_v21, %v1793_v29 }
 0xa3a   :  { %3939 = vtanh.f32 %v2222_v46 }
 0xa3b   :  { %3941 = vrcp.f32 %v2217_v36 }
 0xa47   :  { %v3940_v19 = vpop.eup %3939 }
 0xa48   :  { %v2224_v53 = vsub.f32 %v4896_v20, %v3940_v19  ;;  %v3942_v26 = vpop.eup %3941 }
 0xa4a   :  { %v2225_v8 = vmul.f32 %v3942_v26, %v2224_v53  ;;  %v1798_v53 = vadd.f32 %v4841_v44, %v4892_v59  ;;  %v1731_v44 = vadd.f32 %v4837_v23, %v4868_v30 }
 0xa4c   :  { %v4943_v5 = vadd.f32 %v3940_v19, %v2225_v8 }
 0xa4e   :  { %v2230_v39 = vpack.c.bf16 %v4943_v5, %v4943_v5 }
 0xa50   :  { %2264 = vmatmul.mubr.bf16.vlgmr.msra.gmra.mxu0 %v2230_v39  ;;  %3563 = vmatmul.mubr.bf16.vlgmr.msra.gmra.mxu1 %v2230_v39 }
 0xa51   :  { %2338 = vmatpush1.bf16.msra.mxu0 %v4694_v0  ;;  %3567 = vmatpush3.bf16.msra.mxu1 %v4734_v4 }
 0xa52   :  { %2339 = vmatprep.subr.bf16.mxu0 %v4698_v25  ;;  %3568 = vmatprep.subr.bf16.mxu1 %v5217_v7 }
 0xa53   :  { %2369 = vmatprep.mubr.bf16.mxu0 %v5218_v15  ;;  %3582 = vmatprep.mubr.msk.bf16.mxu1 %vm4122_vm0, %v5217_v7 }
 0xa55   :  { %2340 = vmatpush1.bf16.msra.mxu0 %v4700_v14  ;;  %3569 = vmatpush3.bf16.msra.mxu1 %v4744_v43 }
 0xa56   :  { %2341 = vmatprep.subr.bf16.mxu0 %v4704_v58  ;;  %3570 = vmatprep.subr.bf16.mxu1 %v5217_v7 }
 0xa59   :  { %2342 = vmatpush1.bf16.msra.mxu0 %v4706_v40  ;;  %3571 = vmatpush3.bf16.msra.mxu1 %v4748_v11 }
 0xa5a   :  { %2343 = vmatprep.subr.bf16.mxu0 %v4710_v61  ;;  %3572 = vmatprep.subr.bf16.mxu1 %v5217_v7 }
 0xa5d   :  { %2344 = vmatpush1.bf16.msra.mxu0 %v4712_v62  ;;  %3573 = vmatpush3.bf16.msra.mxu1 %v4752_v16 }
 0xa5e   :  { %2345 = vmatprep.subr.bf16.mxu0 %v4716_v57  ;;  %3574 = vmatprep.subr.bf16.mxu1 %v5217_v7 }
 0xa61   :  { %2346 = vmatpush1.bf16.msra.mxu0 %v4718_v35  ;;  %3575 = vmatpush3.bf16.msra.mxu1 %v4756_v9 }
 0xa62   :  { %2347 = vmatprep.subr.bf16.mxu0 %v4722_v63  ;;  %3576 = vmatprep.subr.bf16.mxu1 %v5217_v7 }
 0xa65   :  { %2348 = vmatpush1.bf16.msra.mxu0 %v4724_v1  ;;  %3577 = vmatpush3.bf16.msra.mxu1 %v4760_v55 }
 0xa66   :  { %2349 = vmatprep.subr.bf16.mxu0 %v4728_v2  ;;  %3578 = vmatprep.subr.bf16.mxu1 %v5217_v7 }
 0xa69   :  { %2350 = vmatpush1.bf16.msra.mxu0 %v4730_v3  ;;  %3579 = vmatpush3.bf16.msra.mxu1 %v4764_v28 }
 0xa6a   :  { %2351 = vmatprep.subr.bf16.mxu0 %v4732_v54  ;;  %3580 = vmatprep.subr.bf16.mxu1 %v5217_v7 }
 0xa6d   :  { %2352 = vmatpush1.bf16.msra.mxu0 %v4739_v24  ;;  %3581 = vmatpush3.bf16.msra.mxu1 %v4768_v51 }
 0xa6e   :  { %2443 = vmatprep.subr.bf16.mxu0 %v4692_v38  ;;  %3586 = vmatprep.subr.bf16.mxu1 %v5217_v7 }
 0xb10   :  { %v2265_v20 = vpop.f32.mrf.mxu0  ;;  %v2306_v48 = vpop.f32.mrf.mxu1 }
 0xb11   :  { %v2312_v12 = vadd.f32 %v2265_v20, %v1727_v56  ;;  %v2326_v36 = vadd.f32 %v4887_v18, %v2306_v48 }
 0xb12   :  { %v2267_v17 = vpop.f32.mrf.mxu0  ;;  %v3564_v27 = vpop.f32.mrf.mxu1 }
 0xb13   :  { %v3100_v33 = vmul.f32 -1.442695, %v2312_v12  ;;  %v2319_v41 = vadd.f32 %v2267_v17, %v1729_v10 }
 0xb14   :  { %v2269_v37 = vpop.f32.mrf.mxu0  ;;  %v2309_v50 = vpop.f32.mrf.mxu1 }
 0xb15   :  { %3943 = vpow2.f32 %v3100_v33  ;;  %v3101_v29 = vmul.f32 -1.442695, %v2319_v41 }
 0xb16   :  { %v2270_v34 = vpop.f32.mrf.mxu0  ;;  %v3565_v13 = vpop.f32.mrf.mxu1 }
 0xb17   :  { %3945 = vpow2.f32 %v3101_v29 }
 0xb22   :  { %v3944_v21 = vpop.eup %3943 }
 0xb23   :  { %v2316_v46 = vadd.f32 1.0, %v3944_v21  ;;  %v1733_v21 = vadd.f32 %v4839_v42, %v4881_v32 }
 0xb24   :  { %v3946_v22 = vpop.eup %3945 }
 0xb25   :  { %3947 = vrcp.f32 %v2316_v46  ;;  %v2323_v39 = vadd.f32 1.0, %v3946_v22 }
 0xb32   :  { %v3948_v19 = vpop.eup %3947 }
 0xb33   :  { %v2327_v26 = vmul.f32 %v3948_v19, %v2326_v36 }
 0xb35   :  { %v2328_v8 = vadd.f32 %v2327_v26, %v1798_v53 }
 0xb37   :  { %3949 = vtanh.f32 %v2328_v8  ;;  %v1801_v8 = vadd.f32 %v4847_v47, %v4892_v59  ;;  %v1737_v47 = vadd.f32 %v4843_v45, %v4868_v30 }
 0xb38   :  { %3951 = vrcp.f32 %v2323_v39 }
 0xb44   :  { %v3950_v56 = vpop.eup %3949 }
 0xb45   :  { %v2330_v31 = vsub.f32 %v4943_v5, %v3950_v56  ;;  %v3952_v20 = vpop.eup %3951 }
 0xb47   :  { %v2331_v12 = vmul.f32 %v3952_v20, %v2330_v31 }
 0xb49   :  { %v4990_v17 = vadd.f32 %v3950_v56, %v2331_v12 }
 0xb4b   :  { %v2336_v27 = vpack.c.bf16 %v4990_v17, %v4990_v17 }
 0xb4d   :  { %2370 = vmatmul.mubr.bf16.vlgmr.msra.gmra.mxu0 %v2336_v27  ;;  %3583 = vmatmul.mubr.bf16.vlgmr.msra.gmra.mxu1 %v2336_v27 }
 0xb4e   :  { %2444 = vmatpush1.bf16.msra.mxu0 %v4694_v0  ;;  %3587 = vmatpush3.bf16.msra.mxu1 %v4734_v4 }
 0xb4f   :  { %2445 = vmatprep.subr.bf16.mxu0 %v4698_v25  ;;  %3588 = vmatprep.subr.bf16.mxu1 %v5217_v7 }
 0xb50   :  { %2475 = vmatprep.mubr.bf16.mxu0 %v5218_v15  ;;  %3602 = vmatprep.mubr.msk.bf16.mxu1 %vm4122_vm0, %v5217_v7 }
 0xb52   :  { %2446 = vmatpush1.bf16.msra.mxu0 %v4700_v14  ;;  %3589 = vmatpush3.bf16.msra.mxu1 %v4744_v43 }
 0xb53   :  { %2447 = vmatprep.subr.bf16.mxu0 %v4704_v58  ;;  %3590 = vmatprep.subr.bf16.mxu1 %v5217_v7 }
 0xb56   :  { %2448 = vmatpush1.bf16.msra.mxu0 %v4706_v40  ;;  %3591 = vmatpush3.bf16.msra.mxu1 %v4748_v11 }
 0xb57   :  { %2449 = vmatprep.subr.bf16.mxu0 %v4710_v61  ;;  %3592 = vmatprep.subr.bf16.mxu1 %v5217_v7 }
 0xb5a   :  { %2450 = vmatpush1.bf16.msra.mxu0 %v4712_v62  ;;  %3593 = vmatpush3.bf16.msra.mxu1 %v4752_v16 }
 0xb5b   :  { %2451 = vmatprep.subr.bf16.mxu0 %v4716_v57  ;;  %3594 = vmatprep.subr.bf16.mxu1 %v5217_v7 }
 0xb5e   :  { %2452 = vmatpush1.bf16.msra.mxu0 %v4718_v35  ;;  %3595 = vmatpush3.bf16.msra.mxu1 %v4756_v9 }
 0xb5f   :  { %2453 = vmatprep.subr.bf16.mxu0 %v4722_v63  ;;  %3596 = vmatprep.subr.bf16.mxu1 %v5217_v7 }
 0xb62   :  { %2454 = vmatpush1.bf16.msra.mxu0 %v4724_v1  ;;  %3597 = vmatpush3.bf16.msra.mxu1 %v4760_v55 }
 0xb63   :  { %2455 = vmatprep.subr.bf16.mxu0 %v4728_v2  ;;  %3598 = vmatprep.subr.bf16.mxu1 %v5217_v7 }
 0xb66   :  { %2456 = vmatpush1.bf16.msra.mxu0 %v4730_v3  ;;  %3599 = vmatpush3.bf16.msra.mxu1 %v4764_v28 }
 0xb67   :  { %2457 = vmatprep.subr.bf16.mxu0 %v4732_v54  ;;  %3600 = vmatprep.subr.bf16.mxu1 %v5217_v7 }
 0xb6a   :  { %2458 = vmatpush1.bf16.msra.mxu0 %v4739_v24  ;;  %3601 = vmatpush3.bf16.msra.mxu1 %v4768_v51 }
 0xb6b   :  { %2549 = vmatprep.subr.bf16.mxu0 %v4692_v38  ;;  %3606 = vmatprep.subr.bf16.mxu1 %v5217_v7 }
 0xc0d   :  { %v2371_v5 = vpop.f32.mrf.mxu0  ;;  %v2412_v48 = vpop.f32.mrf.mxu1 }
 0xc0e   :  { %v2418_v33 = vadd.f32 %v2371_v5, %v1731_v44  ;;  %v2432_v53 = vadd.f32 %v4887_v18, %v2412_v48 }
 0xc0f   :  { %v2373_v37 = vpop.f32.mrf.mxu0  ;;  %v3584_v50 = vpop.f32.mrf.mxu1 }
 0xc10   :  { %v3102_v34 = vmul.f32 -1.442695, %v2418_v33  ;;  %v2425_v46 = vadd.f32 %v2373_v37, %v1733_v21  ;;  %v1739_v21 = vadd.f32 %v4845_v49, %v4881_v32 }
 0xc11   :  { %v2375_v13 = vpop.f32.mrf.mxu0  ;;  %v2415_v10 = vpop.f32.mrf.mxu1 }
 0xc12   :  { %3953 = vpow2.f32 %v3102_v34  ;;  %v3103_v22 = vmul.f32 -1.442695, %v2425_v46 }
 0xc13   :  { %v2376_v41 = vpop.f32.mrf.mxu0  ;;  %v3585_v29 = vpop.f32.mrf.mxu1 }
 0xc14   :  { %3955 = vpow2.f32 %v3103_v22 }
 0xc1f   :  { %v3954_v36 = vpop.eup %3953 }
 0xc20   :  { %v2422_v19 = vadd.f32 1.0, %v3954_v36 }
 0xc21   :  { %v3956_v23 = vpop.eup %3955 }
 0xc22   :  { %3957 = vrcp.f32 %v2422_v19  ;;  %v2429_v31 = vadd.f32 1.0, %v3956_v23 }
 0xc2f   :  { %v3958_v26 = vpop.eup %3957 }
 0xc30   :  { %v2433_v39 = vmul.f32 %v3958_v26, %v2432_v53  ;;  %v1806_v26 = vadd.f32 %v4864_v60, %v4892_v59 }
 0xc32   :  { %v2434_v56 = vadd.f32 %v2433_v39, %v1801_v8 }
 0xc34   :  { %3959 = vtanh.f32 %v2434_v56 }
 0xc35   :  { %3961 = vrcp.f32 %v2429_v31 }
 0xc41   :  { %v3960_v20 = vpop.eup %3959 }
 0xc42   :  { %v2436_v42 = vsub.f32 %v4990_v17, %v3960_v20  ;;  %v3962_v12 = vpop.eup %3961 }
 0xc44   :  { %v2437_v27 = vmul.f32 %v3962_v12, %v2436_v42 }
 0xc46   :  { %v5037_v44 = vadd.f32 %v3960_v20, %v2437_v27 }
 0xc48   :  { %v2442_v5 = vpack.c.bf16 %v5037_v44, %v5037_v44 }
 0xc4a   :  { %2476 = vmatmul.mubr.bf16.vlgmr.msra.gmra.mxu0 %v2442_v5  ;;  %3603 = vmatmul.mubr.bf16.vlgmr.msra.gmra.mxu1 %v2442_v5 }
 0xc4b   :  { %2550 = vmatpush1.bf16.msra.mxu0 %v4694_v0  ;;  %3607 = vmatpush3.bf16.msra.mxu1 %v4734_v4 }
 0xc4c   :  { %2551 = vmatprep.subr.bf16.mxu0 %v4698_v25  ;;  %3608 = vmatprep.subr.bf16.mxu1 %v5217_v7 }
 0xc4d   :  { %2581 = vmatprep.mubr.bf16.mxu0 %v5218_v15  ;;  %3622 = vmatprep.mubr.msk.bf16.mxu1 %vm4122_vm0, %v5217_v7 }
 0xc4f   :  { %2552 = vmatpush1.bf16.msra.mxu0 %v4700_v14  ;;  %3609 = vmatpush3.bf16.msra.mxu1 %v4744_v43 }
 0xc50   :  { %2553 = vmatprep.subr.bf16.mxu0 %v4704_v58  ;;  %3610 = vmatprep.subr.bf16.mxu1 %v5217_v7 }
 0xc53   :  { %2554 = vmatpush1.bf16.msra.mxu0 %v4706_v40  ;;  %3611 = vmatpush3.bf16.msra.mxu1 %v4748_v11 }
 0xc54   :  { %2555 = vmatprep.subr.bf16.mxu0 %v4710_v61  ;;  %3612 = vmatprep.subr.bf16.mxu1 %v5217_v7 }
 0xc57   :  { %2556 = vmatpush1.bf16.msra.mxu0 %v4712_v62  ;;  %3613 = vmatpush3.bf16.msra.mxu1 %v4752_v16 }
 0xc58   :  { %2557 = vmatprep.subr.bf16.mxu0 %v4716_v57  ;;  %3614 = vmatprep.subr.bf16.mxu1 %v5217_v7 }
 0xc5b   :  { %2558 = vmatpush1.bf16.msra.mxu0 %v4718_v35  ;;  %3615 = vmatpush3.bf16.msra.mxu1 %v4756_v9 }
 0xc5c   :  { %2559 = vmatprep.subr.bf16.mxu0 %v4722_v63  ;;  %3616 = vmatprep.subr.bf16.mxu1 %v5217_v7 }
 0xc5f   :  { %2560 = vmatpush1.bf16.msra.mxu0 %v4724_v1  ;;  %3617 = vmatpush3.bf16.msra.mxu1 %v4760_v55 }
 0xc60   :  { %2561 = vmatprep.subr.bf16.mxu0 %v4728_v2  ;;  %3618 = vmatprep.subr.bf16.mxu1 %v5217_v7 }
 0xc63   :  { %2562 = vmatpush1.bf16.msra.mxu0 %v4730_v3  ;;  %3619 = vmatpush3.bf16.msra.mxu1 %v4764_v28 }
 0xc64   :  { %2563 = vmatprep.subr.bf16.mxu0 %v4732_v54  ;;  %3620 = vmatprep.subr.bf16.mxu1 %v5217_v7 }
 0xc67   :  { %2564 = vmatpush1.bf16.msra.mxu0 %v4739_v24  ;;  %3621 = vmatpush3.bf16.msra.mxu1 %v4768_v51 }
 0xc68   :  { %2655 = vmatprep.subr.bf16.mxu0 %v4692_v38  ;;  %3626 = vmatprep.subr.bf16.mxu1 %v5217_v7 }
 0xd0a   :  { %v2477_v17 = vpop.f32.mrf.mxu0  ;;  %v2518_v48 = vpop.f32.mrf.mxu1 }
 0xd0b   :  { %v2524_v33 = vadd.f32 %v2477_v17, %v1737_v47  ;;  %v2538_v23 = vadd.f32 %v4887_v18, %v2518_v48  ;;  %v4026_v17 = vld [vmem:[#allocation7 + $0x168] ss:$12 sps:$4 sm:$0xff]   ;;  %v4027_v48 = vld [vmem:[#allocation7 + $0x170] ss:$12 sps:$4 sm:$0xff]  }
 0xd0c   :  { %v2479_v37 = vpop.f32.mrf.mxu0  ;;  %v3604_v50 = vpop.f32.mrf.mxu1 }
 0xd0d   :  { %v3104_v34 = vmul.f32 -1.442695, %v2524_v33  ;;  %v2531_v46 = vadd.f32 %v2479_v37, %v1739_v21  ;;  %v4028_v33 = vld [vmem:[#allocation7 + $0x154] ss:$12 sps:$4 sm:$0xff]   ;;  %v4029_v37 = vld [vmem:[#allocation7 + $0x150] ss:$12 sps:$4 sm:$0xff]  }
 0xd0e   :  { %v2481_v13 = vpop.f32.mrf.mxu0  ;;  %v2521_v10 = vpop.f32.mrf.mxu1  ;;  %v4030_v50 = vld [vmem:[#allocation7 + $0x158] ss:$12 sps:$4 sm:$0xff]  }
 0xd0f   :  { %3963 = vpow2.f32 %v3104_v34  ;;  %v3105_v22 = vmul.f32 -1.442695, %v2531_v46  ;;  %v4031_v34 = vld [vmem:[#allocation7 + $0x13c] ss:$12 sps:$4 sm:$0xff]   ;;  %v4032_v13 = vld [vmem:[#allocation7 + $0x138] ss:$12 sps:$4 sm:$0xff]  }
 0xd10   :  { %v2482_v41 = vpop.f32.mrf.mxu0  ;;  %v3605_v29 = vpop.f32.mrf.mxu1  ;;  %v4033_v10 = vld [vmem:[#allocation7 + $0x140] ss:$12 sps:$4 sm:$0xff]   ;;  %v4038_v46 = vld [vmem:[#allocation7 + $0x108] ss:$12 sps:$4 sm:$0xff]  }
 0xd11   :  { %3965 = vpow2.f32 %v3105_v22  ;;  %v4034_v41 = vld [vmem:[#allocation7 + $0x124] ss:$12 sps:$4 sm:$0xff]   ;;  %v4036_v29 = vld [vmem:[#allocation7 + $0x128] ss:$12 sps:$4 sm:$0xff]   ;;  %v4037_v21 = vld [vmem:[#allocation7 + $0x10c] ss:$12 sps:$4 sm:$0xff]  }
 0xd12   :  { %v4039_v22 = vld [vmem:[#allocation7 + $0x110] ss:$12 sps:$4 sm:$0xff]  }
 0xd1c   :  { %v3964_v36 = vpop.eup %3963 }
 0xd1d   :  { %v2528_v19 = vadd.f32 1.0, %v3964_v36  ;;  %v4040_v36 = vld [vmem:[#allocation7 + $0xf4] ss:$12 sps:$4 sm:$0xff]  }
 0xd1e   :  { %v3966_v45 = vpop.eup %3965 }
 0xd1f   :  { %3967 = vrcp.f32 %v2528_v19  ;;  %v2535_v56 = vadd.f32 1.0, %v3966_v45  ;;  %v4041_v19 = vld [vmem:[#allocation7 + $0xf0] ss:$12 sps:$4 sm:$0xff]   ;;  %v4042_v45 = vld [vmem:[#allocation7 + $0xf8] ss:$12 sps:$4 sm:$0xff]  }
 0xd2c   :  { %v3968_v53 = vpop.eup %3967 }
 0xd2d   :  { %v2539_v8 = vmul.f32 %v3968_v53, %v2538_v23  ;;  %v4043_v23 = vld [vmem:[#allocation7 + $0xdc] ss:$12 sps:$4 sm:$0xff]   ;;  %v4044_v53 = vld [vmem:[#allocation7 + $0xd8] ss:$12 sps:$4 sm:$0xff]  }
 0xd2f   :  { %v2540_v39 = vadd.f32 %v2539_v8, %v1806_v26  ;;  %v4045_v26 = vld [vmem:[#allocation7 + $0xe0] ss:$12 sps:$4 sm:$0xff]   ;;  %v4046_v8 = vld [vmem:[#allocation7 + $0xc4] ss:$12 sps:$4 sm:$0xff]  }
 0xd31   :  { %3969 = vtanh.f32 %v2540_v39  ;;  %v4047_v39 = vld [vmem:[#allocation7 + $0xc0] ss:$12 sps:$4 sm:$0xff]  }
 0xd32   :  { %3971 = vrcp.f32 %v2535_v56  ;;  %v4048_v56 = vld [vmem:[#allocation7 + $0xc8] ss:$12 sps:$4 sm:$0xff]  }
 0xd3e   :  { %v3970_v31 = vpop.eup %3969 }
 0xd3f   :  { %v2542_v49 = vsub.f32 %v5037_v44, %v3970_v31  ;;  %v3972_v20 = vpop.eup %3971 }
 0xd41   :  { %v2543_v42 = vmul.f32 %v3972_v20, %v2542_v49 }
 0xd43   :  { %v5084_v12 = vadd.f32 %v3970_v31, %v2543_v42  ;;  %v5236_v31 = vld [vmem:[#allocation15_spill] sm:$0xff] }
 0xd44   :  { %v1747_v49 = vadd.f32 %v5236_v31, %v4868_v30 }
 0xd45   :  { %v2548_v27 = vpack.c.bf16 %v5084_v12, %v5084_v12 }
 0xd47   :  { %2582 = vmatmul.mubr.bf16.vlgmr.msra.gmra.mxu0 %v2548_v27  ;;  %3623 = vmatmul.mubr.bf16.vlgmr.msra.gmra.mxu1 %v2548_v27 }
 0xd48   :  { %2656 = vmatpush1.bf16.msra.mxu0 %v4694_v0  ;;  %3627 = vmatpush3.bf16.msra.mxu1 %v4734_v4  ;;  %v1741_v0 = vadd.f32 %v4849_v52, %v4868_v30 }
 0xd49   :  { %2657 = vmatprep.subr.bf16.mxu0 %v4698_v25  ;;  %3628 = vmatprep.subr.bf16.mxu1 %v5217_v7 }
 0xd4a   :  { %2687 = vmatprep.mubr.bf16.mxu0 %v5218_v15  ;;  %3642 = vmatprep.mubr.msk.bf16.mxu1 %vm4122_vm0, %v5217_v7 }
 0xd4c   :  { %2658 = vmatpush1.bf16.msra.mxu0 %v4700_v14  ;;  %3629 = vmatpush3.bf16.msra.mxu1 %v4744_v43 }
 0xd4d   :  { %2659 = vmatprep.subr.bf16.mxu0 %v4704_v58  ;;  %3630 = vmatprep.subr.bf16.mxu1 %v5217_v7 }
 0xd50   :  { %2660 = vmatpush1.bf16.msra.mxu0 %v4706_v40  ;;  %3631 = vmatpush3.bf16.msra.mxu1 %v4748_v11 }
 0xd51   :  { %2661 = vmatprep.subr.bf16.mxu0 %v4710_v61  ;;  %3632 = vmatprep.subr.bf16.mxu1 %v5217_v7 }
 0xd54   :  { %2662 = vmatpush1.bf16.msra.mxu0 %v4712_v62  ;;  %3633 = vmatpush3.bf16.msra.mxu1 %v4752_v16  ;;  %v5235_v16 = vld [vmem:[#allocation18_spill] sm:$0xff] }
 0xd55   :  { %2663 = vmatprep.subr.bf16.mxu0 %v4716_v57  ;;  %3634 = vmatprep.subr.bf16.mxu1 %v5217_v7 }
 0xd58   :  { %2664 = vmatpush1.bf16.msra.mxu0 %v4718_v35  ;;  %3635 = vmatpush3.bf16.msra.mxu1 %v4756_v9  ;;  %v1809_v9 = vadd.f32 %v5235_v16, %v4892_v59 }
 0xd59   :  { %2665 = vmatprep.subr.bf16.mxu0 %v4722_v63  ;;  %3636 = vmatprep.subr.bf16.mxu1 %v5217_v7 }
 0xd5c   :  { %2666 = vmatpush1.bf16.msra.mxu0 %v4724_v1  ;;  %3637 = vmatpush3.bf16.msra.mxu1 %v4760_v55 }
 0xd5d   :  { %2667 = vmatprep.subr.bf16.mxu0 %v4728_v2  ;;  %3638 = vmatprep.subr.bf16.mxu1 %v5217_v7  ;;  %v1743_v2 = vadd.f32 %v4853_v6, %v4881_v32 }
 0xd60   :  { %2668 = vmatpush1.bf16.msra.mxu0 %v4730_v3  ;;  %3639 = vmatpush3.bf16.msra.mxu1 %v4764_v28 }
 0xd61   :  { %2669 = vmatprep.subr.bf16.mxu0 %v4732_v54  ;;  %3640 = vmatprep.subr.bf16.mxu1 %v5217_v7 }
 0xd64   :  { %2670 = vmatpush1.bf16.msra.mxu0 %v4739_v24  ;;  %3641 = vmatpush3.bf16.msra.mxu1 %v4768_v51 }
 0xd65   :  { %2761 = vmatprep.subr.bf16.mxu0 %v4692_v38  ;;  %3646 = vmatprep.subr.bf16.mxu1 %v5217_v7 }
 0xe07   :  { %v2583_v25 = vpop.f32.mrf.mxu0  ;;  %v2624_v14 = vpop.f32.mrf.mxu1 }
 0xe08   :  { %v2630_v58 = vadd.f32 %v2583_v25, %v1741_v0  ;;  %v2644_v43 = vadd.f32 %v4887_v18, %v2624_v14 }
 0xe09   :  { %v2585_v40 = vpop.f32.mrf.mxu0  ;;  %v3624_v61 = vpop.f32.mrf.mxu1 }
 0xe0a   :  { %v3106_v62 = vmul.f32 -1.442695, %v2630_v58  ;;  %v2637_v38 = vadd.f32 %v2585_v40, %v1743_v2 }
 0xe0b   :  { %v2587_v57 = vpop.f32.mrf.mxu0  ;;  %v2627_v35 = vpop.f32.mrf.mxu1 }
 0xe0c   :  { %3973 = vpow2.f32 %v3106_v62  ;;  %v3107_v3 = vmul.f32 -1.442695, %v2637_v38  ;;  %v5237_v62 = vld [vmem:[#allocation13_spill] sm:$0xff] }
 0xe0d   :  { %v2588_v63 = vpop.f32.mrf.mxu0  ;;  %v3625_v1 = vpop.f32.mrf.mxu1  ;;  %v1749_v57 = vadd.f32 %v5237_v62, %v4881_v32 }
 0xe0e   :  { %3975 = vpow2.f32 %v3107_v3 }
 0xe19   :  { %v3974_v54 = vpop.eup %3973 }
 0xe1a   :  { %v2634_v4 = vadd.f32 1.0, %v3974_v54 }
 0xe1b   :  { %v3976_v24 = vpop.eup %3975 }
 0xe1c   :  { %3977 = vrcp.f32 %v2634_v4  ;;  %v2641_v51 = vadd.f32 1.0, %v3976_v24  ;;  %v5238_v4 = vld [vmem:[#allocation16_spill] sm:$0xff] }
 0xe1d   :  { %v1814_v24 = vadd.f32 %v5238_v4, %v4892_v59 }
 0xe29   :  { %v3978_v11 = vpop.eup %3977 }
 0xe2a   :  { %v2645_v55 = vmul.f32 %v3978_v11, %v2644_v43 }
 0xe2c   :  { %v2646_v28 = vadd.f32 %v2645_v55, %v1809_v9 }
 0xe2e   :  { %3979 = vtanh.f32 %v2646_v28 }
 0xe2f   :  { %3981 = vrcp.f32 %v2641_v51 }
 0xe3b   :  { %v3980_v52 = vpop.eup %3979 }
 0xe3c   :  { %v2648_v6 = vsub.f32 %v5084_v12, %v3980_v52  ;;  %v3982_v60 = vpop.eup %3981 }
 0xe3e   :  { %v2649_v44 = vmul.f32 %v3982_v60, %v2648_v6  ;;  %v2887_v60 = vld [vmem:[#allocation9 + $0x78] sm:$0xff] }
 0xe40   :  { %v5131_v5 = vadd.f32 %v3980_v52, %v2649_v44  ;;  %v2886_v44 = vld [vmem:[#allocation9 + $0x70] sm:$0xff] }
 0xe42   :  { %v2654_v47 = vpack.c.bf16 %v5131_v5, %v5131_v5 }
 0xe44   :  { %2688 = vmatmul.mubr.bf16.vlgmr.msra.gmra.mxu0 %v2654_v47  ;;  %3643 = vmatmul.mubr.bf16.vlgmr.msra.gmra.mxu1 %v2654_v47  ;;  %v2884_v47 = vld [vmem:[#allocation9 + $0x60] sm:$0xff] }
 0xe45   :  { %2762 = vmatpush1.bf16.msra.mxu0 %v4026_v17  ;;  %3647 = vmatpush3.bf16.msra.mxu1 %v4027_v48  ;;  %v2883_v17 = vld [vmem:[#allocation9 + $0x58] sm:$0xff]  ;;  %v2882_v48 = vld [vmem:[#allocation9 + $0x50] sm:$0xff] }
 0xe46   :  { %2763 = vmatprep.subr.bf16.mxu0 %v4028_v33  ;;  %3648 = vmatprep.subr.bf16.mxu1 %v5217_v7  ;;  %v2881_v33 = vld [vmem:[#allocation9 + $0x48] sm:$0xff] }
 0xe47   :  { %2793 = vmatprep.mubr.bf16.mxu0 %v5218_v15  ;;  %3662 = vmatprep.mubr.msk.bf16.mxu1 %vm4122_vm0, %v5217_v7  ;;  %v4035_v15 = vld [vmem:[#allocation7 + $0x120] ss:$12 sps:$4 sm:$0xff]  }
 0xe49   :  { %2764 = vmatpush1.bf16.msra.mxu0 %v4029_v37  ;;  %3649 = vmatpush3.bf16.msra.mxu1 %v4030_v50  ;;  %v2880_v37 = vld [vmem:[#allocation9 + $0x40] sm:$0xff]  ;;  %v2879_v50 = vld [vmem:[#allocation9 + $0x38] sm:$0xff] }
 0xe4a   :  { %2765 = vmatprep.subr.bf16.mxu0 %v4031_v34  ;;  %3650 = vmatprep.subr.bf16.mxu1 %v5217_v7  ;;  %v2878_v34 = vld [vmem:[#allocation9 + $0x30] sm:$0xff] }
 0xe4d   :  { %2766 = vmatpush1.bf16.msra.mxu0 %v4032_v13  ;;  %3651 = vmatpush3.bf16.msra.mxu1 %v4033_v10  ;;  %v2877_v13 = vld [vmem:[#allocation9 + $0x28] sm:$0xff]  ;;  %v2876_v10 = vld [vmem:[#allocation9 + $0x20] sm:$0xff] }
 0xe4e   :  { %2767 = vmatprep.subr.bf16.mxu0 %v4034_v41  ;;  %3652 = vmatprep.subr.bf16.mxu1 %v5217_v7  ;;  %v2875_v41 = vld [vmem:[#allocation9 + $0x18] sm:$0xff] }
 0xe51   :  { %2768 = vmatpush1.bf16.msra.mxu0 %v4035_v15  ;;  %3653 = vmatpush3.bf16.msra.mxu1 %v4036_v29  ;;  %v2874_v15 = vld [vmem:[#allocation9 + $0x10] sm:$0xff]  ;;  %v2873_v29 = vld [vmem:[#allocation9 + $0x8] sm:$0xff] }
 0xe52   :  { %2769 = vmatprep.subr.bf16.mxu0 %v4037_v21  ;;  %3654 = vmatprep.subr.bf16.mxu1 %v5217_v7  ;;  %v2872_v21 = vld [vmem:[#allocation9] sm:$0xff] }
 0xe55   :  { %2770 = vmatpush1.bf16.msra.mxu0 %v4038_v46  ;;  %3655 = vmatpush3.bf16.msra.mxu1 %v4039_v22  ;;  %v5239_v46 = vld [vmem:[#allocation17_spill] sm:$0xff] }
 0xe56   :  { %2771 = vmatprep.subr.bf16.mxu0 %v4040_v36  ;;  %3656 = vmatprep.subr.bf16.mxu1 %v5217_v7  ;;  %v1751_v22 = vadd.f32 %v5239_v46, %v4868_v30 }
 0xe59   :  { %2772 = vmatpush1.bf16.msra.mxu0 %v4041_v19  ;;  %3657 = vmatpush3.bf16.msra.mxu1 %v4042_v45 }
 0xe5a   :  { %2773 = vmatprep.subr.bf16.mxu0 %v4043_v23  ;;  %3658 = vmatprep.subr.bf16.mxu1 %v5217_v7 }
 0xe5d   :  { %2774 = vmatpush1.bf16.msra.mxu0 %v4044_v53  ;;  %3659 = vmatpush3.bf16.msra.mxu1 %v4045_v26 }
 0xe5e   :  { %2775 = vmatprep.subr.bf16.mxu0 %v4046_v8  ;;  %3660 = vmatprep.subr.bf16.mxu1 %v5217_v7 }
 0xe61   :  { %2776 = vmatpush1.bf16.msra.mxu0 %v4047_v39  ;;  %3661 = vmatpush3.bf16.msra.mxu1 %v4048_v56 }
 0xe62   :  { %3666 = vmatprep.subr.mxu0 %v5217_v7 }
 0xf04   :  { %v2689_v20 = vpop.f32.mrf.mxu0  ;;  %v2730_v42 = vpop.f32.mrf.mxu1 }
 0xf05   :  { %v2736_v12 = vadd.f32 %v2689_v20, %v1747_v49  ;;  %v2750_v3 = vadd.f32 %v4887_v18, %v2730_v42  ;;  %v5240_v49 = vld [vmem:[#allocation12_spill] sm:$0xff] }
 0xf06   :  { %v2691_v27 = vpop.f32.mrf.mxu0  ;;  %v3644_v0 = vpop.f32.mrf.mxu1  ;;  %v1753_v20 = vadd.f32 %v5240_v49, %v4881_v32 }
 0xf07   :  { %v3108_v25 = vmul.f32 -1.442695, %v2736_v12  ;;  %v2743_v35 = vadd.f32 %v2691_v27, %v1749_v57 }
 0xf08   :  { %v2693_v14 = vpop.f32.mrf.mxu0  ;;  %v2733_v58 = vpop.f32.mrf.mxu1 }
 0xf09   :  { %3983 = vpow2.f32 %v3108_v25  ;;  %v3109_v63 = vmul.f32 -1.442695, %v2743_v35  ;;  %v5241_v14 = vld [vmem:[#allocation14_spill] sm:$0xff] }
 0xf0a   :  { %v2694_v40 = vpop.f32.mrf.mxu0  ;;  %v3645_v61 = vpop.f32.mrf.mxu1  ;;  %v1817_v58 = vadd.f32 %v5241_v14, %v4892_v59 }
 0xf0b   :  { %3985 = vpow2.f32 %v3109_v63 }
 0xf16   :  { %v3984_v1 = vpop.eup %3983 }
 0xf17   :  { %v2740_v2 = vadd.f32 1.0, %v3984_v1 }
 0xf18   :  { %v3986_v38 = vpop.eup %3985 }
 0xf19   :  { %3987 = vrcp.f32 %v2740_v2  ;;  %v2747_v16 = vadd.f32 1.0, %v3986_v38 }
 0xf26   :  { %v3988_v54 = vpop.eup %3987 }
 0xf27   :  { %v2751_v43 = vmul.f32 %v3988_v54, %v2750_v3 }
 0xf29   :  { %v2752_v11 = vadd.f32 %v2751_v43, %v1814_v24 }
 0xf2b   :  { %3989 = vtanh.f32 %v2752_v11 }
 0xf2c   :  { %3991 = vrcp.f32 %v2747_v16 }
 0xf38   :  { %v3990_v9 = vpop.eup %3989 }
 0xf39   :  { %v2754_v55 = vsub.f32 %v5131_v5, %v3990_v9  ;;  %v3992_v28 = vpop.eup %3991  ;;  %v2885_v5 = vld [vmem:[#allocation9 + $0x68] sm:$0xff] }
 0xf3b   :  { %v2755_v51 = vmul.f32 %v3992_v28, %v2754_v55 }
 0xf3d   :  { %v5154_v52 = vadd.f32 %v3990_v9, %v2755_v51 }
 0xf3f   :  { %v2760_v6 = vpack.c.bf16 %v5154_v52, %v5154_v52 }
 0xf41   :  { %2794 = vmatmul.mubr.bf16.vlgmr.msra.gmra.mxu0 %v2760_v6  ;;  %3663 = vmatmul.mubr.bf16.vlgmr.msra.gmra.mxu1 %v2760_v6 }
 0xf42   :  { %3698 = vmatprep.mubr.msk.f32.mxu0 %vm4122_vm0, %v5217_v7  ;;  %3667 = vmatpush3.msra.mxu0 %v2887_v60 }
 0xf43   :  { %3668 = vmatprep.subr.mxu0 %v5217_v7 }
 0xf44   :  { %3669 = vmatpush3.msra.mxu0 %v2886_v44 }
 0xf45   :  { %3670 = vmatprep.subr.mxu0 %v5217_v7 }
 0xf46   :  { %3671 = vmatpush3.msra.mxu0 %v2885_v5 }
 0xf47   :  { %3672 = vmatprep.subr.mxu0 %v5217_v7 }
 0xf48   :  { %3673 = vmatpush3.msra.mxu0 %v2884_v47 }
 0xf49   :  { %3674 = vmatprep.subr.mxu0 %v5217_v7 }
 0xf4a   :  { %3675 = vmatpush3.msra.mxu0 %v2883_v17 }
 0xf4b   :  { %3676 = vmatprep.subr.mxu0 %v5217_v7 }
 0xf4c   :  { %3677 = vmatpush3.msra.mxu0 %v2882_v48 }
 0xf4d   :  { %3678 = vmatprep.subr.mxu0 %v5217_v7 }
 0xf4e   :  { %3679 = vmatpush3.msra.mxu0 %v2881_v33 }
 0xf4f   :  { %3680 = vmatprep.subr.mxu0 %v5217_v7 }
 0xf50   :  { %3681 = vmatpush3.msra.mxu0 %v2880_v37 }
 0xf51   :  { %3682 = vmatprep.subr.mxu0 %v5217_v7 }
 0xf52   :  { %3683 = vmatpush3.msra.mxu0 %v2879_v50 }
 0xf53   :  { %3684 = vmatprep.subr.mxu0 %v5217_v7 }
 0xf54   :  { %3685 = vmatpush3.msra.mxu0 %v2878_v34 }
 0xf55   :  { %3686 = vmatprep.subr.mxu0 %v5217_v7 }
 0xf56   :  { %3687 = vmatpush3.msra.mxu0 %v2877_v13 }
 0xf57   :  { %3688 = vmatprep.subr.mxu0 %v5217_v7 }
 0xf58   :  { %3689 = vmatpush3.msra.mxu0 %v2876_v10 }
 0xf59   :  { %3690 = vmatprep.subr.mxu0 %v5217_v7 }
 0xf5a   :  { %3691 = vmatpush3.msra.mxu0 %v2875_v41 }
 0xf5b   :  { %3692 = vmatprep.subr.mxu0 %v5217_v7 }
 0xf5c   :  { %3693 = vmatpush3.msra.mxu0 %v2874_v15 }
 0xf5d   :  { %3694 = vmatprep.subr.mxu0 %v5217_v7 }
 0xf5e   :  { %3695 = vmatpush3.msra.mxu0 %v2873_v29 }
 0xf5f   :  { %3696 = vmatprep.subr.mxu0 %v5217_v7 }
 0xf60   :  { %3697 = vmatpush3.msra.mxu0 %v2872_v21 }
0x1001   :  { %v2795_v36 = vpop.f32.mrf.mxu0  ;;  %v2836_v19 = vpop.f32.mrf.mxu1 }
0x1002   :  { %v2842_v45 = vadd.f32 %v2795_v36, %v1751_v22  ;;  %v2856_v0 = vadd.f32 %v4887_v18, %v2836_v19  ;;  %v3112_v18 = vld [vmem:[%s5199_s7] ss:$0 sm:$0xff] }
0x1003   :  { %v2797_v23 = vpop.f32.mrf.mxu0  ;;  %v3664_v53 = vpop.f32.mrf.mxu1 }
0x1004   :  { %v3110_v26 = vmul.f32 -1.442695, %v2842_v45  ;;  %v2849_v42 = vadd.f32 %v2797_v23, %v1753_v20 }
0x1005   :  { %v2799_v8 = vpop.f32.mrf.mxu0  ;;  %v2839_v39 = vpop.f32.mrf.mxu1 }
0x1006   :  { %3993 = vpow2.f32 %v3110_v26  ;;  %v3111_v7 = vmul.f32 -1.442695, %v2849_v42 }
0x1007   :  { %v2800_v56 = vpop.f32.mrf.mxu0  ;;  %v3665_v31 = vpop.f32.mrf.mxu1 }
0x1008   :  { %3995 = vpow2.f32 %v3111_v7 }
0x1013   :  { %v3994_v12 = vpop.eup %3993 }
0x1014   :  { %v2846_v27 = vadd.f32 1.0, %v3994_v12 }
0x1015   :  { %v3996_v30 = vpop.eup %3995 }
0x1016   :  { %3997 = vrcp.f32 %v2846_v27  ;;  %v2853_v62 = vadd.f32 1.0, %v3996_v30 }
0x1023   :  { %v3998_v25 = vpop.eup %3997 }
0x1024   :  { %v2857_v40 = vmul.f32 %v3998_v25, %v2856_v0 }
0x1026   :  { %v2858_v61 = vadd.f32 %v2857_v40, %v1817_v58 }
0x1028   :  { %3999 = vtanh.f32 %v2858_v61 }
0x1029   :  { %4001 = vrcp.f32 %v2853_v62 }
0x1035   :  { %v4000_v57 = vpop.eup %3999 }
0x1036   :  { %v2860_v32 = vsub.f32 %v5154_v52, %v4000_v57  ;;  %v4002_v35 = vpop.eup %4001 }
0x1038   :  { %v2861_v63 = vmul.f32 %v4002_v35, %v2860_v32 }
0x103a   :  { %v2862_v1 = vadd.f32 %v4000_v57, %v2861_v63 }
0x103c   :  { %2870 = vst [vmem:[%s5201_s9 + $0x8] sm:$0xff] %v2862_v1  ;;  %3699 = vmatmul.mubr.f32.vlgmr.msra.gmra.mxu0 %v2862_v1 }
0x10fc   :  { %v2961_v59 = vpop.f32.mrf.mxu0 }
0x10fd   :  { %v2962_v2 = vadd.f32 %v3112_v18, %v2961_v59 }
0x10fe   :  { %v3700_v38 = vpop.f32.mrf.mxu0 }
0x10ff   :  { %2965 = vst [vmem:[%s5200_s8] sm:$0xff] %v2962_v2 }
0x1100   :  { %2974 = vsyncpa [#allocation6], 1 }
0x1101   :  { %2975 = vsyncpa [#allocation8], 1 }

</bundles_post_ra>
